<compile_context>
chip_gen: v6e
topology: v6e:2x2x1
jax: 0.10.0
libtpu: 0.0.40
codegen_flags: <defaults>
</compile_context>

<pallas_src>
import jax
import jax.numpy as jnp
from jax import lax
from jax.experimental import pallas as pl
from jax.experimental.pallas import tpu as pltpu

MARGIN = 0.1  # hard-coded in the PyTorch forward


def _hinge_kernel(im_ref, s_ref, dcol_ref, drow_ref, out_ref):
    i = pl.program_id(0)
    j = pl.program_id(1)
    tm = im_ref.shape[0]
    tn = s_ref.shape[0]

    @pl.when(j == 0)
    def _init():
        out_ref[...] = jnp.zeros_like(out_ref)

    # scores tile = im_i @ s_j.T, contracting the feature dim directly
    # (no transposed copy of s before the MXU push); bf16 operands, f32 acc.
    scores = lax.dot_general(
        im_ref[...], s_ref[...],
        dimension_numbers=(((1,), (1,)), ((), ())),
        preferred_element_type=jnp.float32,
    )

    # Margin already folded into dcol/drow on the wrapper side:
    #   hinge = max(margin + scores - d1, 0) + max(margin + scores - d2, 0)
    hinge = (jnp.maximum(scores - dcol_ref[...], 0.0)
             + jnp.maximum(scores - drow_ref[...], 0.0))

    def _vreg_sum(x):
        # Lane/sublane-aligned partial reduce: pure per-vreg VPU adds,
        # no cross-lane XLU work and no scalar broadcast per tile.
        return x.reshape(tm // 8, 8, tn // 128, 128).sum(axis=(0, 2))

    out_ref[...] += _vreg_sum(hinge)

    # Remove the diagonal's contribution exactly — only on tiles whose
    # row/col ranges actually contain diagonal entries.
    row0 = i * tm
    col0 = j * tn

    @pl.when(jnp.logical_and(row0 < col0 + tn, col0 < row0 + tm))
    def _mask_diag():
        rows = row0 + lax.broadcasted_iota(jnp.int32, (tm, tn), 0)
        cols = col0 + lax.broadcasted_iota(jnp.int32, (tm, tn), 1)
        out_ref[...] -= _vreg_sum(jnp.where(rows == cols, hinge, 0.0))


def contrastive_loss(im, s, *, block_m=512, block_n=256,
                     operand_dtype=jnp.bfloat16):
    """im: (N, D), s: (N, D) -> scalar f32 loss (sum path, max_violation=False)."""
    assert im.ndim == 2 and im.shape == s.shape
    n, d = im.shape

    tm = min(block_m, n)
    # Prefer >= 2 row blocks so v7x's two TensorCores both get work.
    if tm == n and n >= 16 and n % 16 == 0:
        tm = n // 2
    tn = min(block_n, n)
    assert n % tm == 0 and n % tn == 0, "batch must be divisible by block sizes"
    assert tm % 8 == 0 and tn % 128 == 0, \
        "tiles must respect the (8,128) vreg layout"
    ni, nj = n // tm, n // tn

    # MXU operands in bf16 (f32 accumulation in-kernel); hinge math stays f32.
    im_c = im.astype(operand_dtype)
    s_c = s.astype(operand_dtype)

    # diag(scores) in O(N*D), computed from the same rounded operands the MXU
    # sees; margin folded in here so the N^2 hot loop has no extra add.
    diag = jnp.sum(im_c.astype(jnp.float32) * s_c.astype(jnp.float32),
                   axis=1, keepdims=True)
    dcol = diag - jnp.float32(MARGIN)            # (N, 1)  -> d1 - margin
    drow = dcol.reshape(1, n)                    # (1, N)  -> d2 - margin

    partials = pl.pallas_call(
        _hinge_kernel,
        out_shape=jax.ShapeDtypeStruct((ni * 8, 128), jnp.float32),
        grid=(ni, nj),
        in_specs=[
            pl.BlockSpec((tm, d), lambda i, j: (i, 0)),   # im row block
            pl.BlockSpec((tn, d), lambda i, j: (j, 0)),   # s  col block
            pl.BlockSpec((tm, 1), lambda i, j: (i, 0)),   # (diag - margin) column
            pl.BlockSpec((1, tn), lambda i, j: (0, j)),   # (diag - margin) row
        ],
        out_specs=pl.BlockSpec((8, 128), lambda i, j: (i, 0)),
        compiler_params=pltpu.CompilerParams(
            dimension_semantics=("parallel", "arbitrary"),
            # Explicit budget: generous for double-buffered bf16 input tiles
            # plus the (tm, tn) f32 scores/hinge temporaries, but safely under
            # v7x's 64 MiB physical VMEM.
            vmem_limit_bytes=48 * 1024 * 1024,
        ),
    )(im_c, s_c, dcol, drow)

    # Single cross-lane/sublane reduction, done once in XLA.
    return partials.sum()


def _reference_loss(im, s):
    # Pure-JAX reference mirroring the PyTorch forward.
    scores = im @ s.T
    diag = jnp.diag(scores)[:, None]
    eye = jnp.eye(scores.shape[0], dtype=bool)
    cost_s = jnp.where(eye, 0.0, jnp.maximum(0.1 + scores - diag, 0.0))
    cost_im = jnp.where(eye, 0.0, jnp.maximum(0.1 + scores - diag.T, 0.0))
    return cost_s.sum() + cost_im.sum()


if __name__ == "__main__":
    key = jax.random.PRNGKey(0)
    k_im, k_s = jax.random.split(key)
    N, D = 512, 64  # batch of 512 embeddings, hidden size 64
    im = jax.random.normal(k_im, (N, D), dtype=jnp.float32)
    s = jax.random.normal(k_s, (N, D), dtype=jnp.float32)

    # tm=128, tn=256 -> (4, 2) grid: exercises the j-axis accumulation,
    # the diagonal-tile masking, and multi-row-block ("parallel") sharding.
    loss = contrastive_loss(im, s, block_m=128, block_n=256)
    loss = jax.block_until_ready(loss)

    # Reference at the kernel's operand precision (bf16-rounded inputs).
    ref_bf16 = _reference_loss(im.astype(jnp.bfloat16).astype(jnp.float32),
                               s.astype(jnp.bfloat16).astype(jnp.float32))
    # Reference at full f32 (original PyTorch semantics).
    ref_f32 = _reference_loss(im, s)

    assert jnp.allclose(loss, ref_bf16, rtol=1e-4), (loss, ref_bf16)
    assert jnp.allclose(loss, ref_f32, rtol=1e-2), (loss, ref_f32)

    print("KERNEL_OK")
</pallas_src>

<mosaic_0001>
module attributes {stable_mosaic.version = 11 : i64} {
  func.func @_hinge_kernel(%arg0: i32, %arg1: i32, %arg2: memref<128x64xbf16, #tpu.memory_space<vmem>>, %arg3: memref<256x64xbf16, #tpu.memory_space<vmem>>, %arg4: memref<128x1xf32, #tpu.memory_space<vmem>>, %arg5: memref<1x256xf32, #tpu.memory_space<vmem>>, %arg6: memref<8x128xf32, #tpu.memory_space<vmem>>) attributes {dimension_semantics = [#tpu.dimension_semantics<parallel>, #tpu.dimension_semantics<arbitrary>], iteration_bounds = array<i64: 4, 2>, scalar_prefetch = 0 : i64, scratch_operands = 0 : i64, tpu.core_type = #tpu.core_type<tc>, window_params = [{transform_indices = @transform_0, window_bounds = array<i64: 128, 64>}, {transform_indices = @transform_1, window_bounds = array<i64: 256, 64>}, {transform_indices = @transform_2, window_bounds = array<i64: 128, 1>}, {transform_indices = @transform_3, window_bounds = array<i64: 1, 256>}, {transform_indices = @transform_4, window_bounds = array<i64: 8, 128>}]} {
    %c0_i32 = arith.constant 0 : i32
    %0 = arith.cmpi eq, %arg1, %c0_i32 : i32
    %1 = arith.extui %0 : i1 to i32
    %c0_i32_0 = arith.constant 0 : i32
    %2 = arith.cmpi ne, %1, %c0_i32_0 : i32
    scf.if %2 {
      %cst_18 = arith.constant 0.000000e+00 : f32
      %31 = vector.broadcast %cst_18 : f32 to vector<8x128xf32>
      %c0_19 = arith.constant 0 : index
      %c0_20 = arith.constant 0 : index
      %32 = vector.load %arg6[%c0_19, %c0_20] : memref<8x128xf32, #tpu.memory_space<vmem>>, vector<8x128xf32>
      tpu.vector_store %arg6[%c0_19, %c0_20], %31 {strides = array<i32>} : memref<8x128xf32, #tpu.memory_space<vmem>>, vector<8x128xf32>,
    } else {
    }
    %c0 = arith.constant 0 : index
    %c0_1 = arith.constant 0 : index
    %3 = vector.load %arg2[%c0, %c0_1] : memref<128x64xbf16, #tpu.memory_space<vmem>>, vector<128x64xbf16>
    %c0_2 = arith.constant 0 : index
    %c0_3 = arith.constant 0 : index
    %4 = vector.load %arg3[%c0_2, %c0_3] : memref<256x64xbf16, #tpu.memory_space<vmem>>, vector<256x64xbf16>
    %cst = arith.constant dense<0.000000e+00> : vector<128x256xf32>
    %5 = tpu.matmul %3, %4, %cst {dimension_numbers = #tpu.dot_dimension_numbers<[1], [1], [0], [0], [0, 0, 1, 0], [], []>} : vector<128x64xbf16>, vector<256x64xbf16>, vector<128x256xf32> -> vector<128x256xf32>
    %c0_4 = arith.constant 0 : index
    %c0_5 = arith.constant 0 : index
    %6 = vector.load %arg4[%c0_4, %c0_5] : memref<128x1xf32, #tpu.memory_space<vmem>>, vector<128x1xf32>
    %7 = vector.broadcast %6 : vector<128x1xf32> to vector<128x256xf32>
    %8 = arith.subf %5, %7 : vector<128x256xf32>
    %cst_6 = arith.constant 0.000000e+00 : f32
    %9 = vector.broadcast %cst_6 : f32 to vector<128x256xf32>
    %10 = arith.maximumf %8, %9 : vector<128x256xf32>
    %c0_7 = arith.constant 0 : index
    %c0_8 = arith.constant 0 : index
    %11 = vector.load %arg5[%c0_7, %c0_8] : memref<1x256xf32, #tpu.memory_space<vmem>>, vector<1x256xf32>
    %12 = vector.broadcast %11 : vector<1x256xf32> to vector<128x256xf32>
    %13 = arith.subf %5, %12 : vector<128x256xf32>
    %cst_9 = arith.constant 0.000000e+00 : f32
    %14 = vector.broadcast %cst_9 : f32 to vector<128x256xf32>
    %15 = arith.maximumf %13, %14 : vector<128x256xf32>
    %16 = arith.addf %10, %15 : vector<128x256xf32>
    %c0_10 = arith.constant 0 : index
    %c0_11 = arith.constant 0 : index
    %17 = vector.load %arg6[%c0_10, %c0_11] : memref<8x128xf32, #tpu.memory_space<vmem>>, vector<8x128xf32>
    %18 = vector.shape_cast %16 : vector<128x256xf32> to vector<16x8x2x128xf32>
    %cst_12 = arith.constant dense<0.000000e+00> : vector<8x128xf32>
    %19 = vector.multi_reduction <add>, %18, %cst_12 [0, 2] : vector<16x8x2x128xf32> to vector<8x128xf32>
    %20 = arith.addf %17, %19 : vector<8x128xf32>
    %c0_13 = arith.constant 0 : index
    %c0_14 = arith.constant 0 : index
    %21 = vector.load %arg6[%c0_13, %c0_14] : memref<8x128xf32, #tpu.memory_space<vmem>>, vector<8x128xf32>
    tpu.vector_store %arg6[%c0_13, %c0_14], %20 {strides = array<i32>} : memref<8x128xf32, #tpu.memory_space<vmem>>, vector<8x128xf32>,
    %c128_i32 = arith.constant 128 : i32
    %22 = arith.muli %arg0, %c128_i32 : i32
    %c256_i32 = arith.constant 256 : i32
    %23 = arith.muli %arg1, %c256_i32 : i32
    %c256_i32_15 = arith.constant 256 : i32
    %24 = arith.addi %23, %c256_i32_15 : i32
    %25 = arith.cmpi slt, %22, %24 : i32
    %c128_i32_16 = arith.constant 128 : i32
    %26 = arith.addi %22, %c128_i32_16 : i32
    %27 = arith.cmpi slt, %23, %26 : i32
    %28 = arith.andi %25, %27 : i1
    %29 = arith.extui %28 : i1 to i32
    %c0_i32_17 = arith.constant 0 : i32
    %30 = arith.cmpi ne, %29, %c0_i32_17 : i32
    scf.if %30 {
      %31 = tpu.iota {dimensions = array<i32: 0>} : vector<128x256xi32>
      %32 = vector.broadcast %22 : i32 to vector<128x256xi32>
      %33 = arith.addi %32, %31 : vector<128x256xi32>
      %34 = tpu.iota {dimensions = array<i32: 1>} : vector<128x256xi32>
      %35 = vector.broadcast %23 : i32 to vector<128x256xi32>
      %36 = arith.addi %35, %34 : vector<128x256xi32>
      %c0_18 = arith.constant 0 : index
      %c0_19 = arith.constant 0 : index
      %37 = vector.load %arg6[%c0_18, %c0_19] : memref<8x128xf32, #tpu.memory_space<vmem>>, vector<8x128xf32>
      %38 = arith.cmpi eq, %33, %36 : vector<128x256xi32>
      %cst_20 = arith.constant 0.000000e+00 : f32
      %39 = vector.broadcast %cst_20 : f32 to vector<128x256xf32>
      %40 = arith.select %38, %16, %39 : vector<128x256xi1>, vector<128x256xf32>
      %41 = vector.shape_cast %40 : vector<128x256xf32> to vector<16x8x2x128xf32>
      %cst_21 = arith.constant dense<0.000000e+00> : vector<8x128xf32>
      %42 = vector.multi_reduction <add>, %41, %cst_21 [0, 2] : vector<16x8x2x128xf32> to vector<8x128xf32>
      %43 = arith.subf %37, %42 : vector<8x128xf32>
      %c0_22 = arith.constant 0 : index
      %c0_23 = arith.constant 0 : index
      %44 = vector.load %arg6[%c0_22, %c0_23] : memref<8x128xf32, #tpu.memory_space<vmem>>, vector<8x128xf32>
      tpu.vector_store %arg6[%c0_22, %c0_23], %43 {strides = array<i32>} : memref<8x128xf32, #tpu.memory_space<vmem>>, vector<8x128xf32>,
    } else {
    }
    return
  }
  func.func @transform_0(%arg0: i32, %arg1: i32) -> (i32, i32) {
    %c0_i32 = arith.constant 0 : i32
    %c0_i32_0 = arith.constant 0 : i32
    return %arg0, %c0_i32 : i32, i32
  }
  func.func @transform_1(%arg0: i32, %arg1: i32) -> (i32, i32) {
    %c0_i32 = arith.constant 0 : i32
    %c0_i32_0 = arith.constant 0 : i32
    return %arg1, %c0_i32 : i32, i32
  }
  func.func @transform_2(%arg0: i32, %arg1: i32) -> (i32, i32) {
    %c0_i32 = arith.constant 0 : i32
    %c0_i32_0 = arith.constant 0 : i32
    return %arg0, %c0_i32 : i32, i32
  }
  func.func @transform_3(%arg0: i32, %arg1: i32) -> (i32, i32) {
    %c0_i32 = arith.constant 0 : i32
    %c0_i32_0 = arith.constant 0 : i32
    return %c0_i32, %arg1 : i32, i32
  }
  func.func @transform_4(%arg0: i32, %arg1: i32) -> (i32, i32) {
    %c0_i32 = arith.constant 0 : i32
    %c0_i32_0 = arith.constant 0 : i32
    return %arg0, %c0_i32 : i32, i32
  }
}

</mosaic_0001>

<bundles_post_ra>
// kernel: tpu_custom_call.1
= control target key start
LH: loop header
LB: loop body
LE: loop exit
PB: predicated region body
PF: predicated region fallthrough
CT: control target
= control target key end

     0   :  { %9 = vsyncpa [#allocation3], 0  ;;  %s6519_s0 = inlined_call_operand.vmem [shape: bf16[512,64], index: 0, kind: input, shape index: {}]   ;;  %s6520_s1 = inlined_call_operand.vmem [shape: bf16[512,64], index: 1, kind: input, shape index: {}]   ;;  %s6521_s2 = inlined_call_operand.vmem [shape: f32[512,1], index: 2, kind: input, shape index: {}]   ;;  %s6522_s3 = inlined_call_operand.vmem [shape: f32[1,512], index: 3, kind: input, shape index: {}]   ;;  %s6523_s4 = inlined_call_operand.hbm [shape: f32[32,128], index: 4, kind: output, shape index: {}]  }
   0x1   :  { %11 = vsyncpa [#allocation3 + $0x1], 0  ;;  %s4227_s15 = smov 0   ;;  %s4229_s16 = smov 0  }
   0x2   :  { %s4231_s17 = smov 0   ;;  %s4233_s18 = smov 0  }
   0x3   :  { %s4235_s19 = smov 0   ;;  %s4237_s20 = smov 0  }
   0x4   :  { %s4239_s21 = smov 0   ;;  %s4241_s22 = smov 0  }
   0x5 LB: > { %6599 = sst [smem:[#allocation5_spill]] %s4189_s21  ;;  %s3882_s23 = sadd.s32 4294967295, %s4193_s22   ;;  %s4193_s22 = sphi %s4241_s22, %s17_s22   ;;  %s4189_s21 = sphi %s4239_s21, %s6993_s21   ;;  %s4185_s20 = sphi %s4237_s20, %s6998_s20   ;;  %s4181_s19 = sphi %s4235_s19, %s6991_s19   ;;  %s4177_s18 = sphi %s4233_s18, %s6997_s18   ;;  %s4173_s17 = sphi %s4231_s17, %s6996_s17   ;;  %s4169_s16 = sphi %s4229_s16, %s6995_s16   ;;  %s4165_s15 = sphi %s4227_s15, %s6994_s15  }
   0x6   : > { %s3883_s24 = sadd.s32 4294967294, %s4193_s22   ;;  %s26_s25 = sadd.s32 1, %s4185_s20 }
   0x7   : > { %p27_p0 = scmp.ge.s32.totalorder %s26_s25, 2  ;;  %s29_s26 = sadd.s32 1, %s4189_s21 }
   0x8   : > { %p150_p1 = scmp.ne.s32.totalorder %s4173_s17, %s4169_s16  ;;  %p151_p2 = scmp.eq.s32.totalorder %s3882_s23, 7 }
   0x9   : > { %s7000_s25 = smov (%p27_p0, %s26_s25), 0  ;;  %s7002_s26 = smov (!%p27_p0, %s29_s26), %s4189_s21 }
   0xa   : > { %6600 = sst [smem:[#allocation6_spill]] %s7000_s25  ;;  %p4276_p3 = por %p151_p2, %p150_p1 }
   0xb   : > { %p156_p4 = scmp.ne.s32.totalorder %s4169_s16, %s4165_s15  ;;  %p31_p5 = scmp.ge.s32.totalorder %s7002_s26, 4 }
   0xc   : > { %p157_p6 = scmp.eq.s32.totalorder %s3883_s24, 7  ;;  %p3886_p7 = scmp.ge.s32.totalorder %s4193_s22, 1 }
   0xd   : > { %p210_p8 = scmp.lt.s32.totalorder %s4193_s22, 9  ;;  %s7004_s26 = smov (%p31_p5, %s7002_s26), 0 }
   0xe   : > { %6602 = sst [smem:[#allocation7_spill]] %s7004_s26  ;;  %p4286_p9 = por %p157_p6, %p156_p4 }
   0xf   : > { %p211_p10 = pnand %p3886_p7, %p210_p8  ;;  %s137_s29 = ssub.s32 %s4189_s21, %s7004_s26 }
  0x10   : > { %s140_s30 = sadd.s32 1, %s4173_s17  ;;  %p138_p11 = scmp.eq.s32.totalorder %s137_s29, 0 }
  0x11   : > { %214 = sbr.rel (%p211_p10) target bundleno = 745 (0x2e9), region = 36 }
  0x12   : > { %s4294_s5 = scalar_select %p138_p11, %s4173_s17, %s140_s30  }
  0x16   : > { %s6524_s6 = sand.u32 1, %s4169_s16   ;;  %s3888_s7 = sshll.u32 %s4181_s19, 4 }
  0x17   : > { %s3887_s8 = sshll.u32 %s6524_s6, 3  ;;  %p251_p12 = scmp.lt.s32.totalorder %s3888_s7, 63 }
  0x18   : > { %s3890_s9 = sshll.u32 %s4177_s18, 5  ;;  %s3894_s10 = sshll.u32 %s4177_s18, 1 }
  0x19   : > { %s7006_s7 = smov (!%p251_p12, %s3888_s7), 63  ;;  %p257_p13 = scmp.lt.s32.totalorder %s3890_s9, 63 }
  0x1a   : > { %s3889_s11 = sshll.u32 %s7006_s7, 2  ;;  %s3893_s12 = sshll.u32 %s7006_s7, 3 }
  0x1b   : > { %s4305_s23 = scalar_lea.vmem %s6519_s0, %s3889_s11  ;;  %s4310_s30 = scalar_lea.vmem %s6521_s2, %s3893_s12 }
  0x1c   : > { %s7008_s9 = smov (!%p257_p13, %s3890_s9), 63  ;;  %p269_p0 = scmp.lt.s32.totalorder %s3894_s10, 3 }
  0x1d   : > { %s3891_s6 = sshll.u32 %s7008_s9, 2  ;;  %s4323_s14 = scalar_lea.vmem [#allocation2], %s3887_s8 }
  0x1e   : > { %s4315_s21 = scalar_lea.vmem %s6520_s1, %s3891_s6  ;;  %s7010_s10 = smov (!%p269_p0, %s3894_s10), 3 }
  0x1f   : > { %s271_s11 = scalar_lea.vmem %s6522_s3, %s7010_s10  ;;  %p3895_p1 = scmp.ne.s32.totalorder %s4177_s18, 0 }
  0x21   : > { %277 = sbr.rel (%p3895_p1) target bundleno = 40 (0x28), region = 40 }
  0x26   : > { %v4195_v0 = vmov 0.0  }
  0x27   : > { %278 = vst [vmem:[%s4323_s14] sm:$0xff] %v4195_v0 }
  0x28 PF: > { %v4077_v1 = vld [vmem:[%s4315_s21 + $0x78] sm:$0xff]   ;;  %vm447_vm0 = vcmask 523264   ;;  %v4079_v3 = vld [vmem:[%s4315_s21 + $0x70] sm:$0xff]   ;;  %v4196_v5 = vmov 0   ;;  %v4081_v8 = vld [vmem:[%s4315_s21 + $0x68] sm:$0xff]   ;;  %v6527_v52 = vlaneseq  ;;  %vm6570_vm1 = vcmask 1041408  }
  0x29   : > { %v4078_v2 = vld [vmem:[%s4315_s21 + $0x38] sm:$0xff]   ;;  %3982 = vmatprep.subr.msk.bf16.mxu0 %vm447_vm0, %v4077_v1  ;;  %3983 = vmatprep.subr.msk.bf16.mxu1 %vm447_vm0, %v4077_v1  ;;  %v4080_v6 = vld [vmem:[%s4315_s21 + $0x30] sm:$0xff]   ;;  %v4082_v9 = vld [vmem:[%s4315_s21 + $0x28] sm:$0xff]   ;;  %v4197_v60 = vmov 1983009808   ;;  %s4808_s26 = sshll.u32 %s4181_s19, 7 }
  0x2a   : > { %v494_v4 = vsel %vm447_vm0, %v4078_v2, 0  ;;  %4075 = vset.pattern.permute.xlu0 %v4196_v5  ;;  %4076 = vset.pattern.permute.xlu1 %v4196_v5  ;;  %v491_v7 = vsel %vm447_vm0, %v4080_v6, 0  ;;  %v4083_v10 = vld [vmem:[%s4315_s21 + $0x60] sm:$0xff]   ;;  %v488_v12 = vsel %vm447_vm0, %v4082_v9, 0  ;;  %v635_v16 = vld [vmem:[%s4310_s30 + $0x10] sm:$0xff]  ;;  %v4085_v18 = vld [vmem:[%s4315_s21 + $0x58] sm:$0xff]   ;;  %v904_v61 = vunpack.c.l.s4 %v4197_v60 }
  0x2b   : > { %3935 = vmatpush3.bf16.xpose.msra.mxu0 %v494_v4  ;;  %3974 = vmatpush3.bf16.xpose.msra.mxu1 %v494_v4  ;;  %v4343_v11 = vld [vmem:[%s4305_s23] sm:$0xff]   ;;  %v634_v19 = vld [vmem:[%s4310_s30 + $0x8] sm:$0xff]  ;;  %v636_v20 = vld [vmem:[%s4310_s30 + $0x18] sm:$0xff]  ;;  %v4420_v54 = vshrl.u32 %v6527_v52, 7  ;;  %v4198_v5 = vmov 1934713408  }
  0x2c   : > { %3984 = vmatprep.subr.msk.bf16.mxu0 %vm447_vm0, %v4079_v3  ;;  %3985 = vmatprep.subr.msk.bf16.mxu1 %vm447_vm0, %v4079_v3  ;;  %v4347_v13 = vld [vmem:[%s4305_s23 + $0x20] sm:$0xff]   ;;  %v4086_v21 = vld [vmem:[%s4315_s21 + $0x18] sm:$0xff]   ;;  %v638_v23 = vld [vmem:[%s4310_s30 + $0x28] sm:$0xff]  ;;  %v905_v2 = vunpack.c.0.s8 %v904_v61  ;;  %v935_v6 = vunpack.c.l.s4 %v4198_v5  ;;  %s4811_s6 = sshll.u32 %s4177_s18, 8  ;;  %s2284_s9 = sadd.s32 128, %s4808_s26  ;;  %vm6569_vm2 = vcmask 1041409  }
  0x2d   : > { %3950 = vmatprep.mubr.msk.bf16.mxu0 %vm447_vm0, %v4343_v11  ;;  %3958 = vmatprep.mubr.msk.bf16.mxu1 %vm447_vm0, %v4347_v13  ;;  %v4084_v14 = vld [vmem:[%s4315_s21 + $0x20] sm:$0xff]   ;;  %v482_v24 = vsel %vm447_vm0, %v4086_v21, 0  ;;  %v4087_v25 = vld [vmem:[%s4315_s21 + $0x50] sm:$0xff]   ;;  %v640_v27 = vld [vmem:[%s4310_s30 + $0x38] sm:$0xff]  ;;  %6604 = vst [vmem:[#allocation8_spill] sm:$0xff] %v4420_v54  ;;  %v797_v57 = vsub.s32 0, %v4420_v54  ;;  %p4830_p4 = scmp.lt.s32.totalorder %s4811_s6, %s2284_s9 }
  0x2e   : > { %v633_v15 = vld [vmem:[%s4310_s30] sm:$0xff]  ;;  %v485_v17 = vsel %vm447_vm0, %v4084_v14, 0  ;;  %661 = vperm.xlu1 %4076, %v635_v16   ;;  %v639_v26 = vld [vmem:[%s4310_s30 + $0x30] sm:$0xff]  ;;  %v642_v30 = vld [vmem:[%s4310_s30 + $0x48] sm:$0xff]  ;;  %v801_v62 = vsub.s32 1, %v4420_v54  ;;  %s2282_s8 = sadd.s32 256, %s4811_s6 }
  0x2f   : > { %651 = vperm.xlu0 %4075, %v633_v15   ;;  %v637_v22 = vld [vmem:[%s4310_s30 + $0x20] sm:$0xff]  ;;  %v4088_v28 = vld [vmem:[%s4315_s21 + $0x10] sm:$0xff]   ;;  %v4089_v32 = vld [vmem:[%s4315_s21 + $0x48] sm:$0xff]   ;;  %p4825_p2 = scmp.lt.s32.totalorder %s4808_s26, %s2282_s8  ;;  %vm6568_vm3 = vcmask 1042434   ;;  %vm6567_vm4 = vcmask 1043459   ;;  %vm6566_vm5 = vcmask 1044484  }
  0x30   : > { %v641_v29 = vld [vmem:[%s4310_s30 + $0x40] sm:$0xff]  ;;  %v479_v31 = vsel %vm447_vm0, %v4088_v28, 0  ;;  %v643_v33 = vld [vmem:[%s4310_s30 + $0x50] sm:$0xff]  ;;  %v644_v34 = vld [vmem:[%s4310_s30 + $0x58] sm:$0xff]  ;;  %vm6565_vm6 = vcmask 1045509   ;;  %vm6564_vm7 = vcmask 1046534  }
  0x31   : > { %v4090_v35 = vld [vmem:[%s4315_s21 + $0x8] sm:$0xff]   ;;  %v645_v36 = vld [vmem:[%s4310_s30 + $0x60] sm:$0xff]  ;;  %v647_v40 = vld [vmem:[%s4310_s30 + $0x70] sm:$0xff]  ;;  %p2286_p5 = pnand %p4830_p4, %p4825_p2  ;;  %vm6563_vm8 = vcmask 1047559  }
  0x32   : > { %666 = vperm.xlu1 %4076, %v636_v20   ;;  %v646_v37 = vld [vmem:[%s4310_s30 + $0x68] sm:$0xff]  ;;  %v476_v38 = vsel %vm447_vm0, %v4090_v35, 0  ;;  %v4091_v39 = vld [vmem:[%s4315_s21 + $0x40] sm:$0xff]   ;;  %v648_v41 = vld [vmem:[%s4310_s30 + $0x78] sm:$0xff] }
  0x33   : > { %3937 = vmatpush3.bf16.xpose.msra.mxu0 %v491_v7  ;;  %3975 = vmatpush3.bf16.xpose.msra.mxu1 %v491_v7  ;;  %v4092_v42 = vld [vmem:[%s4315_s21] sm:$0xff]   ;;  %v4095_v44 = vld [vmem:[%s4305_s23 + $0x8] sm:$0xff]   ;;  %v4097_v46 = vld [vmem:[%s4305_s23 + $0x10] sm:$0xff]  }
  0x34   : > { %3986 = vmatprep.subr.msk.bf16.mxu0 %vm447_vm0, %v4081_v8  ;;  %3987 = vmatprep.subr.msk.bf16.mxu1 %vm447_vm0, %v4081_v8  ;;  %v473_v43 = vsel %vm447_vm0, %v4092_v42, 0  ;;  %v4096_v45 = vld [vmem:[%s4305_s23 + $0x28] sm:$0xff]   ;;  %v4098_v47 = vld [vmem:[%s4305_s23 + $0x30] sm:$0xff]   ;;  %v4099_v48 = vld [vmem:[%s4305_s23 + $0x18] sm:$0xff]  }
  0x35   : > { %656 = vperm.xlu0 %4075, %v634_v19   ;;  %v4100_v49 = vld [vmem:[%s4305_s23 + $0x38] sm:$0xff]   ;;  %v793_v58 = vld [vmem:[%s271_s11] sm:$0x3] }
  0x36   : > { %676 = vperm.xlu1 %4076, %v638_v23   ;;  %v4435_v63 = vrot.slane %v793_v58, %v797_v57  ;;  %v4437_v4 = vrot.slane %v793_v58, %v801_v62 }
  0x39   : > { %671 = vperm.xlu0 %4075, %v637_v22  }
  0x3a   : > { %686 = vperm.xlu1 %4076, %v640_v27  }
  0x3b   : > { %3939 = vmatpush3.bf16.xpose.msra.mxu0 %v488_v12  ;;  %3976 = vmatpush3.bf16.xpose.msra.mxu1 %v488_v12 }
  0x3c   : > { %3988 = vmatprep.subr.msk.bf16.mxu0 %vm447_vm0, %v4083_v10  ;;  %3989 = vmatprep.subr.msk.bf16.mxu1 %vm447_vm0, %v4083_v10 }
  0x3d   : > { %681 = vperm.xlu0 %4075, %v639_v26   ;;  %v936_v26 = vunpack.c.0.s8 %v935_v6 }
  0x3e   : > { %696 = vperm.xlu1 %4076, %v642_v30  }
  0x41   : > { %691 = vperm.xlu0 %4075, %v641_v29  }
  0x42   : > { %706 = vperm.xlu1 %4076, %v644_v34  }
  0x43   : > { %3941 = vmatpush3.bf16.xpose.msra.mxu0 %v485_v17  ;;  %3977 = vmatpush3.bf16.xpose.msra.mxu1 %v485_v17 }
  0x44   : > { %3990 = vmatprep.subr.msk.bf16.mxu0 %vm447_vm0, %v4085_v18  ;;  %3991 = vmatprep.subr.msk.bf16.mxu1 %vm447_vm0, %v4085_v18 }
  0x45   : > { %701 = vperm.xlu0 %4075, %v643_v33  }
  0x46   : > { %716 = vperm.xlu1 %4076, %v646_v37  }
  0x49   : > { %711 = vperm.xlu0 %4075, %v645_v36  }
  0x4a   : > { %726 = vperm.xlu1 %4076, %v648_v41   ;;  %v4469_v41 = vsub.s32 %v936_v26, %v4420_v54 }
  0x4b   : > { %3943 = vmatpush3.bf16.xpose.msra.mxu0 %v482_v24  ;;  %3978 = vmatpush3.bf16.xpose.msra.mxu1 %v482_v24  ;;  %v4448_v24 = vsub.s32 %v905_v2, %v4420_v54 }
  0x4c   : > { %3992 = vmatprep.subr.msk.bf16.mxu0 %vm447_vm0, %v4087_v25  ;;  %3993 = vmatprep.subr.msk.bf16.mxu1 %vm447_vm0, %v4087_v25 }
  0x4d   : > { %721 = vperm.xlu0 %4075, %v647_v40  }
  0x53   : > { %3945 = vmatpush3.bf16.xpose.msra.mxu0 %v479_v31  ;;  %3979 = vmatpush3.bf16.xpose.msra.mxu1 %v479_v31  ;;  %v6528_v31 = vmov 0.0  }
  0x54   : > { %3994 = vmatprep.subr.msk.bf16.mxu0 %vm447_vm0, %v4089_v32  ;;  %3995 = vmatprep.subr.msk.bf16.mxu1 %vm447_vm0, %v4089_v32 }
  0x5b   : > { %3947 = vmatpush3.bf16.xpose.msra.mxu0 %v476_v38  ;;  %3980 = vmatpush3.bf16.xpose.msra.mxu1 %v476_v38 }
  0x5c   : > { %3996 = vmatprep.subr.msk.bf16.mxu0 %vm447_vm0, %v4091_v39  ;;  %3997 = vmatprep.subr.msk.bf16.mxu1 %vm447_vm0, %v4091_v39 }
  0x63   : > { %3949 = vmatpush3.bf16.xpose.msra.mxu0 %v473_v43  ;;  %3981 = vmatpush3.bf16.xpose.msra.mxu1 %v473_v43 }
  0x6a   : > { %3951 = vmatmul.mubr.msk.bf16.vlgmr.msra.gmra.mxu0 %vm447_vm0, %v4343_v11  ;;  %3959 = vmatmul.mubr.msk.bf16.vlgmr.msra.gmra.mxu1 %vm447_vm0, %v4347_v13 }
  0x6b   : > { %3952 = vmatprep.mubr.msk.bf16.mxu0 %vm447_vm0, %v4095_v44  ;;  %3960 = vmatprep.mubr.msk.bf16.mxu1 %vm447_vm0, %v4096_v45 }
  0x72   : > { %3953 = vmatmul.mubr.msk.bf16.gmra.mxu0 %vm447_vm0, %v4095_v44  ;;  %3961 = vmatmul.mubr.msk.bf16.gmra.mxu1 %vm447_vm0, %v4096_v45 }
  0x73   : > { %3954 = vmatprep.mubr.msk.bf16.mxu0 %vm447_vm0, %v4097_v46  ;;  %3962 = vmatprep.mubr.msk.bf16.mxu1 %vm447_vm0, %v4098_v47 }
  0x7a   : > { %3955 = vmatmul.mubr.msk.bf16.gmra.mxu0 %vm447_vm0, %v4097_v46  ;;  %3963 = vmatmul.mubr.msk.bf16.gmra.mxu1 %vm447_vm0, %v4098_v47 }
  0x7b   : > { %3956 = vmatprep.mubr.msk.bf16.mxu0 %vm447_vm0, %v4099_v48  ;;  %3964 = vmatprep.mubr.msk.bf16.mxu1 %vm447_vm0, %v4100_v49 }
  0x82   : > { %3957 = vmatmul.mubr.msk.bf16.gmra.mxu0 %vm447_vm0, %v4099_v48  ;;  %3965 = vmatmul.mubr.msk.bf16.gmra.mxu1 %vm447_vm0, %v4100_v49 }
  0xa9   : > { %v4422_v55 = vpop.permute.xlu1 %661 }
  0xaa   : > { %v652_v50 = vpop.permute.xlu0 %651 }
  0xad   : > { %v4432_v59 = vpop.permute.xlu1 %666 }
  0xb0   : > { %v4415_v51 = vpop.permute.xlu0 %656 }
  0xb1   : > { %v4441_v11 = vpop.permute.xlu1 %676 }
  0xb4   : > { %v4417_v53 = vpop.permute.xlu0 %671 }
  0xb5   : > { %v4458_v36 = vpop.permute.xlu1 %686 }
  0xb8   : > { %v4424_v56 = vpop.permute.xlu0 %681 }
  0xbc   : > { %v692_v0 = vpop.permute.xlu0 %691 }
 0x12a   : > { %v554_v1 = vpop.f32.mrf.mxu0  ;;  %v594_v3 = vpop.f32.mrf.mxu1 }
 0x12b   : > { %v729_v7 = vsub.f32 %v554_v1, %v652_v50  ;;  %v805_v8 = vsub.f32 %v554_v1, %v4435_v63  ;;  %v821_v9 = vsub.f32 %v594_v3, %v4435_v63  ;;  %v745_v10 = vsub.f32 %v594_v3, %v692_v0 }
 0x12c   : > { %v556_v12 = vpop.f32.mrf.mxu0  ;;  %v596_v17 = vpop.f32.mrf.mxu1 }
 0x12d   : > { %v761_v13 = vmax.f32 %v729_v7, 0.0  ;;  %v837_v14 = vmax.f32 %v805_v8, 0.0  ;;  %v853_v15 = vmax.f32 %v821_v9, 0.0  ;;  %v777_v16 = vmax.f32 %v745_v10, 0.0  ;;  %v697_v7 = vpop.permute.xlu1 %696 }
 0x12e   : > { %v730_v18 = vsub.f32 %v556_v12, %v652_v50  ;;  %v806_v19 = vsub.f32 %v556_v12, %v4437_v4  ;;  %v746_v20 = vsub.f32 %v596_v17, %v692_v0  ;;  %v822_v21 = vsub.f32 %v596_v17, %v4437_v4  ;;  %v558_v22 = vpop.f32.mrf.mxu0  ;;  %v598_v61 = vpop.f32.mrf.mxu1 }
 0x12f   : > { %v4445_v23 = vadd.f32 %v837_v14, %v761_v13  ;;  %v4450_v25 = vadd.f32 %v853_v15, %v777_v16  ;;  %v731_v34 = vsub.f32 %v558_v22, %v4415_v51  ;;  %v807_v35 = vsub.f32 %v558_v22, %v4435_v63 }
 0x130   : > { %v762_v27 = vmax.f32 %v730_v18, 0.0  ;;  %v838_v28 = vmax.f32 %v806_v19, 0.0  ;;  %v778_v29 = vmax.f32 %v746_v20, 0.0  ;;  %v854_v30 = vmax.f32 %v822_v21, 0.0  ;;  %v560_v13 = vpop.f32.mrf.mxu0 }
 0x131   : > { %6605 = vst [vmem:[#allocation9_spill] sm:$0xff] %v4445_v23  ;;  %6606 = vst [vmem:[#allocation10_spill] sm:$0xff] %v4450_v25  ;;  %v902_v32 = vcombine.high %v4445_v23, %v6528_v31  ;;  %v1430_v33 = vcombine.high %v4450_v25, %v6528_v31  ;;  %v909_v39 = vrot.slane %v4445_v23, %v4448_v24  ;;  %v763_v48 = vmax.f32 %v731_v34, 0.0 }
 0x132   : > { %v4460_v37 = vadd.f32 %v838_v28, %v762_v27  ;;  %v4462_v38 = vadd.f32 %v854_v30, %v778_v29  ;;  %v1437_v40 = vrot.slane %v4450_v25, %v4448_v24  ;;  %v839_v49 = vmax.f32 %v807_v35, 0.0 }
 0x133   : > { %v916_v46 = vrot.slane %v902_v32, %v4448_v24  ;;  %v1444_v47 = vrot.slane %v1430_v33, %v4448_v24  ;;  %v823_v1 = vsub.f32 %v598_v61, %v4435_v63  ;;  %v747_v9 = vsub.f32 %v598_v61, %v697_v7 }
 0x134   : > { %6607 = vst [vmem:[#allocation11_spill] sm:$0xff] %v4460_v37  ;;  %6608 = vst [vmem:[#allocation12_spill] sm:$0xff] %v4462_v38  ;;  %v917_v42 = vcombine.high %v4460_v37, %v6528_v31  ;;  %v924_v43 = vrot.slane %v4460_v37, %v4448_v24  ;;  %v1445_v44 = vcombine.high %v4462_v38, %v6528_v31 }
 0x135   : > { %v1452_v45 = vrot.slane %v4462_v38, %v4448_v24  ;;  %v4486_v8 = vadd.f32 %v839_v49, %v763_v48  ;;  %v855_v20 = vmax.f32 %v823_v1, 0.0  ;;  %v779_v26 = vmax.f32 %v747_v9, 0.0  ;;  %v600_v49 = vpop.f32.mrf.mxu1 }
 0x136   : > { %v931_v50 = vrot.slane %v917_v42, %v4448_v24  ;;  %v932_v57 = vcombine.low %v909_v39, %v924_v43  ;;  %v933_v58 = vcombine.high %v909_v39, %v924_v43  ;;  %v1459_v60 = vrot.slane %v1445_v44, %v4448_v24  ;;  %v564_v39 = vpop.f32.mrf.mxu0 }
 0x137   : > { %v1460_v62 = vcombine.low %v1437_v40, %v1452_v45  ;;  %v1461_v0 = vcombine.high %v1437_v40, %v1452_v45  ;;  %6609 = vst [vmem:[#allocation13_spill] sm:$0xff] %v4486_v8  ;;  %v968_v22 = vcombine.high %v4486_v8, %v6528_v31  ;;  %v732_v27 = vsub.f32 %v560_v13, %v4415_v51 }
 0x138   : > { %v940_v2 = vrot.slane %v932_v57, %v4469_v41  ;;  %v947_v3 = vrot.slane %v933_v58, %v4469_v41  ;;  %v948_v5 = vcombine.low %v916_v46, %v931_v50  ;;  %v949_v6 = vcombine.high %v916_v46, %v931_v50 }
 0x139   : > { %v1476_v12 = vcombine.low %v1444_v47, %v1459_v60  ;;  %v1477_v17 = vcombine.high %v1444_v47, %v1459_v60  ;;  %v1468_v18 = vrot.slane %v1460_v62, %v4469_v41  ;;  %v1475_v19 = vrot.slane %v1461_v0, %v4469_v41 }
 0x13a   : > { %v956_v10 = vrot.slane %v948_v5, %v4469_v41  ;;  %v963_v14 = vrot.slane %v949_v6, %v4469_v41  ;;  %v964_v15 = vcombine.high %v940_v2, %v6528_v31  ;;  %v965_v16 = vcombine.high %v947_v3, %v6528_v31 }
 0x13b   : > { %v4499_v28 = vsel %vm6570_vm1, %v940_v2, 0.0  ;;  %v4502_v29 = vsel %vm6570_vm1, %v947_v3, 0.0  ;;  %v1484_v30 = vrot.slane %v1476_v12, %v4469_v41  ;;  %v975_v32 = vrot.slane %v4486_v8, %v4448_v24 }
 0x13c   : > { %v966_v21 = vcombine.high %v956_v10, %v6528_v31  ;;  %v967_v33 = vcombine.high %v963_v14, %v6528_v31  ;;  %v4509_v34 = vsel %vm6570_vm1, %v964_v15, 0.0  ;;  %v4512_v35 = vsel %vm6570_vm1, %v965_v16, 0.0 }
 0x13d   : > { %v1491_v51 = vrot.slane %v1477_v17, %v4469_v41  ;;  %v4516_v40 = vsel %vm6570_vm1, %v956_v10, 0.0  ;;  %v4519_v42 = vsel %vm6570_vm1, %v963_v14, 0.0  ;;  %v1492_v43 = vcombine.high %v1468_v18, %v6528_v31 }
 0x13e   : > { %v1493_v44 = vcombine.high %v1475_v19, %v6528_v31  ;;  %v4524_v45 = vsel %vm6570_vm1, %v966_v21, 0.0  ;;  %v4526_v46 = vadd.f32 %v855_v20, %v779_v26  ;;  %v764_v47 = vmax.f32 %v732_v27, 0.0  ;;  %v604_v26 = vpop.f32.mrf.mxu1 }
 0x13f   : > { %v808_v48 = vsub.f32 %v560_v13, %v4437_v4  ;;  %v748_v50 = vsub.f32 %v600_v49, %v697_v7  ;;  %v824_v57 = vsub.f32 %v600_v49, %v4437_v4  ;;  %v733_v58 = vsub.f32 %v564_v39, %v4422_v55 }
 0x140   : > { %6610 = vst [vmem:[#allocation14_spill] sm:$0xff] %v4526_v46  ;;  %v809_v60 = vsub.f32 %v564_v39, %v4435_v63  ;;  %v4533_v61 = vsel %vm6570_vm1, %v967_v33, 0.0  ;;  %v1494_v62 = vcombine.high %v1484_v30, %v6528_v31  ;;  %v1495_v0 = vcombine.high %v1491_v51, %v6528_v31 }
 0x141   : > { %v840_v1 = vmax.f32 %v808_v48, 0.0  ;;  %v4538_v2 = vsel %vm6570_vm1, %v1468_v18, 0.0  ;;  %v4541_v3 = vsel %vm6570_vm1, %v1492_v43, 0.0  ;;  %v780_v5 = vmax.f32 %v748_v50, 0.0 }
 0x142   : > { %v856_v6 = vmax.f32 %v824_v57, 0.0  ;;  %v4544_v7 = vsel %vm6570_vm1, %v1475_v19, 0.0  ;;  %v4547_v9 = vsel %vm6570_vm1, %v1493_v44, 0.0  ;;  %v4550_v10 = vsel %vm6570_vm1, %v1484_v30, 0.0  ;;  %v4563_v19 = vpop.permute.xlu0 %701 }
 0x143   : > { %v4552_v12 = vadd.f32 %v840_v1, %v764_v47  ;;  %v1496_v13 = vcombine.high %v4526_v46, %v6528_v31  ;;  %v765_v15 = vmax.f32 %v733_v58, 0.0  ;;  %v841_v16 = vmax.f32 %v809_v60, 0.0 }
 0x144   : > { %v4556_v14 = vadd.f32 %v856_v6, %v780_v5  ;;  %v4559_v17 = vsel %vm6570_vm1, %v1494_v62, 0.0  ;;  %v1503_v18 = vrot.slane %v4526_v46, %v4448_v24  ;;  %v749_v33 = vsub.f32 %v604_v26, %v4563_v19 }
 0x145   : > { %6611 = vst [vmem:[#allocation15_spill] sm:$0xff] %v4552_v12  ;;  %v983_v20 = vcombine.high %v4552_v12, %v6528_v31  ;;  %v990_v21 = vrot.slane %v4552_v12, %v4448_v24  ;;  %v825_v39 = vsub.f32 %v604_v26, %v4435_v63  ;;  %v982_v43 = vrot.slane %v968_v22, %v4448_v24  ;;  %v566_v22 = vpop.f32.mrf.mxu0 }
 0x146   : > { %6612 = vst [vmem:[#allocation16_spill] sm:$0xff] %v4556_v14  ;;  %v1511_v27 = vcombine.high %v4556_v14, %v6528_v31  ;;  %v1518_v30 = vrot.slane %v4556_v14, %v4448_v24  ;;  %v4578_v49 = vsel %vm6570_vm1, %v1491_v51, 0.0  ;;  %v1510_v50 = vrot.slane %v1496_v13, %v4448_v24 }
 0x147   : > { %v997_v44 = vrot.slane %v983_v20, %v4448_v24  ;;  %v998_v47 = vcombine.low %v975_v32, %v990_v21  ;;  %v999_v48 = vcombine.high %v975_v32, %v990_v21  ;;  %v4582_v58 = vadd.f32 %v841_v16, %v765_v15 }
 0x148   : > { %v1525_v57 = vrot.slane %v1511_v27, %v4448_v24  ;;  %v4587_v6 = vsel %vm6570_vm1, %v1495_v0, 0.0  ;;  %v1526_v32 = vcombine.low %v1503_v18, %v1518_v30  ;;  %v781_v20 = vmax.f32 %v749_v33, 0.0 }
 0x149   : > { %6613 = vst [vmem:[#allocation17_spill] sm:$0xff] %v4582_v58  ;;  %v1006_v60 = vrot.slane %v998_v47, %v4469_v41  ;;  %v1013_v62 = vrot.slane %v999_v48, %v4469_v41  ;;  %v1014_v1 = vcombine.low %v982_v43, %v997_v44  ;;  %v1015_v5 = vcombine.high %v982_v43, %v997_v44  ;;  %v606_v48 = vpop.f32.mrf.mxu1 }
 0x14a   : > { %6614 = vst [vmem:[#allocation18_spill] sm:$0xff] %v4587_v6  ;;  %v857_v51 = vmax.f32 %v825_v39, 0.0  ;;  %v1527_v26 = vcombine.high %v1503_v18, %v1518_v30  ;;  %v1034_v27 = vcombine.high %v4582_v58, %v6528_v31  ;;  %v734_v43 = vsub.f32 %v566_v22, %v4422_v55 }
 0x14b   : > { %v1022_v21 = vrot.slane %v1014_v1, %v4469_v41  ;;  %v1029_v13 = vrot.slane %v1015_v5, %v4469_v41  ;;  %v1030_v15 = vcombine.high %v1006_v60, %v6528_v31  ;;  %v1031_v16 = vcombine.high %v1013_v62, %v6528_v31 }
 0x14c   : > { %v810_v0 = vsub.f32 %v566_v22, %v4437_v4  ;;  %v1542_v39 = vcombine.low %v1510_v50, %v1525_v57  ;;  %v1543_v47 = vcombine.high %v1510_v50, %v1525_v57  ;;  %v1534_v1 = vrot.slane %v1526_v32, %v4469_v41 }
 0x14d   : > { %v1032_v44 = vcombine.high %v1022_v21, %v6528_v31  ;;  %v1033_v33 = vcombine.high %v1029_v13, %v6528_v31  ;;  %v1041_v5 = vrot.slane %v4582_v58, %v4448_v24  ;;  %v4602_v18 = vadd.f32 %v857_v51, %v781_v20 }
 0x14e   : > { %v750_v30 = vsub.f32 %v606_v48, %v4563_v19  ;;  %v1960_v55 = vsel %vm6570_vm1, %v1006_v60, 0.0  ;;  %v1997_v22 = vsel %vm6570_vm1, %v1030_v15, 0.0  ;;  %v2034_v52 = vsel %vm6570_vm1, %v1013_v62, 0.0 }
 0x14f   : > { %6615 = vst [vmem:[#allocation19_spill] sm:$0xff] %v4602_v18  ;;  %v2071_v31 = vsel %vm6570_vm1, %v1031_v16, 0.0  ;;  %v2108_v50 = vsel %vm6570_vm1, %v1022_v21, 0.0  ;;  %v2145_v57 = vsel %vm6570_vm1, %v1032_v44, 0.0  ;;  %v2182_v32 = vsel %vm6570_vm1, %v1029_v13, 0.0  ;;  %v568_v16 = vpop.f32.mrf.mxu0 }
 0x150   : > { %v1541_v14 = vrot.slane %v1527_v26, %v4469_v41  ;;  %v2219_v20 = vsel %vm6570_vm1, %v1033_v33, 0.0  ;;  %v1550_v19 = vrot.slane %v1542_v39, %v4469_v41  ;;  %v1557_v60 = vrot.slane %v1543_v47, %v4469_v41 }
 0x151   : > { %v1048_v51 = vrot.slane %v1034_v27, %v4448_v24  ;;  %v4618_v62 = vadd.f32 %v1960_v55, %v4499_v28  ;;  %v4621_v15 = vadd.f32 %v1997_v22, %v4509_v34  ;;  %v4624_v21 = vadd.f32 %v2034_v52, %v4502_v29  ;;  %v570_v46 = vpop.f32.mrf.mxu0 }
 0x152   : > { %v4627_v13 = vadd.f32 %v2071_v31, %v4512_v35  ;;  %v4630_v26 = vadd.f32 %v2108_v50, %v4516_v40  ;;  %v4633_v44 = vadd.f32 %v2145_v57, %v4524_v45  ;;  %v4636_v27 = vadd.f32 %v2182_v32, %v4519_v42  ;;  %v608_v50 = vpop.f32.mrf.mxu1 }
 0x153   : > { %v6616_v28 = vmov 0.0   ;;  %v4640_v34 = vadd.f32 %v2219_v20, %v4533_v61  ;;  %v766_v29 = vmax.f32 %v734_v43, 0.0  ;;  %v842_v31 = vmax.f32 %v810_v0, 0.0 }
 0x154   : > { %v1558_v33 = vcombine.high %v1534_v1, %v6616_v28  ;;  %v1559_v52 = vcombine.high %v1541_v14, %v6616_v28  ;;  %v782_v35 = vmax.f32 %v750_v30, 0.0  ;;  %v826_v39 = vsub.f32 %v606_v48, %v4437_v4  ;;  %v4662_v48 = vpop.permute.xlu1 %706 }
 0x155   : > { %v735_v40 = vsub.f32 %v568_v16, %v4432_v59  ;;  %v811_v45 = vsub.f32 %v568_v16, %v4435_v63  ;;  %v1560_v47 = vcombine.high %v1550_v19, %v6616_v28  ;;  %v1561_v42 = vcombine.high %v1557_v60, %v6616_v28 }
 0x156   : > { %v4649_v55 = vsel %vm6570_vm1, %v1534_v1, 0.0  ;;  %v4651_v61 = vadd.f32 %v842_v31, %v766_v29  ;;  %v4654_v22 = vsel %vm6570_vm1, %v1558_v33, 0.0  ;;  %v4657_v43 = vsel %vm6570_vm1, %v1541_v14, 0.0 }
 0x157   : > { %v4660_v0 = vsel %vm6570_vm1, %v1550_v19, 0.0  ;;  %v858_v30 = vmax.f32 %v826_v39, 0.0  ;;  %v4665_v57 = vsel %vm6570_vm1, %v1559_v52, 0.0  ;;  %v751_v20 = vsub.f32 %v608_v50, %v4662_v48 }
 0x158   : > { %6617 = vst [vmem:[#allocation20_spill] sm:$0xff] %v4651_v61  ;;  %v1049_v1 = vcombine.high %v4651_v61, %v6616_v28  ;;  %v1056_v32 = vrot.slane %v4651_v61, %v4448_v24  ;;  %v767_v16 = vmax.f32 %v735_v40, 0.0  ;;  %v843_v19 = vmax.f32 %v811_v45, 0.0 }
 0x159   : > { %v4672_v14 = vadd.f32 %v858_v30, %v782_v35  ;;  %v827_v33 = vsub.f32 %v608_v50, %v4435_v63  ;;  %v1569_v29 = vrot.slane %v4602_v18, %v4448_v24  ;;  %v4679_v38 = vsel %vm6570_vm1, %v1560_v47, 0.0 }
 0x15a   : > { %v1063_v52 = vrot.slane %v1049_v1, %v4448_v24  ;;  %v1064_v31 = vcombine.low %v1041_v5, %v1056_v32  ;;  %v1065_v39 = vcombine.high %v1041_v5, %v1056_v32  ;;  %v1562_v25 = vcombine.high %v4602_v18, %v6616_v28 }
 0x15b   : > { %6618 = vst [vmem:[#allocation21_spill] sm:$0xff] %v4672_v14  ;;  %v1577_v35 = vcombine.high %v4672_v14, %v6616_v28  ;;  %v1584_v40 = vrot.slane %v4672_v14, %v4448_v24  ;;  %v4689_v5 = vadd.f32 %v843_v19, %v767_v16  ;;  %v783_v32 = vmax.f32 %v751_v20, 0.0 }
 0x15c   : > { %v1072_v45 = vrot.slane %v1064_v31, %v4469_v41  ;;  %v1079_v30 = vrot.slane %v1065_v39, %v4469_v41  ;;  %v1080_v50 = vcombine.low %v1048_v51, %v1063_v52  ;;  %v1081_v1 = vcombine.high %v1048_v51, %v1063_v52 }
 0x15d   : > { %6619 = vst [vmem:[#allocation22_spill] sm:$0xff] %v4689_v5  ;;  %v859_v47 = vmax.f32 %v827_v33, 0.0  ;;  %v736_v61 = vsub.f32 %v570_v46, %v4432_v59  ;;  %v1592_v8 = vcombine.low %v1569_v29, %v1584_v40  ;;  %v4696_v14 = vsel %vm6570_vm1, %v1557_v60, 0.0 }
 0x15e   : > { %v1088_v18 = vrot.slane %v1080_v50, %v4469_v41  ;;  %v1095_v58 = vrot.slane %v1081_v1, %v4469_v41  ;;  %v1096_v12 = vcombine.high %v1072_v45, %v6616_v28  ;;  %v4699_v31 = vsel %vm6570_vm1, %v1561_v42, 0.0 }
 0x15f   : > { %6620 = vst [vmem:[#allocation23_spill] sm:$0xff] %v4699_v31  ;;  %v1576_v51 = vrot.slane %v1562_v25, %v4448_v24  ;;  %v1097_v20 = vcombine.high %v1079_v30, %v6616_v28  ;;  %v1591_v19 = vrot.slane %v1577_v35, %v4448_v24  ;;  %v1593_v33 = vcombine.high %v1569_v29, %v1584_v40 }
 0x160   : > { %v1098_v16 = vcombine.high %v1088_v18, %v6616_v28  ;;  %v1099_v59 = vcombine.high %v1095_v58, %v6616_v28  ;;  %v1100_v52 = vcombine.high %v4689_v5, %v6616_v28  ;;  %v4708_v39 = vadd.f32 %v859_v47, %v783_v32 }
 0x161   : > { %v768_v60 = vmax.f32 %v736_v61, 0.0  ;;  %v812_v42 = vsub.f32 %v570_v46, %v4437_v4  ;;  %v1962_v50 = vsel %vm6570_vm1, %v1072_v45, 0.0  ;;  %v1999_v25 = vsel %vm6570_vm1, %v1096_v12, 0.0 }
 0x162   : > { %6621 = vst [vmem:[#allocation24_spill] sm:$0xff] %v4708_v39  ;;  %v2036_v1 = vsel %vm6570_vm1, %v1079_v30, 0.0  ;;  %v1600_v37 = vrot.slane %v1592_v8, %v4469_v41  ;;  %v2073_v23 = vsel %vm6570_vm1, %v1097_v20, 0.0  ;;  %v2110_v29 = vsel %vm6570_vm1, %v1088_v18, 0.0 }
 0x163   : > { %v2147_v35 = vsel %vm6570_vm1, %v1098_v16, 0.0  ;;  %v2184_v40 = vsel %vm6570_vm1, %v1095_v58, 0.0  ;;  %v2221_v61 = vsel %vm6570_vm1, %v1099_v59, 0.0  ;;  %v1607_v46 = vrot.slane %v1593_v33, %v4469_v41  ;;  %v610_v33 = vpop.f32.mrf.mxu1 }
 0x164   : > { %v1608_v32 = vcombine.low %v1576_v51, %v1591_v19  ;;  %v1107_v12 = vrot.slane %v4689_v5, %v4448_v24  ;;  %v4724_v45 = vadd.f32 %v1962_v50, %v4618_v62  ;;  %v4727_v8 = vadd.f32 %v1999_v25, %v4621_v15 }
 0x165   : > { %v4730_v18 = vadd.f32 %v2036_v1, %v4624_v21  ;;  %v1114_v30 = vrot.slane %v1100_v52, %v4448_v24  ;;  %v4734_v58 = vadd.f32 %v2073_v23, %v4627_v13  ;;  %v4737_v47 = vadd.f32 %v2110_v29, %v4630_v26  ;;  %v574_v52 = vpop.f32.mrf.mxu0 }
 0x166   : > { %v4740_v20 = vadd.f32 %v2147_v35, %v4633_v44  ;;  %v4743_v62 = vadd.f32 %v2184_v40, %v4636_v27  ;;  %v4746_v15 = vadd.f32 %v2221_v61, %v4640_v34  ;;  %v1609_v16 = vcombine.high %v1576_v51, %v1591_v19 }
 0x167   : > { %v1624_v21 = vcombine.high %v1600_v37, %v6616_v28  ;;  %v844_v59 = vmax.f32 %v812_v42, 0.0  ;;  %v1616_v23 = vrot.slane %v1608_v32, %v4469_v41  ;;  %v1625_v13 = vcombine.high %v1607_v46, %v6616_v28 }
 0x168   : > { %v752_v26 = vsub.f32 %v610_v33, %v4662_v48  ;;  %v828_v44 = vsub.f32 %v610_v33, %v4437_v4  ;;  %v4754_v27 = vsel %vm6570_vm1, %v1600_v37, 0.0  ;;  %v4757_v34 = vsel %vm6570_vm1, %v1607_v46, 0.0  ;;  %v614_v33 = vpop.f32.mrf.mxu1 }
 0x169   : > { %v1628_v51 = vcombine.high %v4708_v39, %v6616_v28  ;;  %v4761_v19 = vadd.f32 %v844_v59, %v768_v60  ;;  %v737_v25 = vsub.f32 %v574_v52, %v4417_v53  ;;  %v813_v1 = vsub.f32 %v574_v52, %v4435_v63 }
 0x16a   : > { %v784_v42 = vmax.f32 %v752_v26, 0.0  ;;  %v860_v50 = vmax.f32 %v828_v44, 0.0  ;;  %v1623_v48 = vrot.slane %v1609_v16, %v4469_v41  ;;  %v4767_v29 = vsel %vm6570_vm1, %v1624_v21, 0.0 }
 0x16b   : > { %6622 = vst [vmem:[#allocation25_spill] sm:$0xff] %v4761_v19  ;;  %v1115_v37 = vcombine.high %v4761_v19, %v6616_v28  ;;  %v1122_v35 = vrot.slane %v4761_v19, %v4448_v24  ;;  %v1626_v60 = vcombine.high %v1616_v23, %v6616_v28  ;;  %v4775_v40 = vsel %vm6570_vm1, %v1625_v13, 0.0  ;;  %v4789_v19 = vpop.permute.xlu0 %711 }
 0x16c   : > { %v1635_v61 = vrot.slane %v4708_v39, %v4448_v24  ;;  %v4779_v46 = vadd.f32 %v860_v50, %v784_v42  ;;  %v4782_v32 = vsel %vm6570_vm1, %v1616_v23, 0.0  ;;  %v769_v26 = vmax.f32 %v737_v25, 0.0  ;;  %v576_v25 = vpop.f32.mrf.mxu0 }
 0x16d   : > { %v1129_v16 = vrot.slane %v1115_v37, %v4448_v24  ;;  %v1130_v21 = vcombine.low %v1107_v12, %v1122_v35  ;;  %v1131_v59 = vcombine.high %v1107_v12, %v1122_v35  ;;  %v845_v44 = vmax.f32 %v813_v1, 0.0 }
 0x16e   : > { %6623 = vst [vmem:[#allocation26_spill] sm:$0xff] %v4779_v46  ;;  %v1643_v52 = vcombine.high %v4779_v46, %v6616_v28  ;;  %v1650_v13 = vrot.slane %v4779_v46, %v4448_v24  ;;  %v1627_v12 = vcombine.high %v1623_v48, %v6616_v28  ;;  %v1642_v35 = vrot.slane %v1628_v51, %v4448_v24 }
 0x16f   : > { %v1138_v42 = vrot.slane %v1130_v21, %v4469_v41  ;;  %v1145_v23 = vrot.slane %v1131_v59, %v4469_v41  ;;  %v1146_v50 = vcombine.low %v1114_v30, %v1129_v16  ;;  %v1147_v37 = vcombine.high %v1114_v30, %v1129_v16 }
 0x170   : > { %v753_v39 = vsub.f32 %v614_v33, %v4789_v19  ;;  %v829_v46 = vsub.f32 %v614_v33, %v4435_v63  ;;  %v1658_v59 = vcombine.low %v1635_v61, %v1650_v13  ;;  %v4801_v54 = vsel %vm6570_vm1, %v1626_v60, 0.0 }
 0x171   : > { %v1154_v1 = vrot.slane %v1146_v50, %v4469_v41  ;;  %v1161_v5 = vrot.slane %v1147_v37, %v4469_v41  ;;  %v1162_v21 = vcombine.high %v1138_v42, %v6616_v28  ;;  %6624 = vst [vmem:[#allocation27_spill] sm:$0xff] %v4801_v54  ;;  %v4804_v30 = vsel %vm6570_vm1, %v1623_v48, 0.0 }
 0x172   : > { %6625 = vst [vmem:[#allocation28_spill] sm:$0xff] %v4804_v30  ;;  %v1163_v51 = vcombine.high %v1145_v23, %v6616_v28  ;;  %v1659_v16 = vcombine.high %v1635_v61, %v1650_v13  ;;  %v1657_v50 = vrot.slane %v1643_v52, %v4448_v24  ;;  %v4815_v60 = vadd.f32 %v845_v44, %v769_v26 }
 0x173   : > { %v1164_v33 = vcombine.high %v1154_v1, %v6616_v28  ;;  %v738_v48 = vsub.f32 %v576_v25, %v4417_v53  ;;  %v4821_v61 = vsel %vm6570_vm1, %v1627_v12, 0.0  ;;  %v1964_v13 = vsel %vm6570_vm1, %v1138_v42, 0.0 }
 0x174   : > { %6626 = vst [vmem:[#allocation29_spill] sm:$0xff] %v4815_v60  ;;  %6627 = vst [vmem:[#allocation30_spill] sm:$0xff] %v4821_v61  ;;  %v785_v37 = vmax.f32 %v753_v39, 0.0  ;;  %v861_v31 = vmax.f32 %v829_v46, 0.0  ;;  %v1165_v53 = vcombine.high %v1161_v5, %v6616_v28  ;;  %v2001_v52 = vsel %vm6570_vm1, %v1162_v21, 0.0 }
 0x175   : > { %v2038_v26 = vsel %vm6570_vm1, %v1145_v23, 0.0  ;;  %v1666_v44 = vrot.slane %v1658_v59, %v4469_v41  ;;  %v2075_v39 = vsel %vm6570_vm1, %v1163_v51, 0.0  ;;  %v2112_v46 = vsel %vm6570_vm1, %v1154_v1, 0.0 }
 0x176   : > { %v2149_v42 = vsel %vm6570_vm1, %v1164_v33, 0.0  ;;  %v1673_v12 = vrot.slane %v1659_v16, %v4469_v41  ;;  %v4847_v61 = vadd.f32 %v1964_v13, %v4724_v45  ;;  %v1674_v30 = vcombine.low %v1642_v35, %v1657_v50  ;;  %v616_v33 = vpop.f32.mrf.mxu1 }
 0x177   : > { %v1166_v23 = vcombine.high %v4815_v60, %v6616_v28  ;;  %v770_v21 = vmax.f32 %v738_v48, 0.0  ;;  %v4852_v59 = vadd.f32 %v2001_v52, %v4727_v8  ;;  %v4855_v1 = vadd.f32 %v2038_v26, %v4730_v18 }
 0x178   : > { %v2186_v51 = vsel %vm6570_vm1, %v1161_v5, 0.0  ;;  %v1675_v16 = vcombine.high %v1642_v35, %v1657_v50  ;;  %v4859_v6 = vadd.f32 %v2075_v39, %v4734_v58  ;;  %v4862_v45 = vadd.f32 %v2112_v46, %v4737_v47  ;;  %v578_v46 = vpop.f32.mrf.mxu0 }
 0x179   : > { %v4865_v13 = vadd.f32 %v2149_v42, %v4740_v20  ;;  %v2223_v48 = vsel %vm6570_vm1, %v1165_v53, 0.0  ;;  %v1690_v8 = vcombine.high %v1666_v44, %v6616_v28  ;;  %v1691_v18 = vcombine.high %v1673_v12, %v6616_v28 }
 0x17a   : > { %v4870_v52 = vadd.f32 %v861_v31, %v785_v37  ;;  %v814_v5 = vsub.f32 %v576_v25, %v4437_v4  ;;  %v4874_v35 = vadd.f32 %v2186_v51, %v4743_v62  ;;  %v1682_v58 = vrot.slane %v1674_v30, %v4469_v41 }
 0x17b   : > { %v754_v47 = vsub.f32 %v616_v33, %v4789_v19  ;;  %v830_v20 = vsub.f32 %v616_v33, %v4437_v4  ;;  %v4880_v50 = vadd.f32 %v2223_v48, %v4746_v15  ;;  %v1689_v53 = vrot.slane %v1675_v16, %v4469_v41 }
 0x17c   : > { %6630 = vst [vmem:[#allocation31_spill] sm:$0xff] %v4870_v52  ;;  %v4884_v26 = vsel %vm6570_vm1, %v1666_v44, 0.0  ;;  %v846_v31 = vmax.f32 %v814_v5, 0.0  ;;  %v4887_v25 = vsel %vm6570_vm1, %v1673_v12, 0.0  ;;  %v1173_v62 = vrot.slane %v4815_v60, %v4448_v24 }
 0x17d   : > { %6631 = vst [vmem:[#allocation32_spill] sm:$0xff] %v4884_v26  ;;  %6632 = vst [vmem:[#allocation33_spill] sm:$0xff] %v4887_v25  ;;  %v786_v30 = vmax.f32 %v754_v47, 0.0  ;;  %v862_v37 = vmax.f32 %v830_v20, 0.0  ;;  %v4892_v19 = vsel %vm6570_vm1, %v1690_v8, 0.0  ;;  %v4895_v15 = vsel %vm6570_vm1, %v1691_v18, 0.0  ;;  %v618_v18 = vpop.f32.mrf.mxu1  ;;  %v4923_v20 = vpop.permute.xlu1 %716 }
 0x17e   : > { %6633 = vst [vmem:[#allocation34_spill] sm:$0xff] %v4892_v19  ;;  %6634 = vst [vmem:[#allocation35_spill] sm:$0xff] %v4895_v15  ;;  %v1694_v39 = vcombine.high %v4870_v52, %v6616_v28  ;;  %v4899_v44 = vadd.f32 %v846_v31, %v770_v21  ;;  %v1692_v42 = vcombine.high %v1682_v58, %v6616_v28  ;;  %v4903_v12 = vsel %vm6570_vm1, %v1682_v58, 0.0  ;;  %v580_v19 = vpop.f32.mrf.mxu0 }
 0x17f   : > { %6636 = vst [vmem:[#allocation37_spill] sm:$0xff] %v4903_v12  ;;  %v1180_v51 = vrot.slane %v1166_v23, %v4448_v24  ;;  %v4906_v16 = vadd.f32 %v862_v37, %v786_v30  ;;  %v1693_v33 = vcombine.high %v1689_v53, %v6616_v28  ;;  %v4910_v48 = vsel %vm6570_vm1, %v1689_v53, 0.0 }
 0x180   : > { %6635 = vst [vmem:[#allocation36_spill] sm:$0xff] %v4899_v44  ;;  %6638 = vst [vmem:[#allocation39_spill] sm:$0xff] %v4910_v48  ;;  %v1181_v8 = vcombine.high %v4899_v44, %v6616_v28  ;;  %v1188_v21 = vrot.slane %v4899_v44, %v4448_v24  ;;  %v1701_v5 = vrot.slane %v4870_v52, %v4448_v24 }
 0x181   : > { %6637 = vst [vmem:[#allocation38_spill] sm:$0xff] %v4906_v16  ;;  %v1709_v23 = vcombine.high %v4906_v16, %v6616_v28  ;;  %v1716_v58 = vrot.slane %v4906_v16, %v4448_v24  ;;  %v739_v47 = vsub.f32 %v578_v46, %v4441_v11  ;;  %v1708_v53 = vrot.slane %v1694_v39, %v4448_v24 }
 0x182   : > { %v1195_v31 = vrot.slane %v1181_v8, %v4448_v24  ;;  %v1196_v30 = vcombine.low %v1173_v62, %v1188_v21  ;;  %v1197_v37 = vcombine.high %v1173_v62, %v1188_v21  ;;  %v815_v52 = vsub.f32 %v578_v46, %v4435_v63 }
 0x183   : > { %v1723_v44 = vrot.slane %v1709_v23, %v4448_v24  ;;  %v755_v60 = vsub.f32 %v618_v18, %v4923_v20  ;;  %v831_v48 = vsub.f32 %v618_v18, %v4435_v63  ;;  %v4934_v39 = vsel %vm6570_vm1, %v1692_v42, 0.0 }
 0x184   : > { %v1204_v16 = vrot.slane %v1196_v30, %v4469_v41  ;;  %v1211_v12 = vrot.slane %v1197_v37, %v4469_v41  ;;  %v1212_v15 = vcombine.low %v1180_v51, %v1195_v31  ;;  %v1213_v25 = vcombine.high %v1180_v51, %v1195_v31  ;;  %6639 = vst [vmem:[#allocation40_spill] sm:$0xff] %v4934_v39 }
 0x185   : > { %v1724_v8 = vcombine.low %v1701_v5, %v1716_v58  ;;  %v1725_v62 = vcombine.high %v1701_v5, %v1716_v58  ;;  %v1740_v21 = vcombine.low %v1708_v53, %v1723_v44  ;;  %v1741_v18 = vcombine.high %v1708_v53, %v1723_v44 }
 0x186   : > { %v1220_v23 = vrot.slane %v1212_v15, %v4469_v41  ;;  %v1227_v46 = vrot.slane %v1213_v25, %v4469_v41  ;;  %v1228_v26 = vcombine.high %v1204_v16, %v6616_v28  ;;  %v1229_v30 = vcombine.high %v1211_v12, %v6616_v28 }
 0x187   : > { %v771_v54 = vmax.f32 %v739_v47, 0.0  ;;  %v847_v37 = vmax.f32 %v815_v52, 0.0  ;;  %v740_v51 = vsub.f32 %v580_v19, %v4441_v11  ;;  %v787_v39 = vmax.f32 %v755_v60, 0.0 }
 0x188   : > { %v1230_v31 = vcombine.high %v1220_v23, %v6616_v28  ;;  %v1231_v42 = vcombine.high %v1227_v46, %v6616_v28  ;;  %v863_v5 = vmax.f32 %v831_v48, 0.0  ;;  %v4944_v58 = vsel %vm6570_vm1, %v1693_v33, 0.0 }
 0x189   : > { %6640 = vst [vmem:[#allocation41_spill] sm:$0xff] %v4944_v58  ;;  %v1966_v25 = vsel %vm6570_vm1, %v1204_v16, 0.0  ;;  %v1732_v15 = vrot.slane %v1724_v8, %v4469_v41  ;;  %v1739_v44 = vrot.slane %v1725_v62, %v4469_v41  ;;  %v2003_v47 = vsel %vm6570_vm1, %v1228_v26, 0.0 }
 0x18a   : > { %v2040_v52 = vsel %vm6570_vm1, %v1211_v12, 0.0  ;;  %v1748_v11 = vrot.slane %v1740_v21, %v4469_v41  ;;  %v1755_v53 = vrot.slane %v1741_v18, %v4469_v41  ;;  %v2077_v60 = vsel %vm6570_vm1, %v1229_v30, 0.0  ;;  %v620_v30 = vpop.f32.mrf.mxu1 }
 0x18b   : > { %v2114_v48 = vsel %vm6570_vm1, %v1220_v23, 0.0  ;;  %v2151_v33 = vsel %vm6570_vm1, %v1230_v31, 0.0  ;;  %v2188_v16 = vsel %vm6570_vm1, %v1227_v46, 0.0  ;;  %v2225_v8 = vsel %vm6570_vm1, %v1231_v42, 0.0  ;;  %v584_v46 = vpop.f32.mrf.mxu0 }
 0x18c   : > { %v4958_v58 = vadd.f32 %v847_v37, %v771_v54  ;;  %v4960_v62 = vadd.f32 %v863_v5, %v787_v39  ;;  %v772_v26 = vmax.f32 %v740_v51, 0.0  ;;  %v4963_v12 = vadd.f32 %v1966_v25, %v4847_v61 }
 0x18d   : > { %v4966_v21 = vadd.f32 %v2003_v47, %v4852_v59  ;;  %v4969_v18 = vadd.f32 %v2040_v52, %v4855_v1  ;;  %v1756_v23 = vcombine.high %v1732_v15, %v6616_v28  ;;  %v4973_v31 = vadd.f32 %v2077_v60, %v4859_v6  ;;  %v624_v60 = vpop.f32.mrf.mxu1 }
 0x18e   : > { %6641 = vst [vmem:[#allocation42_spill] sm:$0xff] %v4958_v58  ;;  %6642 = vst [vmem:[#allocation43_spill] sm:$0xff] %v4960_v62  ;;  %v4976_v54 = vadd.f32 %v2114_v48, %v4862_v45  ;;  %v4979_v39 = vadd.f32 %v2151_v33, %v4865_v13  ;;  %v4982_v61 = vadd.f32 %v2188_v16, %v4874_v35  ;;  %v4995_v35 = vsel %vm6570_vm1, %v1732_v15, 0.0 }
 0x18f   : > { %v4985_v59 = vadd.f32 %v2225_v8, %v4880_v50  ;;  %v1757_v1 = vcombine.high %v1739_v44, %v6616_v28  ;;  %v1758_v37 = vcombine.high %v1748_v11, %v6616_v28  ;;  %v1759_v51 = vcombine.high %v1755_v53, %v6616_v28  ;;  %6643 = vst [vmem:[#allocation44_spill] sm:$0xff] %v4995_v35  ;;  %v5012_v8 = vpop.permute.xlu0 %721 }
 0x190   : > { %v816_v6 = vsub.f32 %v580_v19, %v4437_v4  ;;  %v756_v45 = vsub.f32 %v620_v30, %v4923_v20  ;;  %v832_v42 = vsub.f32 %v620_v30, %v4437_v4  ;;  %v741_v13 = vsub.f32 %v584_v46, %v4424_v56 }
 0x191   : > { %v4998_v50 = vsel %vm6570_vm1, %v1756_v23, 0.0  ;;  %v5001_v5 = vsel %vm6570_vm1, %v1739_v44, 0.0  ;;  %v817_v25 = vsub.f32 %v584_v46, %v4435_v63  ;;  %v5005_v47 = vsel %vm6570_vm1, %v1748_v11, 0.0 }
 0x192   : > { %6644 = vst [vmem:[#allocation45_spill] sm:$0xff] %v4998_v50  ;;  %6645 = vst [vmem:[#allocation46_spill] sm:$0xff] %v5001_v5  ;;  %v848_v19 = vmax.f32 %v816_v6, 0.0  ;;  %v788_v20 = vmax.f32 %v756_v45, 0.0  ;;  %v864_v52 = vmax.f32 %v832_v42, 0.0  ;;  %v5008_v48 = vsel %vm6570_vm1, %v1757_v1, 0.0 }
 0x193   : > { %6646 = vst [vmem:[#allocation47_spill] sm:$0xff] %v5005_v47  ;;  %6647 = vst [vmem:[#allocation48_spill] sm:$0xff] %v5008_v48  ;;  %v1232_v15 = vcombine.high %v4958_v58, %v6616_v28  ;;  %v773_v33 = vmax.f32 %v741_v13, 0.0  ;;  %v849_v16 = vmax.f32 %v817_v25, 0.0  ;;  %v5015_v44 = vsel %vm6570_vm1, %v1758_v37, 0.0  ;;  %v586_v13 = vpop.f32.mrf.mxu0 }
 0x194   : > { %6648 = vst [vmem:[#allocation49_spill] sm:$0xff] %v5015_v44  ;;  %v1760_v11 = vcombine.high %v4960_v62, %v6616_v28  ;;  %v5019_v23 = vadd.f32 %v848_v19, %v772_v26  ;;  %v5021_v30 = vadd.f32 %v864_v52, %v788_v20  ;;  %v5024_v46 = vsel %vm6570_vm1, %v1755_v53, 0.0 }
 0x195   : > { %6651 = vst [vmem:[#allocation52_spill] sm:$0xff] %v5024_v46  ;;  %v5027_v1 = vsel %vm6570_vm1, %v1759_v51, 0.0  ;;  %v757_v6 = vsub.f32 %v624_v60, %v5012_v8  ;;  %v833_v45 = vsub.f32 %v624_v60, %v4435_v63  ;;  %v1239_v37 = vrot.slane %v4958_v58, %v4448_v24 }
 0x196   : > { %6649 = vst [vmem:[#allocation50_spill] sm:$0xff] %v5019_v23  ;;  %6650 = vst [vmem:[#allocation51_spill] sm:$0xff] %v5021_v30  ;;  %v1247_v42 = vcombine.high %v5019_v23, %v6616_v28  ;;  %v1254_v26 = vrot.slane %v5019_v23, %v4448_v24  ;;  %v1775_v53 = vcombine.high %v5021_v30, %v6616_v28 }
 0x197   : > { %6652 = vst [vmem:[#allocation53_spill] sm:$0xff] %v5027_v1  ;;  %v1246_v51 = vrot.slane %v1232_v15, %v4448_v24  ;;  %v1767_v25 = vrot.slane %v4960_v62, %v4448_v24  ;;  %v1782_v19 = vrot.slane %v5021_v30, %v4448_v24  ;;  %v5044_v20 = vadd.f32 %v849_v16, %v773_v33  ;;  %v626_v1 = vpop.f32.mrf.mxu1 }
 0x198   : > { %v1774_v52 = vrot.slane %v1760_v11, %v4448_v24  ;;  %v1261_v60 = vrot.slane %v1247_v42, %v4448_v24  ;;  %v1262_v58 = vcombine.low %v1239_v37, %v1254_v26  ;;  %v1263_v23 = vcombine.high %v1239_v37, %v1254_v26 }
 0x199   : > { %6653 = vst [vmem:[#allocation54_spill] sm:$0xff] %v5044_v20  ;;  %v1789_v46 = vrot.slane %v1775_v53, %v4448_v24  ;;  %v789_v44 = vmax.f32 %v757_v6, 0.0  ;;  %v865_v47 = vmax.f32 %v833_v45, 0.0  ;;  %v742_v15 = vsub.f32 %v586_v13, %v4424_v56 }
 0x19a   : > { %v1270_v62 = vrot.slane %v1262_v58, %v4469_v41  ;;  %v1277_v48 = vrot.slane %v1263_v23, %v4469_v41  ;;  %v1278_v30 = vcombine.low %v1246_v51, %v1261_v60  ;;  %v1279_v33 = vcombine.high %v1246_v51, %v1261_v60 }
 0x19b   : > { %v1790_v16 = vcombine.low %v1767_v25, %v1782_v19  ;;  %v1298_v11 = vcombine.high %v5044_v20, %v6616_v28  ;;  %v818_v42 = vsub.f32 %v586_v13, %v4437_v4  ;;  %v758_v37 = vsub.f32 %v626_v1, %v5012_v8 }
 0x19c   : > { %v1286_v26 = vrot.slane %v1278_v30, %v4469_v41  ;;  %v1293_v6 = vrot.slane %v1279_v33, %v4469_v41  ;;  %v1294_v56 = vcombine.high %v1270_v62, %v6616_v28  ;;  %v1295_v58 = vcombine.high %v1277_v48, %v6616_v28 }
 0x19d   : > { %v1791_v45 = vcombine.high %v1767_v25, %v1782_v19  ;;  %v5060_v23 = vadd.f32 %v865_v47, %v789_v44  ;;  %v774_v53 = vmax.f32 %v742_v15, 0.0  ;;  %v834_v51 = vsub.f32 %v626_v1, %v4437_v4 }
 0x19e   : > { %v1296_v60 = vcombine.high %v1286_v26, %v6616_v28  ;;  %v1297_v13 = vcombine.high %v1293_v6, %v6616_v28  ;;  %v1806_v5 = vcombine.low %v1774_v52, %v1789_v46  ;;  %v1807_v8 = vcombine.high %v1774_v52, %v1789_v46 }
 0x19f   : > { %6654 = vst [vmem:[#allocation55_spill] sm:$0xff] %v5060_v23  ;;  %v1798_v30 = vrot.slane %v1790_v16, %v4469_v41  ;;  %v1305_v33 = vrot.slane %v5044_v20, %v4448_v24  ;;  %v1312_v50 = vrot.slane %v1298_v11, %v4448_v24  ;;  %v850_v35 = vmax.f32 %v818_v42, 0.0 }
 0x1a0   : > { %v1968_v47 = vsel %vm6570_vm1, %v1270_v62, 0.0  ;;  %v2005_v44 = vsel %vm6570_vm1, %v1294_v56, 0.0  ;;  %v2042_v1 = vsel %vm6570_vm1, %v1277_v48, 0.0  ;;  %v2079_v25 = vsel %vm6570_vm1, %v1295_v58, 0.0  ;;  %v588_v58 = vpop.f32.mrf.mxu0 }
 0x1a1   : > { %v2116_v19 = vsel %vm6570_vm1, %v1286_v26, 0.0  ;;  %v2153_v46 = vsel %vm6570_vm1, %v1296_v60, 0.0  ;;  %v2190_v52 = vsel %vm6570_vm1, %v1293_v6, 0.0  ;;  %v1805_v15 = vrot.slane %v1791_v45, %v4469_v41 }
 0x1a2   : > { %v2227_v16 = vsel %vm6570_vm1, %v1297_v13, 0.0  ;;  %v1814_v11 = vrot.slane %v1806_v5, %v4469_v41  ;;  %v1821_v62 = vrot.slane %v1807_v8, %v4469_v41  ;;  %v1826_v42 = vcombine.high %v5060_v23, %v6616_v28  ;;  %v590_v20 = vpop.f32.mrf.mxu0 }
 0x1a3   : > { %v5083_v48 = vadd.f32 %v1968_v47, %v4963_v12  ;;  %v5086_v26 = vadd.f32 %v2005_v44, %v4966_v21  ;;  %v5089_v56 = vadd.f32 %v2042_v1, %v4969_v18  ;;  %v5092_v6 = vadd.f32 %v2079_v25, %v4973_v31 }
 0x1a4   : > { %v5095_v5 = vadd.f32 %v2116_v19, %v4976_v54  ;;  %v5098_v45 = vadd.f32 %v2153_v46, %v4979_v39  ;;  %v5101_v60 = vadd.f32 %v2190_v52, %v4982_v61  ;;  %v1822_v12 = vcombine.high %v1798_v30, %v6616_v28  ;;  %v628_v52 = vpop.f32.mrf.mxu1 }
 0x1a5   : > { %v5105_v21 = vadd.f32 %v2227_v16, %v4985_v59  ;;  %v1823_v18 = vcombine.high %v1805_v15, %v6616_v28  ;;  %v5108_v13 = vadd.f32 %v850_v35, %v774_v53  ;;  %v790_v31 = vmax.f32 %v758_v37, 0.0 }
 0x1a6   : > { %v1824_v8 = vcombine.high %v1814_v11, %v6616_v28  ;;  %v866_v54 = vmax.f32 %v834_v51, 0.0  ;;  %v743_v47 = vsub.f32 %v588_v58, %v4458_v36  ;;  %v819_v39 = vsub.f32 %v588_v58, %v4435_v63 }
 0x1a7   : > { %6655 = vst [vmem:[#allocation56_spill] sm:$0xff] %v5108_v13  ;;  %v1825_v61 = vcombine.high %v1821_v62, %v6616_v28  ;;  %v5115_v44 = vsel %vm6570_vm1, %v1798_v30, 0.0  ;;  %v1313_v59 = vcombine.high %v5108_v13, %v6616_v28  ;;  %v1320_v35 = vrot.slane %v5108_v13, %v4448_v24 }
 0x1a8   : > { %v5122_v37 = vsel %vm6570_vm1, %v1822_v12, 0.0  ;;  %v5125_v53 = vsel %vm6570_vm1, %v1805_v15, 0.0  ;;  %v5128_v51 = vsel %vm6570_vm1, %v1814_v11, 0.0  ;;  %v5130_v1 = vadd.f32 %v866_v54, %v790_v31  ;;  %v727_v11 = vpop.permute.xlu1 %726 }
 0x1a9   : > { %6656 = vst [vmem:[#allocation57_spill] sm:$0xff] %v5128_v51  ;;  %v5133_v30 = vsel %vm6570_vm1, %v1823_v18, 0.0  ;;  %v1327_v25 = vrot.slane %v1313_v59, %v4448_v24  ;;  %v1328_v19 = vcombine.low %v1305_v33, %v1320_v35  ;;  %v1329_v46 = vcombine.high %v1305_v33, %v1320_v35 }
 0x1aa   : > { %6657 = vst [vmem:[#allocation58_spill] sm:$0xff] %v5130_v1  ;;  %6658 = vst [vmem:[#allocation59_spill] sm:$0xff] %v5133_v30  ;;  %v1841_v16 = vcombine.high %v5130_v1, %v6616_v28  ;;  %v1848_v15 = vrot.slane %v5130_v1, %v4448_v24  ;;  %v775_v58 = vmax.f32 %v743_v47, 0.0  ;;  %v851_v12 = vmax.f32 %v819_v39, 0.0 }
 0x1ab   : > { %v1336_v31 = vrot.slane %v1328_v19, %v4469_v41  ;;  %v1343_v54 = vrot.slane %v1329_v46, %v4469_v41  ;;  %v1344_v18 = vcombine.low %v1312_v50, %v1327_v25  ;;  %v1345_v13 = vcombine.high %v1312_v50, %v1327_v25 }
 0x1ac   : > { %v5143_v59 = vsel %vm6570_vm1, %v1824_v8, 0.0  ;;  %v1833_v33 = vrot.slane %v5060_v23, %v4448_v24  ;;  %v759_v35 = vsub.f32 %v628_v52, %v727_v11  ;;  %v835_v51 = vsub.f32 %v628_v52, %v4435_v63 }
 0x1ad   : > { %6659 = vst [vmem:[#allocation60_spill] sm:$0xff] %v5143_v59  ;;  %v1352_v47 = vrot.slane %v1344_v18, %v4469_v41  ;;  %v1359_v39 = vrot.slane %v1345_v13, %v4469_v41  ;;  %v1360_v19 = vcombine.high %v1336_v31, %v6616_v28  ;;  %v1361_v46 = vcombine.high %v1343_v54, %v6616_v28 }
 0x1ae   : > { %v5153_v50 = vsel %vm6570_vm1, %v1821_v62, 0.0  ;;  %v1855_v8 = vrot.slane %v1841_v16, %v4448_v24  ;;  %v1856_v25 = vcombine.low %v1833_v33, %v1848_v15  ;;  %v744_v1 = vsub.f32 %v590_v20, %v4458_v36 }
 0x1af   : > { %6660 = vst [vmem:[#allocation61_spill] sm:$0xff] %v5153_v50  ;;  %v5158_v23 = vsel %vm6570_vm1, %v1825_v61, 0.0  ;;  %v1362_v63 = vcombine.high %v1352_v47, %v6616_v28  ;;  %v1857_v52 = vcombine.high %v1833_v33, %v1848_v15  ;;  %v5161_v18 = vadd.f32 %v851_v12, %v775_v58 }
 0x1b0   : > { %6661 = vst [vmem:[#allocation62_spill] sm:$0xff] %v5158_v23  ;;  %v1840_v13 = vrot.slane %v1826_v42, %v4448_v24  ;;  %v1970_v59 = vsel %vm6570_vm1, %v1336_v31, 0.0  ;;  %v791_v30 = vmax.f32 %v759_v35, 0.0  ;;  %v867_v62 = vmax.f32 %v835_v51, 0.0 }
 0x1b1   : > { %v1363_v50 = vcombine.high %v1359_v39, %v6616_v28  ;;  %v2007_v16 = vsel %vm6570_vm1, %v1360_v19, 0.0  ;;  %v2044_v36 = vsel %vm6570_vm1, %v1343_v54, 0.0  ;;  %v2081_v61 = vsel %vm6570_vm1, %v1361_v46, 0.0 }
 0x1b2   : > { %v2118_v23 = vsel %vm6570_vm1, %v1352_v47, 0.0  ;;  %v1864_v15 = vrot.slane %v1856_v25, %v4469_v41  ;;  %v1872_v58 = vcombine.low %v1840_v13, %v1855_v8  ;;  %v776_v12 = vmax.f32 %v744_v1, 0.0  ;;  %v630_v1 = vpop.f32.mrf.mxu1 }
 0x1b3   : > { %v2155_v42 = vsel %vm6570_vm1, %v1362_v63, 0.0  ;;  %v1871_v31 = vrot.slane %v1857_v52, %v4469_v41  ;;  %v1873_v33 = vcombine.high %v1840_v13, %v1855_v8  ;;  %v1364_v51 = vcombine.high %v5161_v18, %v6616_v28 }
 0x1b4   : > { %v5176_v35 = vadd.f32 %v1970_v59, %v5083_v48  ;;  %v5179_v54 = vadd.f32 %v2007_v16, %v5086_v26  ;;  %v5182_v47 = vadd.f32 %v2044_v36, %v5089_v56  ;;  %v5185_v19 = vadd.f32 %v2081_v61, %v5092_v6 }
 0x1b5   : > { %v5188_v46 = vadd.f32 %v2118_v23, %v5095_v5  ;;  %v2192_v8 = vsel %vm6570_vm1, %v1359_v39, 0.0  ;;  %v2229_v25 = vsel %vm6570_vm1, %v1363_v50, 0.0  ;;  %v1880_v48 = vrot.slane %v1872_v58, %v4469_v41 }
 0x1b6   : > { %v5194_v59 = vadd.f32 %v2155_v42, %v5098_v45  ;;  %v1887_v26 = vrot.slane %v1873_v33, %v4469_v41  ;;  %v1888_v56 = vcombine.high %v1864_v15, %v6616_v28  ;;  %v820_v6 = vsub.f32 %v590_v20, %v4437_v4 }
 0x1b7   : > { %v1889_v63 = vcombine.high %v1871_v31, %v6616_v28  ;;  %v5200_v52 = vadd.f32 %v867_v62, %v791_v30  ;;  %v760_v23 = vsub.f32 %v630_v1, %v727_v11  ;;  %v836_v5 = vsub.f32 %v630_v1, %v4437_v4 }
 0x1b8   : > { %v5204_v39 = vadd.f32 %v2192_v8, %v5101_v60  ;;  %v5207_v50 = vadd.f32 %v2229_v25, %v5105_v21  ;;  %v5210_v45 = vsel %vm6570_vm1, %v1864_v15, 0.0  ;;  %v852_v13 = vmax.f32 %v820_v6, 0.0 }
 0x1b9   : > { %6662 = vst [vmem:[#allocation63_spill] sm:$0xff] %v5200_v52  ;;  %v1890_v16 = vcombine.high %v1880_v48, %v6616_v28  ;;  %v5214_v20 = vsel %vm6570_vm1, %v1871_v31, 0.0  ;;  %v792_v30 = vmax.f32 %v760_v23, 0.0  ;;  %v868_v62 = vmax.f32 %v836_v5, 0.0 }
 0x1ba   : > { %v1891_v11 = vcombine.high %v1887_v26, %v6616_v28  ;;  %v5218_v4 = vsel %vm6570_vm1, %v1888_v56, 0.0  ;;  %v1371_v60 = vrot.slane %v5161_v18, %v4448_v24  ;;  %v5222_v21 = vadd.f32 %v852_v13, %v776_v12 }
 0x1bb   : > { %v5225_v36 = vsel %vm6570_vm1, %v1889_v63, 0.0  ;;  %v1378_v61 = vrot.slane %v1364_v51, %v4448_v24  ;;  %v1892_v15 = vcombine.high %v5200_v52, %v6616_v28  ;;  %v5230_v58 = vadd.f32 %v868_v62, %v792_v30 }
 0x1bc   : > { %6663 = vst [vmem:[#allocation64_spill] sm:$0xff] %v5222_v21  ;;  %v5233_v42 = vsel %vm6570_vm1, %v1880_v48, 0.0  ;;  %v5236_v31 = vsel %vm6570_vm1, %v1887_v26, 0.0  ;;  %v1379_v12 = vcombine.high %v5222_v21, %v6616_v28  ;;  %v1386_v33 = vrot.slane %v5222_v21, %v4448_v24 }
 0x1bd   : > { %6664 = vst [vmem:[#allocation65_spill] sm:$0xff] %v5230_v58  ;;  %v5243_v1 = vsel %vm6570_vm1, %v1890_v16, 0.0  ;;  %v1899_v51 = vrot.slane %v5200_v52, %v4448_v24  ;;  %v1907_v8 = vcombine.high %v5230_v58, %v6616_v28  ;;  %v1914_v25 = vrot.slane %v5230_v58, %v4448_v24 }
 0x1be   : > { %v5252_v48 = vsel %vm6570_vm1, %v1891_v11, 0.0  ;;  %v1393_v26 = vrot.slane %v1379_v12, %v4448_v24  ;;  %v1394_v56 = vcombine.low %v1371_v60, %v1386_v33  ;;  %v1395_v6 = vcombine.high %v1371_v60, %v1386_v33 }
 0x1bf   : > { %v1906_v63 = vrot.slane %v1892_v15, %v4448_v24  ;;  %v1921_v23 = vrot.slane %v1907_v8, %v4448_v24  ;;  %v1922_v5 = vcombine.low %v1899_v51, %v1914_v25  ;;  %v1923_v13 = vcombine.high %v1899_v51, %v1914_v25 }
 0x1c0   : > { %v1402_v16 = vrot.slane %v1394_v56, %v4469_v41  ;;  %v1409_v30 = vrot.slane %v1395_v6, %v4469_v41  ;;  %v1410_v62 = vcombine.low %v1378_v61, %v1393_v26  ;;  %v1411_v52 = vcombine.high %v1378_v61, %v1393_v26 }
 0x1c1   : > { %v1930_v58 = vrot.slane %v1922_v5, %v4469_v41  ;;  %v1937_v11 = vrot.slane %v1923_v13, %v4469_v41  ;;  %v1938_v21 = vcombine.low %v1906_v63, %v1921_v23  ;;  %v1939_v12 = vcombine.high %v1906_v63, %v1921_v23 }
 0x1c2   : > { %v1418_v60 = vrot.slane %v1410_v62, %v4469_v41  ;;  %v1425_v15 = vrot.slane %v1411_v52, %v4469_v41  ;;  %v1426_v33 = vcombine.high %v1402_v16, %v6616_v28  ;;  %v1427_v51 = vcombine.high %v1409_v30, %v6616_v28 }
 0x1c3   : > { %v1972_v8 = vsel %vm6570_vm1, %v1402_v16, 0.0  ;;  %v2046_v25 = vsel %vm6570_vm1, %v1409_v30, 0.0  ;;  %v1946_v61 = vrot.slane %v1938_v21, %v4469_v41  ;;  %v5269_v26 = vrot.slane %v1939_v12, %v4469_v41 }
 0x1c4   : > { %v1428_v56 = vcombine.high %v1418_v60, %v6616_v28  ;;  %v1429_v6 = vcombine.high %v1425_v15, %v6616_v28  ;;  %v1973_v63 = vadd.f32 %v1972_v8, %v5176_v35  ;;  %v2009_v52 = vsel %vm6570_vm1, %v1426_v33, 0.0 }
 0x1c5   : > { %v2010_v23 = vadd.f32 %v2009_v52, %v5179_v54  ;;  %v2047_v5 = vadd.f32 %v2046_v25, %v5182_v47  ;;  %v2083_v13 = vsel %vm6570_vm1, %v1427_v51, 0.0  ;;  %v2120_v16 = vsel %vm6570_vm1, %v1418_v60, 0.0  ;;  %v6669_v52 = vld [vmem:[#allocation23_spill] sm:$0xff] }
 0x1c6   : > { %v1975_v21 = vadd.f32 %v4538_v2, %v1973_v63  ;;  %v2084_v30 = vadd.f32 %v2083_v13, %v5185_v19  ;;  %v2121_v62 = vadd.f32 %v2120_v16, %v5188_v46  ;;  %v2157_v12 = vsel %vm6570_vm1, %v1428_v56, 0.0  ;;  %v6665_v56 = vld [vmem:[#allocation27_spill] sm:$0xff]  ;;  %v6667_v63 = vld [vmem:[#allocation28_spill] sm:$0xff] }
 0x1c7   : > { %v2012_v35 = vadd.f32 %v4541_v3, %v2010_v23  ;;  %v2049_v33 = vadd.f32 %v4544_v7, %v2047_v5  ;;  %v2158_v54 = vadd.f32 %v2157_v12, %v5194_v59  ;;  %v2194_v47 = vsel %vm6570_vm1, %v1425_v15, 0.0  ;;  %v6670_v5 = vld [vmem:[#allocation34_spill] sm:$0xff] }
 0x1c8   : > { %v1977_v51 = vadd.f32 %v4649_v55, %v1975_v21  ;;  %v2086_v60 = vadd.f32 %v4547_v9, %v2084_v30  ;;  %v2123_v2 = vadd.f32 %v4550_v10, %v2121_v62  ;;  %v2195_v19 = vadd.f32 %v2194_v47, %v5204_v39  ;;  %v6671_v21 = vld [vmem:[#allocation33_spill] sm:$0xff]  ;;  %v6672_v62 = vld [vmem:[#allocation44_spill] sm:$0xff]  ;;  %v6674_v47 = vld [vmem:[#allocation30_spill] sm:$0xff] }
 0x1c9   : > { %v2014_v46 = vadd.f32 %v4654_v22, %v2012_v35  ;;  %v2051_v8 = vadd.f32 %v4657_v43, %v2049_v33  ;;  %v2160_v3 = vadd.f32 %v4559_v17, %v2158_v54  ;;  %v2231_v7 = vsel %vm6570_vm1, %v1429_v6, 0.0  ;;  %v6666_v6 = vld [vmem:[#allocation18_spill] sm:$0xff]  ;;  %v6673_v33 = vld [vmem:[#allocation35_spill] sm:$0xff] }
 0x1ca   : > { %v1979_v59 = vadd.f32 %v4754_v27, %v1977_v51  ;;  %v2088_v15 = vadd.f32 %v4665_v57, %v2086_v60  ;;  %v2125_v55 = vadd.f32 %v4660_v0, %v2123_v2  ;;  %v2197_v9 = vadd.f32 %v4578_v49, %v2195_v19  ;;  %v6675_v60 = vld [vmem:[#allocation45_spill] sm:$0xff]  ;;  %v6676_v2 = vld [vmem:[#allocation46_spill] sm:$0xff] }
 0x1cb   : > { %v2016_v10 = vadd.f32 %v4767_v29, %v2014_v46  ;;  %v2053_v39 = vadd.f32 %v4757_v34, %v2051_v8  ;;  %v2162_v22 = vadd.f32 %v4679_v38, %v2160_v3  ;;  %v2232_v43 = vadd.f32 %v2231_v7, %v5207_v50  ;;  %v6677_v46 = vld [vmem:[#allocation37_spill] sm:$0xff]  ;;  %v6678_v7 = vld [vmem:[#allocation48_spill] sm:$0xff] }
 0x1cc   : > { %v2090_v17 = vadd.f32 %v4775_v40, %v2088_v15  ;;  %v2127_v25 = vadd.f32 %v4782_v32, %v2125_v55  ;;  %v2199_v27 = vadd.f32 %v4696_v14, %v2197_v9  ;;  %v1954_v57 = vcombine.high %v1930_v58, %v6616_v28  ;;  %v6668_v40 = vld [vmem:[#allocation32_spill] sm:$0xff] }
 0x1cd   : > { %v2164_v0 = vadd.f32 %v6665_v56, %v2162_v22  ;;  %v2234_v49 = vadd.f32 %v6666_v6, %v2232_v43  ;;  %v1955_v29 = vcombine.high %v1937_v11, %v6616_v28  ;;  %v1956_v34 = vcombine.high %v1946_v61, %v6616_v28  ;;  %v6679_v55 = vld [vmem:[#allocation40_spill] sm:$0xff]  ;;  %v6683_v56 = vld [vmem:[#allocation39_spill] sm:$0xff] }
 0x1ce   : > { %v2201_v38 = vadd.f32 %v6667_v63, %v2199_v27  ;;  %v5314_v50 = vcombine.high %v5269_v26, %v6616_v28  ;;  %v1981_v32 = vadd.f32 %v6668_v40, %v1979_v59  ;;  %v1988_v14 = vsel %vm6570_vm1, %v1930_v58, 0.0  ;;  %v6681_v27 = vld [vmem:[#allocation59_spill] sm:$0xff]  ;;  %v6685_v63 = vld [vmem:[#allocation60_spill] sm:$0xff] }
 0x1cf   : > { %v2236_v23 = vadd.f32 %v6669_v52, %v2234_v49  ;;  %v2018_v13 = vadd.f32 %v6670_v5, %v2016_v10  ;;  %v2025_v16 = vsel %vm6570_vm1, %v1954_v57, 0.0  ;;  %v2055_v30 = vadd.f32 %v6671_v21, %v2053_v39  ;;  %v6680_v39 = vld [vmem:[#allocation47_spill] sm:$0xff]  ;;  %v6682_v57 = vld [vmem:[#allocation49_spill] sm:$0xff]  ;;  %v6686_v40 = vld [vmem:[#allocation52_spill] sm:$0xff] }
 0x1d0   : > { %v1983_v12 = vadd.f32 %v6672_v62, %v1981_v32  ;;  %v2062_v35 = vsel %vm6570_vm1, %v1937_v11, 0.0  ;;  %v2092_v54 = vadd.f32 %v6673_v33, %v2090_v17  ;;  %v2099_v28 = vsel %vm6570_vm1, %v1955_v29, 0.0  ;;  %v6684_v49 = vld [vmem:[#allocation57_spill] sm:$0xff] }
 0x1d1   : > { %v2238_v51 = vadd.f32 %v6674_v47, %v2236_v23  ;;  %v2020_v58 = vadd.f32 %v6675_v60, %v2018_v13  ;;  %v2057_v19 = vadd.f32 %v6676_v2, %v2055_v30  ;;  %v2129_v8 = vadd.f32 %v6677_v46, %v2127_v25  ;;  %v6687_v5 = vld [vmem:[#allocation41_spill] sm:$0xff] }
 0x1d2   : > { %v1985_v3 = vadd.f32 %v5115_v44, %v1983_v12  ;;  %v2094_v59 = vadd.f32 %v6678_v7, %v2092_v54  ;;  %v2136_v15 = vsel %vm6570_vm1, %v1946_v61, 0.0  ;;  %v2166_v11 = vadd.f32 %v6679_v55, %v2164_v0  ;;  %v6688_v30 = vld [vmem:[#allocation61_spill] sm:$0xff] }
 0x1d3   : > { %v2022_v9 = vadd.f32 %v5122_v37, %v2020_v58  ;;  %v2059_v10 = vadd.f32 %v5125_v53, %v2057_v19  ;;  %v2131_v22 = vadd.f32 %v6680_v39, %v2129_v8  ;;  %v2173_v43 = vsel %vm6570_vm1, %v1956_v34, 0.0  ;;  %v6690_v58 = vld [vmem:[#allocation62_spill] sm:$0xff] }
 0x1d4   : > { %v1987_v17 = vadd.f32 %v5210_v45, %v1985_v3  ;;  %v2096_v25 = vadd.f32 %v6681_v27, %v2094_v59  ;;  %v2168_v44 = vadd.f32 %v6682_v57, %v2166_v11  ;;  %v2203_v6 = vadd.f32 %v6683_v56, %v2201_v38 }
 0x1d5   : > { %v2024_v61 = vadd.f32 %v5218_v4, %v2022_v9  ;;  %v2061_v0 = vadd.f32 %v5214_v20, %v2059_v10  ;;  %v2133_v37 = vadd.f32 %v6684_v49, %v2131_v22  ;;  %v2210_v53 = vsel %vm6570_vm1, %v5269_v26, 0.0 }
 0x1d6   : > { %v1989_v29 = vadd.f32 %v1988_v14, %v1987_v17  ;;  %v2098_v34 = vadd.f32 %v5225_v36, %v2096_v25  ;;  %v2170_v45 = vadd.f32 %v6685_v63, %v2168_v44  ;;  %v2205_v32 = vadd.f32 %v6686_v40, %v2203_v6  ;;  %v6689_v36 = vld [vmem:[#allocation53_spill] sm:$0xff] }
 0x1d7   : > { %v2026_v52 = vadd.f32 %v2025_v16, %v2024_v61  ;;  %v2063_v23 = vadd.f32 %v2062_v35, %v2061_v0  ;;  %v2135_v38 = vadd.f32 %v5233_v42, %v2133_v37  ;;  %v2240_v4 = vadd.f32 %v6687_v5, %v2238_v51 }
 0x1d8   : > { %v1990_v13 = vrot.slane %v1989_v29, 4  ;;  %v2100_v20 = vadd.f32 %v2099_v28, %v2098_v34  ;;  %v2172_v21 = vadd.f32 %v5243_v1, %v2170_v45  ;;  %v2207_v62 = vadd.f32 %v6688_v30, %v2205_v32 }
 0x1d9   : > { %v2027_v26 = vrot.slane %v2026_v52, 4  ;;  %v2064_v14 = vrot.slane %v2063_v23, 4  ;;  %v2137_v12 = vadd.f32 %v2136_v15, %v2135_v38  ;;  %v2242_v33 = vadd.f32 %v6689_v36, %v2240_v4 }
 0x1da   : > { %v1991_v54 = vadd.f32 %v1990_v13, %v1989_v29  ;;  %v2101_v47 = vrot.slane %v2100_v20, 4  ;;  %v2174_v60 = vadd.f32 %v2173_v43, %v2172_v21  ;;  %v2209_v16 = vadd.f32 %v5236_v31, %v2207_v62 }
 0x1db   : > { %v2028_v42 = vadd.f32 %v2027_v26, %v2026_v52  ;;  %v2065_v35 = vadd.f32 %v2064_v14, %v2063_v23  ;;  %v2138_v51 = vrot.slane %v2137_v12, 4  ;;  %v2244_v28 = vadd.f32 %v6690_v58, %v2242_v33 }
 0x1dc   : > { %v1992_v2 = vrot.slane %v1991_v54, 2  ;;  %v2102_v1 = vadd.f32 %v2101_v47, %v2100_v20  ;;  %v2175_v19 = vrot.slane %v2174_v60, 4  ;;  %v2211_v46 = vadd.f32 %v2210_v53, %v2209_v16 }
 0x1dd   : > { %v2029_v8 = vrot.slane %v2028_v42, 2  ;;  %v2066_v3 = vrot.slane %v2065_v35, 2  ;;  %v2139_v7 = vadd.f32 %v2138_v51, %v2137_v12  ;;  %v2246_v59 = vadd.f32 %v5252_v48, %v2244_v28  ;;  %v901_v12 = vld [vmem:[%s4323_s14] sm:$0xff] }
 0x1de   : > { %v1993_v15 = vadd.f32 %v1992_v2, %v1991_v54  ;;  %v2103_v55 = vrot.slane %v2102_v1, 2  ;;  %v2176_v11 = vadd.f32 %v2175_v19, %v2174_v60  ;;  %v2212_v9 = vrot.slane %v2211_v46, 4 }
 0x1df   : > { %v2030_v31 = vadd.f32 %v2029_v8, %v2028_v42  ;;  %v2067_v10 = vadd.f32 %v2066_v3, %v2065_v35  ;;  %v2140_v39 = vrot.slane %v2139_v7, 2  ;;  %v2247_v22 = vsel %vm6570_vm1, %v5314_v50, 0.0 }
 0x1e0   : > { %v1994_v43 = vrot.slane %v1993_v15, 1  ;;  %v2104_v17 = vadd.f32 %v2103_v55, %v2102_v1  ;;  %v2177_v27 = vrot.slane %v2176_v11, 2  ;;  %v2213_v25 = vadd.f32 %v2212_v9, %v2211_v46 }
 0x1e1   : > { %v2031_v57 = vrot.slane %v2030_v31, 1  ;;  %v2068_v44 = vrot.slane %v2067_v10, 1  ;;  %v2141_v56 = vadd.f32 %v2140_v39, %v2139_v7  ;;  %v2248_v6 = vadd.f32 %v2247_v22, %v2246_v59 }
 0x1e2   : > { %v2105_v61 = vrot.slane %v2104_v17, 1  ;;  %v2178_v48 = vadd.f32 %v2177_v27, %v2176_v11  ;;  %v2214_v0 = vrot.slane %v2213_v25, 2  ;;  %v1995_v49 = vadd.f32 %v1994_v43, %v1993_v15 }
 0x1e3   : > { %v2032_v37 = vadd.f32 %v2031_v57, %v2030_v31  ;;  %v2142_v53 = vrot.slane %v2141_v56, 1  ;;  %v2249_v29 = vrot.slane %v2248_v6, 4  ;;  %v2069_v34 = vadd.f32 %v2068_v44, %v2067_v10 }
 0x1e4   : > { %v2179_v63 = vrot.slane %v2178_v48, 1  ;;  %v2215_v45 = vadd.f32 %v2214_v0, %v2213_v25  ;;  %v2106_v50 = vadd.f32 %v2105_v61, %v2104_v17 }
 0x1e5   : > { %v2250_v40 = vadd.f32 %v2249_v29, %v2248_v6  ;;  %v2264_v32 = vsel %vm6569_vm2, %v2032_v37, %v1995_v49  ;;  %v2143_v52 = vadd.f32 %v2142_v53, %v2141_v56 }
 0x1e6   : > { %v2216_v23 = vrot.slane %v2215_v45, 1  ;;  %v2266_v38 = vsel %vm6568_vm3, %v2069_v34, %v2264_v32  ;;  %v2180_v5 = vadd.f32 %v2179_v63, %v2178_v48 }
 0x1e7   : > { %v2251_v4 = vrot.slane %v2250_v40, 2  ;;  %v2268_v13 = vsel %vm6567_vm4, %v2106_v50, %v2266_v38 }
 0x1e8   : > { %v2270_v20 = vsel %vm6566_vm5, %v2143_v52, %v2268_v13  ;;  %v2217_v62 = vadd.f32 %v2216_v23, %v2215_v45 }
 0x1e9   : > { %v2252_v21 = vadd.f32 %v2251_v4, %v2250_v40  ;;  %v2272_v30 = vsel %vm6565_vm6, %v2180_v5, %v2270_v20 }
 0x1ea   : > { %v2274_v14 = vsel %vm6564_vm7, %v2217_v62, %v2272_v30 }
 0x1eb   : > { %v2253_v26 = vrot.slane %v2252_v21, 1 }
 0x1ed   : > { %v2254_v36 = vadd.f32 %v2253_v26, %v2252_v21 }
 0x1ee   : > { %2289 = sbr.rel (%p2286_p5) target bundleno = 721 (0x2d1), region = 44 }
 0x1ef   : > { %v2276_v33 = vsel %vm6563_vm8, %v2254_v36, %v2274_v14 }
 0x1f0   : > { %v2278_v54 = vadd.f32 %v2276_v33, %v901_v12 }
 0x1f2   : > { %2279 = vst [vmem:[%s4323_s14] sm:$0xff] %v2278_v54 }
 0x1f3   : > { %v6691_v47 = vlaneseq  ;;  %v6692_v16 = vld [vmem:[#allocation8_spill] sm:$0xff]  ;;  %v2307_v1 = vstv %s4808_s26  ;;  %v2327_v3 = vstv %s4811_s6  ;;  %v6693_v34 = vld [vmem:[#allocation9_spill] sm:$0xff]  ;;  %v6694_v45 = vld [vmem:[#allocation11_spill] sm:$0xff] }
 0x1f4   : > { %v2292_v42 = vadd.s32 8, %v6692_v16  ;;  %v2293_v35 = vadd.s32 16, %v6692_v16  ;;  %v2294_v51 = vadd.s32 24, %v6692_v16  ;;  %v2295_v58 = vadd.s32 32, %v6692_v16  ;;  %v6695_v40 = vld [vmem:[#allocation13_spill] sm:$0xff]  ;;  %v6696_v52 = vld [vmem:[#allocation15_spill] sm:$0xff] }
 0x1f5   : > { %v2325_v60 = vand.u32 127, %v6691_v47  ;;  %v2296_v28 = vadd.s32 40, %v6692_v16  ;;  %v2297_v2 = vadd.s32 48, %v6692_v16  ;;  %v2298_v19 = vadd.s32 56, %v6692_v16  ;;  %v6697_v38 = vld [vmem:[#allocation17_spill] sm:$0xff]  ;;  %v6698_v4 = vld [vmem:[#allocation20_spill] sm:$0xff] }
 0x1f6   : > { %v2299_v46 = vadd.s32 64, %v6692_v16  ;;  %v2300_v8 = vadd.s32 72, %v6692_v16  ;;  %v2301_v7 = vadd.s32 80, %v6692_v16  ;;  %v2302_v59 = vadd.s32 88, %v6692_v16  ;;  %v6699_v20 = vld [vmem:[#allocation22_spill] sm:$0xff]  ;;  %v6701_v30 = vld [vmem:[#allocation25_spill] sm:$0xff] }
 0x1f7   : > { %v2303_v15 = vadd.s32 96, %v6692_v16  ;;  %v2326_v55 = vadd.s32 128, %v2325_v60  ;;  %v2304_v11 = vadd.s32 104, %v6692_v16  ;;  %v2305_v9 = vadd.s32 112, %v6692_v16  ;;  %v6702_v26 = vld [vmem:[#allocation29_spill] sm:$0xff]  ;;  %v6704_v12 = vld [vmem:[#allocation36_spill] sm:$0xff] }
 0x1f8   : > { %v2306_v31 = vadd.s32 120, %v6692_v16  ;;  %v2308_v10 = vadd.s32 %v2307_v1, %v6692_v16  ;;  %v2309_v39 = vadd.s32 %v2307_v1, %v2292_v42  ;;  %v2310_v22 = vadd.s32 %v2307_v1, %v2293_v35  ;;  %v6706_v33 = vld [vmem:[#allocation42_spill] sm:$0xff]  ;;  %v6711_v35 = vld [vmem:[#allocation56_spill] sm:$0xff] }
 0x1f9   : > { %v2311_v43 = vadd.s32 %v2307_v1, %v2294_v51  ;;  %v5393_v17 = vadd.s32 %v2327_v3, %v2325_v60  ;;  %v2312_v27 = vadd.s32 %v2307_v1, %v2295_v58  ;;  %v2313_v25 = vadd.s32 %v2307_v1, %v2296_v28  ;;  %v6708_v47 = vld [vmem:[#allocation50_spill] sm:$0xff]  ;;  %v6714_v28 = vld [vmem:[#allocation64_spill] sm:$0xff] }
 0x1fa   : > { %v2314_v57 = vadd.s32 %v2307_v1, %v2297_v2  ;;  %v2315_v44 = vadd.s32 %v2307_v1, %v2298_v19  ;;  %v2316_v56 = vadd.s32 %v2307_v1, %v2299_v46  ;;  %v5395_v6 = vadd.s32 %v2307_v1, %v2300_v8  ;;  %v6709_v16 = vld [vmem:[#allocation54_spill] sm:$0xff] }
 0x1fb   : > { %v5397_v61 = vadd.s32 %v2307_v1, %v2301_v7  ;;  %v5399_v48 = vadd.s32 %v2327_v3, %v2326_v55  ;;  %v5401_v0 = vadd.s32 %v2307_v1, %v2302_v59  ;;  %v5403_v49 = vadd.s32 %v2307_v1, %v2303_v15  ;;  %v6715_v8 = vld [vmem:[#allocation10_spill] sm:$0xff]  ;;  %v6717_v7 = vld [vmem:[#allocation12_spill] sm:$0xff] }
 0x1fc   : > { %v5405_v37 = vadd.s32 %v2307_v1, %v2304_v11  ;;  %v5407_v53 = vadd.s32 %v2307_v1, %v2305_v9  ;;  %v5409_v29 = vadd.s32 %v2307_v1, %v2306_v31  ;;  %vm2331_vm9 = vcmp.eq.s32.totalorder %v2308_v10, %v5393_v17  ;;  %v6719_v55 = vld [vmem:[#allocation14_spill] sm:$0xff]  ;;  %v6721_v9 = vld [vmem:[#allocation16_spill] sm:$0xff] }
 0x1fd   : > { %vm2333_vm10 = vcmp.eq.s32.totalorder %v2309_v39, %v5393_v17  ;;  %vm2335_vm11 = vcmp.eq.s32.totalorder %v2310_v22, %v5393_v17  ;;  %vm2332_vm15 = vcmp.eq.s32.totalorder %v2308_v10, %v5399_v48  ;;  %vm2334_vm0 = vcmp.eq.s32.totalorder %v2309_v39, %v5399_v48  ;;  %v6723_v10 = vld [vmem:[#allocation19_spill] sm:$0xff] }
 0x1fe   : > { %vm2336_vm8 = vcmp.eq.s32.totalorder %v2310_v22, %v5399_v48  ;;  %vm2338_vm6 = vcmp.eq.s32.totalorder %v2311_v43, %v5399_v48  ;;  %vm2342_vm4 = vcmp.eq.s32.totalorder %v2313_v25, %v5399_v48  ;;  %vm2346_vm1 = vcmp.eq.s32.totalorder %v2315_v44, %v5399_v48  ;;  %v6725_v22 = vld [vmem:[#allocation21_spill] sm:$0xff] }
 0x1ff   : > { %vm2356_vm12 = vcmp.eq.s32.totalorder %v5403_v49, %v5399_v48  ;;  %vm2357_vm7 = vcmp.eq.s32.totalorder %v5405_v37, %v5393_v17  ;;  %vm2358_vm5 = vcmp.eq.s32.totalorder %v5405_v37, %v5399_v48  ;;  %vm2359_vm3 = vcmp.eq.s32.totalorder %v5407_v53, %v5393_v17  ;;  %v6739_v37 = vld [vmem:[#allocation65_spill] sm:$0xff] }
 0x200   : > { %vm2360_vm2 = vcmp.eq.s32.totalorder %v5407_v53, %v5399_v48  ;;  %vm2361_vm14 = vcmp.eq.s32.totalorder %v5409_v29, %v5393_v17  ;;  %vm2362_vm13 = vcmp.eq.s32.totalorder %v5409_v29, %v5399_v48  ;;  %v2363_v63 = vsel %vm2331_vm9, %v6693_v34, 0.0 }
 0x201   : > { %v2364_v50 = vsel %vm2332_vm15, %v6694_v45, 0.0  ;;  %v2365_v32 = vsel %vm2333_vm10, %v6695_v40, 0.0  ;;  %v2366_v23 = vsel %vm2334_vm0, %v6696_v52, 0.0  ;;  %v2367_v5 = vsel %vm2335_vm11, %v6697_v38, 0.0 }
 0x202   : > { %v2368_v13 = vsel %vm2336_vm8, %v6698_v4, 0.0  ;;  %vm6700_vm9 = vcmp.eq.s32.totalorder %v2311_v43, %v5393_v17  ;;  %v2370_v62 = vsel %vm2338_vm6, %v6701_v30, 0.0  ;;  %vm6703_vm10 = vcmp.eq.s32.totalorder %v2312_v27, %v5393_v17 }
 0x203   : > { %v2369_v21 = vsel %vm6700_vm9, %v6699_v20, 0.0  ;;  %v5484_v14 = vsel %vm6703_vm10, %v6702_v26, 0.0  ;;  %vm6705_vm11 = vcmp.eq.s32.totalorder %v2312_v27, %v5399_v48  ;;  %vm6707_vm8 = vcmp.eq.s32.totalorder %v2313_v25, %v5393_v17  ;;  %v6727_v27 = vld [vmem:[#allocation24_spill] sm:$0xff]  ;;  %v6734_v20 = vld [vmem:[#allocation43_spill] sm:$0xff] }
 0x204   : > { %v5489_v36 = vsel %vm6705_vm11, %v6704_v12, 0.0  ;;  %v5494_v54 = vsel %vm6707_vm8, %v6706_v33, 0.0  ;;  %v5499_v60 = vsel %vm2342_vm4, %v6708_v47, 0.0  ;;  %vm6710_vm6 = vcmp.eq.s32.totalorder %v2314_v57, %v5393_v17  ;;  %v6736_v26 = vld [vmem:[#allocation55_spill] sm:$0xff]  ;;  %v6737_v12 = vld [vmem:[#allocation58_spill] sm:$0xff] }
 0x205   : > { %v5504_v42 = vsel %vm6710_vm6, %v6709_v16, 0.0  ;;  %vm6712_vm15 = vcmp.eq.s32.totalorder %v2314_v57, %v5399_v48  ;;  %vm6713_vm0 = vcmp.eq.s32.totalorder %v2315_v44, %v5393_v17  ;;  %v5519_v2 = vsel %vm2346_vm1, %v6714_v28, 0.0  ;;  %v6729_v57 = vld [vmem:[#allocation26_spill] sm:$0xff]  ;;  %v6738_v47 = vld [vmem:[#allocation63_spill] sm:$0xff] }
 0x206   : > { %v5509_v51 = vsel %vm6712_vm15, %v6711_v35, 0.0  ;;  %v5514_v58 = vsel %vm6713_vm0, %v5161_v18, 0.0  ;;  %v6576_v1 = vmov 0.0   ;;  %vm6716_vm4 = vcmp.eq.s32.totalorder %v2316_v56, %v5393_v17 }
 0x207   : > { %v2395_v19 = vcombine.high %v2363_v63, %v6576_v1  ;;  %v2410_v46 = vcombine.high %v2364_v50, %v6576_v1  ;;  %v5526_v3 = vsel %vm6716_vm4, %v6715_v8, 0.0  ;;  %vm6718_vm9 = vcmp.eq.s32.totalorder %v2316_v56, %v5399_v48 }
 0x208   : > { %v5531_v18 = vsel %vm6718_vm9, %v6717_v7, 0.0  ;;  %v2402_v59 = vrot.slane %v2363_v63, %v4448_v24  ;;  %v2417_v15 = vrot.slane %v2364_v50, %v4448_v24  ;;  %vm6720_vm1 = vcmp.eq.s32.totalorder %v5395_v6, %v5393_v17  ;;  %v6731_v50 = vld [vmem:[#allocation31_spill] sm:$0xff] }
 0x209   : > { %v5539_v11 = vsel %vm6720_vm1, %v6719_v55, 0.0  ;;  %vm6722_vm10 = vcmp.eq.s32.totalorder %v5395_v6, %v5399_v48  ;;  %vm6724_vm11 = vcmp.eq.s32.totalorder %v5397_v61, %v5393_v17  ;;  %vm6726_vm8 = vcmp.eq.s32.totalorder %v5397_v61, %v5399_v48 }
 0x20a   : > { %v5545_v31 = vsel %vm6722_vm10, %v6721_v9, 0.0  ;;  %v5551_v39 = vsel %vm6724_vm11, %v6723_v10, 0.0  ;;  %v5557_v43 = vsel %vm6726_vm8, %v6725_v22, 0.0  ;;  %vm6728_vm6 = vcmp.eq.s32.totalorder %v5401_v0, %v5393_v17 }
 0x20b   : > { %v5563_v25 = vsel %vm6728_vm6, %v6727_v27, 0.0  ;;  %vm6730_vm15 = vcmp.eq.s32.totalorder %v5401_v0, %v5399_v48  ;;  %v2461_v56 = vcombine.high %v2365_v32, %v6576_v1  ;;  %v2476_v6 = vcombine.high %v2366_v23, %v6576_v1  ;;  %v6733_v0 = vld [vmem:[#allocation38_spill] sm:$0xff] }
 0x20c   : > { %v5569_v44 = vsel %vm6730_vm15, %v6729_v57, 0.0  ;;  %v2409_v61 = vrot.slane %v2395_v19, %v4448_v24  ;;  %v2424_v34 = vrot.slane %v2410_v46, %v4448_v24  ;;  %v2468_v63 = vrot.slane %v2365_v32, %v4448_v24 }
 0x20d   : > { %v2483_v45 = vrot.slane %v2366_v23, %v4448_v24  ;;  %vm6732_vm0 = vcmp.eq.s32.totalorder %v5403_v49, %v5393_v17  ;;  %v5587_v52 = vsel %vm2356_vm12, %v6733_v0, 0.0  ;;  %v2425_v38 = vcombine.low %v2402_v59, %v2417_v15  ;;  %v6735_v23 = vld [vmem:[#allocation51_spill] sm:$0xff] }
 0x20e   : > { %v5581_v40 = vsel %vm6732_vm0, %v6731_v50, 0.0  ;;  %v2426_v4 = vcombine.high %v2402_v59, %v2417_v15  ;;  %v5593_v32 = vsel %vm2357_vm7, %v6734_v20, 0.0  ;;  %v5599_v30 = vsel %vm2358_vm5, %v6735_v23, 0.0 }
 0x20f   : > { %v5605_v49 = vsel %vm2359_vm3, %v6736_v26, 0.0  ;;  %v5611_v33 = vsel %vm2360_vm2, %v6737_v12, 0.0  ;;  %v5617_v16 = vsel %vm2361_vm14, %v6738_v47, 0.0  ;;  %v5623_v35 = vsel %vm2362_vm13, %v6739_v37, 0.0 }
 0x210   : > { %v2475_v28 = vrot.slane %v2461_v56, %v4448_v24  ;;  %v2490_v19 = vrot.slane %v2476_v6, %v4448_v24  ;;  %v2441_v46 = vcombine.low %v2409_v61, %v2424_v34  ;;  %v2442_v53 = vcombine.high %v2409_v61, %v2424_v34 }
 0x211   : > { %v2491_v8 = vcombine.low %v2468_v63, %v2483_v45  ;;  %v2492_v7 = vcombine.high %v2468_v63, %v2483_v45  ;;  %v5628_v59 = vrot.slane %v2425_v38, %v4469_v41  ;;  %v5631_v17 = vrot.slane %v2426_v4, %v4469_v41 }
 0x212   : > { %v2527_v15 = vcombine.high %v2367_v5, %v6576_v1  ;;  %v2542_v48 = vcombine.high %v2368_v13, %v6576_v1  ;;  %v2534_v29 = vrot.slane %v2367_v5, %v4448_v24  ;;  %v2549_v55 = vrot.slane %v2368_v13, %v4448_v24 }
 0x213   : > { %v2593_v9 = vcombine.high %v2369_v21, %v6576_v1  ;;  %v2608_v10 = vcombine.high %v2370_v62, %v6576_v1  ;;  %v2507_v22 = vcombine.low %v2475_v28, %v2490_v19  ;;  %v2508_v27 = vcombine.high %v2475_v28, %v2490_v19 }
 0x214   : > { %v2600_v57 = vrot.slane %v2369_v21, %v4448_v24  ;;  %v2615_v56 = vrot.slane %v2370_v62, %v4448_v24  ;;  %v5642_v6 = vrot.slane %v2441_v46, %v4469_v41  ;;  %v5645_v61 = vrot.slane %v2442_v53, %v4469_v41 }
 0x215   : > { %v5648_v5 = vrot.slane %v2491_v8, %v4469_v41  ;;  %v5651_v13 = vrot.slane %v2492_v7, %v4469_v41  ;;  %v5655_v34 = vcombine.high %v5628_v59, %v6576_v1  ;;  %v5659_v21 = vcombine.high %v5631_v17, %v6576_v1 }
 0x216   : > { %6740 = vst [vmem:[#allocation66_spill] sm:$0xff] %v5642_v6  ;;  %6741 = vst [vmem:[#allocation67_spill] sm:$0xff] %v5645_v61  ;;  %v2541_v62 = vrot.slane %v2527_v15, %v4448_v24  ;;  %v2556_v63 = vrot.slane %v2542_v48, %v4448_v24  ;;  %v2557_v45 = vcombine.low %v2534_v29, %v2549_v55  ;;  %vm6797_vm2 = vcmask 1041408  }
 0x217   : > { %v2558_v50 = vcombine.high %v2534_v29, %v2549_v55  ;;  %v2607_v0 = vrot.slane %v2593_v9, %v4448_v24  ;;  %v2622_v38 = vrot.slane %v2608_v10, %v4448_v24  ;;  %v5666_v4 = vrot.slane %v2507_v22, %v4469_v41  ;;  %vm6798_vm3 = vmmov %vm6797_vm2 }
 0x218   : > { %v5669_v20 = vrot.slane %v2508_v27, %v4469_v41  ;;  %v2623_v23 = vcombine.low %v2600_v57, %v2615_v56  ;;  %v2624_v26 = vcombine.high %v2600_v57, %v2615_v56  ;;  %v5673_v12 = vcombine.high %v5642_v6, %v6576_v1  ;;  %vm6799_vm5 = vmmov %vm6797_vm2 }
 0x219   : > { %6742 = vst [vmem:[#allocation68_spill] sm:$0xff] %v5666_v4  ;;  %v5677_v47 = vcombine.high %v5645_v61, %v6576_v1  ;;  %v2659_v37 = vcombine.high %v5484_v14, %v6576_v1  ;;  %v2674_v28 = vcombine.high %v5489_v36, %v6576_v1  ;;  %v5685_v19 = vcombine.high %v5648_v5, %v6576_v1  ;;  %vm6801_vm7 = vmmov %vm6797_vm2 }
 0x21a   : > { %6743 = vst [vmem:[#allocation69_spill] sm:$0xff] %v5669_v20  ;;  %6744 = vst [vmem:[#allocation70_spill] sm:$0xff] %v5673_v12  ;;  %v5689_v46 = vcombine.high %v5651_v13, %v6576_v1  ;;  %v2573_v53 = vcombine.low %v2541_v62, %v2556_v63  ;;  %v2574_v8 = vcombine.high %v2541_v62, %v2556_v63 }
 0x21b   : > { %6745 = vst [vmem:[#allocation71_spill] sm:$0xff] %v5677_v47  ;;  %v5692_v7 = vrot.slane %v2557_v45, %v4469_v41  ;;  %v5695_v15 = vrot.slane %v2558_v50, %v4469_v41  ;;  %v2639_v48 = vcombine.low %v2607_v0, %v2622_v38  ;;  %v2640_v29 = vcombine.high %v2607_v0, %v2622_v38  ;;  %vm6804_vm12 = vmmov %vm6797_vm2 }
 0x21c   : > { %v5698_v55 = vrot.slane %v2623_v23, %v4469_v41  ;;  %v5701_v9 = vrot.slane %v2624_v26, %v4469_v41  ;;  %v2666_v10 = vrot.slane %v5484_v14, %v4448_v24  ;;  %v2681_v22 = vrot.slane %v5489_v36, %v4448_v24  ;;  %vm6805_vm13 = vmmov %vm6797_vm2 }
 0x21d   : > { %v5709_v27 = vcombine.high %v5666_v4, %v6576_v1  ;;  %v5713_v57 = vcombine.high %v5669_v20, %v6576_v1  ;;  %v2673_v56 = vrot.slane %v2659_v37, %v4448_v24  ;;  %v2688_v62 = vrot.slane %v2674_v28, %v4448_v24  ;;  %vm6806_vm14 = vmmov %vm6797_vm2 }
 0x21e   : > { %v5718_v63 = vrot.slane %v2573_v53, %v4469_v41  ;;  %v5721_v14 = vrot.slane %v2574_v8, %v4469_v41  ;;  %v2725_v36 = vcombine.high %v5494_v54, %v6576_v1  ;;  %v2740_v45 = vcombine.high %v5499_v60, %v6576_v1  ;;  %vm6807_vm4 = vmmov %vm6797_vm2 }
 0x21f   : > { %6746 = vst [vmem:[#allocation72_spill] sm:$0xff] %v5709_v27  ;;  %6747 = vst [vmem:[#allocation73_spill] sm:$0xff] %v5713_v57  ;;  %v5729_v50 = vcombine.high %v5692_v7, %v6576_v1  ;;  %v5733_v0 = vcombine.high %v5695_v15, %v6576_v1  ;;  %v5736_v38 = vrot.slane %v2639_v48, %v4469_v41 }
 0x220   : > { %6748 = vst [vmem:[#allocation74_spill] sm:$0xff] %v5718_v63  ;;  %6749 = vst [vmem:[#allocation75_spill] sm:$0xff] %v5721_v14  ;;  %v5739_v23 = vrot.slane %v2640_v29, %v4469_v41  ;;  %v5743_v26 = vcombine.high %v5698_v55, %v6576_v1  ;;  %v5747_v37 = vcombine.high %v5701_v9, %v6576_v1 }
 0x221   : > { %6750 = vst [vmem:[#allocation76_spill] sm:$0xff] %v5736_v38  ;;  %v2689_v28 = vcombine.low %v2666_v10, %v2681_v22  ;;  %v2690_v53 = vcombine.high %v2666_v10, %v2681_v22  ;;  %v2705_v8 = vcombine.low %v2673_v56, %v2688_v62  ;;  %v2706_v57 = vcombine.high %v2673_v56, %v2688_v62  ;;  %vm6808_vm9 = vmmov %vm6797_vm2 }
 0x222   : > { %6751 = vst [vmem:[#allocation77_spill] sm:$0xff] %v5739_v23  ;;  %6752 = vst [vmem:[#allocation78_spill] sm:$0xff] %v5747_v37  ;;  %v2732_v47 = vrot.slane %v5494_v54, %v4448_v24  ;;  %v2747_v48 = vrot.slane %v5499_v60, %v4448_v24  ;;  %v5755_v29 = vcombine.high %v5718_v63, %v6576_v1 }
 0x223   : > { %v5759_v20 = vcombine.high %v5721_v14, %v6576_v1  ;;  %v2739_v61 = vrot.slane %v2725_v36, %v4448_v24  ;;  %v2754_v10 = vrot.slane %v2740_v45, %v4448_v24  ;;  %v2791_v22 = vcombine.high %v5504_v42, %v6576_v1  ;;  %vm6810_vm1 = vmmov %vm6797_vm2 }
 0x224   : > { %6753 = vst [vmem:[#allocation79_spill] sm:$0xff] %v5755_v29  ;;  %v2798_v54 = vrot.slane %v5504_v42, %v4448_v24  ;;  %v2806_v60 = vcombine.high %v5509_v51, %v6576_v1  ;;  %v2813_v56 = vrot.slane %v5509_v51, %v4448_v24  ;;  %v5773_v62 = vcombine.high %v5736_v38, %v6576_v1  ;;  %vm6811_vm10 = vmmov %vm6810_vm1 }
 0x225   : > { %6754 = vst [vmem:[#allocation80_spill] sm:$0xff] %v5759_v20  ;;  %v5777_v36 = vcombine.high %v5739_v23, %v6576_v1  ;;  %v5780_v45 = vrot.slane %v2689_v28, %v4469_v41  ;;  %v5783_v20 = vrot.slane %v2690_v53, %v4469_v41  ;;  %v5786_v42 = vrot.slane %v2705_v8, %v4469_v41  ;;  %vm6812_vm11 = vmmov %vm6810_vm1 }
 0x226   : > { %6755 = vst [vmem:[#allocation81_spill] sm:$0xff] %v5773_v62  ;;  %v5789_v14 = vrot.slane %v2706_v57, %v4469_v41  ;;  %v2755_v51 = vcombine.low %v2732_v47, %v2747_v48  ;;  %v2756_v29 = vcombine.high %v2732_v47, %v2747_v48  ;;  %v2771_v27 = vcombine.low %v2739_v61, %v2754_v10  ;;  %vm6813_vm8 = vmmov %vm6810_vm1 }
 0x227   : > { %6756 = vst [vmem:[#allocation82_spill] sm:$0xff] %v5777_v36  ;;  %6757 = vst [vmem:[#allocation83_spill] sm:$0xff] %v5786_v42  ;;  %v2772_v62 = vcombine.high %v2739_v61, %v2754_v10  ;;  %v2857_v23 = vcombine.high %v5514_v58, %v6576_v1  ;;  %v2872_v28 = vcombine.high %v5519_v2, %v6576_v1  ;;  %v6764_v38 = vmov 0.0  }
 0x228   : > { %6758 = vst [vmem:[#allocation84_spill] sm:$0xff] %v5789_v14  ;;  %v2805_v36 = vrot.slane %v2791_v22, %v4448_v24  ;;  %v2820_v53 = vrot.slane %v2806_v60, %v4448_v24  ;;  %v2821_v12 = vcombine.low %v2798_v54, %v2813_v56  ;;  %v2822_v8 = vcombine.high %v2798_v54, %v2813_v56  ;;  %vm6814_vm6 = vmmov %vm6810_vm1 }
 0x229   : > { %v5799_v57 = vcombine.high %v5780_v45, %v6576_v1  ;;  %v5803_v47 = vcombine.high %v5783_v20, %v6576_v1  ;;  %v2864_v61 = vrot.slane %v5514_v58, %v4448_v24  ;;  %v2879_v48 = vrot.slane %v5519_v2, %v4448_v24  ;;  %vm6815_vm15 = vmmov %vm6810_vm1 }
 0x22a   : > { %v5811_v10 = vcombine.high %v5786_v42, %v6576_v1  ;;  %v5815_v22 = vcombine.high %v5789_v14, %v6576_v1  ;;  %v5818_v54 = vrot.slane %v2755_v51, %v4469_v41  ;;  %v5821_v60 = vrot.slane %v2756_v29, %v4469_v41  ;;  %vm6816_vm0 = vmmov %vm6810_vm1 }
 0x22b   : > { %6759 = vst [vmem:[#allocation85_spill] sm:$0xff] %v5803_v47  ;;  %v5824_v56 = vrot.slane %v2771_v27, %v4469_v41  ;;  %v5827_v58 = vrot.slane %v2772_v62, %v4469_v41  ;;  %v2871_v2 = vrot.slane %v2857_v23, %v4448_v24  ;;  %v5832_v42 = vrot.slane %v2821_v12, %v4469_v41 }
 0x22c   : > { %6760 = vst [vmem:[#allocation86_spill] sm:$0xff] %v5811_v10  ;;  %6761 = vst [vmem:[#allocation87_spill] sm:$0xff] %v5815_v22  ;;  %v2886_v10 = vrot.slane %v2872_v28, %v4448_v24  ;;  %v5835_v1 = vrot.slane %v2822_v8, %v4469_v41  ;;  %v2837_v51 = vcombine.low %v2805_v36, %v2820_v53 }
 0x22d   : > { %6762 = vst [vmem:[#allocation88_spill] sm:$0xff] %v5824_v56  ;;  %6763 = vst [vmem:[#allocation89_spill] sm:$0xff] %v5827_v58  ;;  %v2838_v22 = vcombine.high %v2805_v36, %v2820_v53  ;;  %v2887_v29 = vcombine.low %v2864_v61, %v2879_v48  ;;  %v2888_v14 = vcombine.high %v2864_v61, %v2879_v48 }
 0x22e   : > { %v2923_v27 = vcombine.high %v5526_v3, %v6764_v38  ;;  %v2938_v62 = vcombine.high %v5531_v18, %v6764_v38  ;;  %v5843_v23 = vcombine.high %v5818_v54, %v6764_v38  ;;  %v5847_v12 = vcombine.high %v5821_v60, %v6764_v38 }
 0x22f   : > { %v2930_v28 = vrot.slane %v5526_v3, %v4448_v24  ;;  %v2945_v36 = vrot.slane %v5531_v18, %v4448_v24  ;;  %v5855_v53 = vcombine.high %v5824_v56, %v6764_v38  ;;  %v5859_v8 = vcombine.high %v5827_v58, %v6764_v38 }
 0x230   : > { %6765 = vst [vmem:[#allocation90_spill] sm:$0xff] %v5847_v12  ;;  %v2903_v61 = vcombine.low %v2871_v2, %v2886_v10  ;;  %v2904_v48 = vcombine.high %v2871_v2, %v2886_v10  ;;  %v5862_v63 = vrot.slane %v2837_v51, %v4469_v41  ;;  %v5865_v4 = vrot.slane %v2838_v22, %v4469_v41 }
 0x231   : > { %6766 = vst [vmem:[#allocation91_spill] sm:$0xff] %v5855_v53  ;;  %6767 = vst [vmem:[#allocation92_spill] sm:$0xff] %v5859_v8  ;;  %v5869_v3 = vcombine.high %v5832_v42, %v6764_v38  ;;  %v5873_v18 = vcombine.high %v5835_v1, %v6764_v38  ;;  %v5876_v53 = vrot.slane %v2887_v29, %v4469_v41 }
 0x232   : > { %6768 = vst [vmem:[#allocation93_spill] sm:$0xff] %v5862_v63  ;;  %6769 = vst [vmem:[#allocation94_spill] sm:$0xff] %v5865_v4  ;;  %v5879_v8 = vrot.slane %v2888_v14, %v4469_v41  ;;  %v2937_v10 = vrot.slane %v2923_v27, %v4448_v24  ;;  %v2952_v2 = vrot.slane %v2938_v62, %v4448_v24 }
 0x233   : > { %6770 = vst [vmem:[#allocation95_spill] sm:$0xff] %v5873_v18  ;;  %v2953_v22 = vcombine.low %v2930_v28, %v2945_v36  ;;  %v2954_v51 = vcombine.high %v2930_v28, %v2945_v36  ;;  %v2989_v58 = vcombine.high %v5539_v11, %v6764_v38  ;;  %v3004_v56 = vcombine.high %v5545_v31, %v6764_v38 }
 0x234   : > { %6771 = vst [vmem:[#allocation96_spill] sm:$0xff] %v5879_v8  ;;  %v5888_v18 = vrot.slane %v2903_v61, %v4469_v41  ;;  %v5891_v29 = vrot.slane %v2904_v48, %v4469_v41  ;;  %v2996_v14 = vrot.slane %v5539_v11, %v4448_v24  ;;  %v3011_v27 = vrot.slane %v5545_v31, %v4448_v24 }
 0x235   : > { %v5899_v62 = vcombine.high %v5862_v63, %v6764_v38  ;;  %v5903_v28 = vcombine.high %v5865_v4, %v6764_v38  ;;  %v3055_v36 = vcombine.high %v5551_v39, %v6764_v38  ;;  %v3070_v61 = vcombine.high %v5557_v43, %v6764_v38 }
 0x236   : > { %6772 = vst [vmem:[#allocation97_spill] sm:$0xff] %v5888_v18  ;;  %6773 = vst [vmem:[#allocation98_spill] sm:$0xff] %v5891_v29  ;;  %v5911_v11 = vcombine.high %v5876_v53, %v6764_v38  ;;  %v5915_v31 = vcombine.high %v5879_v8, %v6764_v38  ;;  %v2969_v48 = vcombine.low %v2937_v10, %v2952_v2 }
 0x237   : > { %6774 = vst [vmem:[#allocation99_spill] sm:$0xff] %v5899_v62  ;;  %6775 = vst [vmem:[#allocation100_spill] sm:$0xff] %v5903_v28  ;;  %v2970_v62 = vcombine.high %v2937_v10, %v2952_v2  ;;  %v5918_v63 = vrot.slane %v2953_v22, %v4469_v41  ;;  %v5921_v28 = vrot.slane %v2954_v51, %v4469_v41 }
 0x238   : > { %6776 = vst [vmem:[#allocation101_spill] sm:$0xff] %v5915_v31  ;;  %v3003_v4 = vrot.slane %v2989_v58, %v4448_v24  ;;  %v3018_v6 = vrot.slane %v3004_v56, %v4448_v24  ;;  %v5927_v12 = vcombine.high %v5888_v18, %v6764_v38  ;;  %v5931_v47 = vcombine.high %v5891_v29, %v6764_v38 }
 0x239   : > { %v3019_v31 = vcombine.low %v2996_v14, %v3011_v27  ;;  %v3020_v10 = vcombine.high %v2996_v14, %v3011_v27  ;;  %v3062_v2 = vrot.slane %v5551_v39, %v4448_v24  ;;  %v3069_v22 = vrot.slane %v3055_v36, %v4448_v24 }
 0x23a   : > { %6777 = vst [vmem:[#allocation102_spill] sm:$0xff] %v5927_v12  ;;  %6778 = vst [vmem:[#allocation103_spill] sm:$0xff] %v5931_v47  ;;  %v3077_v58 = vrot.slane %v5557_v43, %v4448_v24  ;;  %v3084_v56 = vrot.slane %v3070_v61, %v4448_v24  ;;  %v5940_v51 = vrot.slane %v2969_v48, %v4469_v41 }
 0x23b   : > { %v5943_v12 = vrot.slane %v2970_v62, %v4469_v41  ;;  %v3121_v47 = vcombine.high %v5563_v25, %v6764_v38  ;;  %v3136_v14 = vcombine.high %v5569_v44, %v6764_v38  ;;  %v5951_v39 = vcombine.high %v5918_v63, %v6764_v38 }
 0x23c   : > { %6779 = vst [vmem:[#allocation104_spill] sm:$0xff] %v5940_v51  ;;  %v5955_v43 = vcombine.high %v5921_v28, %v6764_v38  ;;  %v3035_v27 = vcombine.low %v3003_v4, %v3018_v6  ;;  %v3036_v36 = vcombine.high %v3003_v4, %v3018_v6  ;;  %v5958_v61 = vrot.slane %v3019_v31, %v4469_v41 }
 0x23d   : > { %6780 = vst [vmem:[#allocation105_spill] sm:$0xff] %v5943_v12  ;;  %6781 = vst [vmem:[#allocation106_spill] sm:$0xff] %v5951_v39  ;;  %v5961_v62 = vrot.slane %v3020_v10, %v4469_v41  ;;  %v3128_v48 = vrot.slane %v5563_v25, %v4448_v24  ;;  %v3143_v29 = vrot.slane %v5569_v44, %v4448_v24 }
 0x23e   : > { %6782 = vst [vmem:[#allocation107_spill] sm:$0xff] %v5955_v43  ;;  %v3085_v18 = vcombine.low %v3062_v2, %v3077_v58  ;;  %v3086_v39 = vcombine.high %v3062_v2, %v3077_v58  ;;  %v3101_v8 = vcombine.low %v3069_v22, %v3084_v56  ;;  %v3102_v37 = vcombine.high %v3069_v22, %v3084_v56 }
 0x23f   : > { %v5969_v43 = vcombine.high %v5940_v51, %v6764_v38  ;;  %v5973_v6 = vcombine.high %v5943_v12, %v6764_v38  ;;  %v3135_v4 = vrot.slane %v3121_v47, %v4448_v24  ;;  %v3150_v31 = vrot.slane %v3136_v14, %v4448_v24 }
 0x240   : > { %v5978_v25 = vrot.slane %v3035_v27, %v4469_v41  ;;  %v5981_v44 = vrot.slane %v3036_v36, %v4469_v41  ;;  %v3187_v10 = vcombine.high %v5581_v40, %v6764_v38  ;;  %v3202_v2 = vcombine.high %v5587_v52, %v6764_v38 }
 0x241   : > { %6783 = vst [vmem:[#allocation108_spill] sm:$0xff] %v5969_v43  ;;  %6784 = vst [vmem:[#allocation109_spill] sm:$0xff] %v5973_v6  ;;  %v5989_v22 = vcombine.high %v5958_v61, %v6764_v38  ;;  %v5993_v47 = vcombine.high %v5961_v62, %v6764_v38  ;;  %v3151_v58 = vcombine.low %v3128_v48, %v3143_v29 }
 0x242   : > { %6785 = vst [vmem:[#allocation110_spill] sm:$0xff] %v5978_v25  ;;  %6786 = vst [vmem:[#allocation111_spill] sm:$0xff] %v5981_v44  ;;  %v3152_v56 = vcombine.high %v3128_v48, %v3143_v29  ;;  %v5996_v14 = vrot.slane %v3085_v18, %v4469_v41  ;;  %v5999_v27 = vrot.slane %v3086_v39, %v4469_v41 }
 0x243   : > { %6787 = vst [vmem:[#allocation112_spill] sm:$0xff] %v5993_v47  ;;  %v6002_v36 = vrot.slane %v3101_v8, %v4469_v41  ;;  %v6005_v6 = vrot.slane %v3102_v37, %v4469_v41  ;;  %v3167_v12 = vcombine.low %v3135_v4, %v3150_v31  ;;  %v3168_v43 = vcombine.high %v3135_v4, %v3150_v31 }
 0x244   : > { %v3194_v51 = vrot.slane %v5581_v40, %v4448_v24  ;;  %v3209_v29 = vrot.slane %v5587_v52, %v4448_v24  ;;  %v3201_v18 = vrot.slane %v3187_v10, %v4448_v24  ;;  %v3216_v48 = vrot.slane %v3202_v2, %v4448_v24 }
 0x245   : > { %6788 = vst [vmem:[#allocation113_spill] sm:$0xff] %v6002_v36  ;;  %6789 = vst [vmem:[#allocation114_spill] sm:$0xff] %v6005_v6  ;;  %v3253_v39 = vcombine.high %v5593_v32, %v6764_v38  ;;  %v3268_v8 = vcombine.high %v5599_v30, %v6764_v38  ;;  %v6018_v37 = vrot.slane %v3151_v58, %v4469_v41 }
 0x246   : > { %v6021_v4 = vrot.slane %v3152_v56, %v4469_v41  ;;  %v3260_v40 = vrot.slane %v5593_v32, %v4448_v24  ;;  %v3275_v52 = vrot.slane %v5599_v30, %v4448_v24  ;;  %v6029_v31 = vcombine.high %v5978_v25, %v6764_v38 }
 0x247   : > { %v6033_v10 = vcombine.high %v5981_v44, %v6764_v38  ;;  %v6037_v2 = vcombine.high %v5996_v14, %v6764_v38  ;;  %v6041_v58 = vcombine.high %v5999_v27, %v6764_v38  ;;  %v6045_v32 = vcombine.high %v6002_v36, %v6764_v38 }
 0x248   : > { %6790 = vst [vmem:[#allocation115_spill] sm:$0xff] %v6029_v31  ;;  %v6049_v30 = vcombine.high %v6005_v6, %v6764_v38  ;;  %v3217_v56 = vcombine.low %v3194_v51, %v3209_v29  ;;  %v3218_v31 = vcombine.high %v3194_v51, %v3209_v29  ;;  %v3233_v44 = vcombine.low %v3201_v18, %v3216_v48 }
 0x249   : > { %6791 = vst [vmem:[#allocation116_spill] sm:$0xff] %v6033_v10  ;;  %6792 = vst [vmem:[#allocation117_spill] sm:$0xff] %v6041_v58  ;;  %v6052_v10 = vrot.slane %v3167_v12, %v4469_v41  ;;  %v3267_v25 = vrot.slane %v3253_v39, %v4448_v24  ;;  %v3282_v47 = vrot.slane %v3268_v8, %v4448_v24 }
 0x24a   : > { %6793 = vst [vmem:[#allocation118_spill] sm:$0xff] %v6045_v32  ;;  %6794 = vst [vmem:[#allocation119_spill] sm:$0xff] %v6049_v30  ;;  %v6057_v58 = vrot.slane %v3168_v43, %v4469_v41  ;;  %v6061_v32 = vcombine.high %v6018_v37, %v6764_v38  ;;  %v6065_v30 = vcombine.high %v6021_v4, %v6764_v38  ;;  %v3451_v43 = vsel %vm6797_vm2, %v5628_v59, 0.0 }
 0x24b   : > { %v3283_v51 = vcombine.low %v3260_v40, %v3275_v52  ;;  %v3234_v29 = vcombine.high %v3201_v18, %v3216_v48  ;;  %v3319_v12 = vcombine.high %v5605_v49, %v6764_v38  ;;  %v6071_v39 = vrot.slane %v5605_v49, %v4448_v24  ;;  %vm6817_vm2 = vmmov %vm6816_vm0 }
 0x24c   : > { %6795 = vst [vmem:[#allocation120_spill] sm:$0xff] %v6057_v58  ;;  %6796 = vst [vmem:[#allocation121_spill] sm:$0xff] %v6065_v30  ;;  %v6076_v8 = vrot.slane %v3217_v56, %v4469_v41  ;;  %v6079_v58 = vrot.slane %v3218_v31, %v4469_v41  ;;  %v3284_v6 = vcombine.high %v3260_v40, %v3275_v52  ;;  %v3452_v18 = vsel %vm6798_vm3, %v5648_v5, 0.0 }
 0x24d   : > { %v6084_v48 = vrot.slane %v3233_v44, %v4469_v41  ;;  %v3299_v36 = vcombine.low %v3267_v25, %v3282_v47  ;;  %v3300_v30 = vcombine.high %v3267_v25, %v3282_v47  ;;  %v3454_v49 = vsel %vm6799_vm5, %v5692_v7, 0.0  ;;  %vm6818_vm3 = vmmov %vm6816_vm0 }
 0x24e   : > { %v6089_v59 = vrot.slane %v3283_v51, %v4469_v41  ;;  %v3334_v56 = vcombine.high %v5611_v33, %v6764_v38  ;;  %v3341_v40 = vrot.slane %v5611_v33, %v4448_v24  ;;  %v3453_v52 = vadd.f32 %v3452_v18, %v3451_v43  ;;  %vm6819_vm5 = vmmov %vm6816_vm0 }
 0x24f   : > { %v6097_v5 = vcombine.high %v6052_v10, %v6764_v38  ;;  %v6100_v44 = vrot.slane %v3234_v29, %v4469_v41  ;;  %v6103_v25 = vrot.slane %v3319_v12, %v4448_v24  ;;  %v3456_v7 = vsel %vm6801_vm7, %v5698_v55, 0.0  ;;  %vm6820_vm7 = vmmov %vm6816_vm0 }
 0x250   : > { %v6109_v47 = vcombine.high %v6076_v8, %v6764_v38  ;;  %v6113_v33 = vcombine.high %v6079_v58, %v6764_v38  ;;  %v6116_v31 = vrot.slane %v3284_v6, %v4469_v41  ;;  %v3455_v51 = vadd.f32 %v3454_v49, %v3453_v52 }
 0x251   : > { %6800 = vst [vmem:[#allocation122_spill] sm:$0xff] %v6100_v44  ;;  %v6120_v29 = vcombine.high %v6084_v48, %v6764_v38  ;;  %v6123_v12 = vrot.slane %v3299_v36, %v4469_v41  ;;  %v6126_v55 = vrot.slane %v3300_v30, %v4469_v41  ;;  %v3458_v43 = vsel %vm6804_vm12, %v5780_v45, 0.0  ;;  %vm6821_vm12 = vmmov %vm6816_vm0 }
 0x252   : > { %v6132_v18 = vcombine.high %v6089_v59, %v6764_v38  ;;  %v6135_v6 = vrot.slane %v3334_v56, %v4448_v24  ;;  %v3349_v49 = vcombine.low %v6071_v39, %v3341_v40  ;;  %v3457_v52 = vadd.f32 %v3456_v7, %v3455_v51 }
 0x253   : > { %6802 = vst [vmem:[#allocation123_spill] sm:$0xff] %v6120_v29  ;;  %6803 = vst [vmem:[#allocation124_spill] sm:$0xff] %v6126_v55  ;;  %v3460_v36 = vsel %vm6805_vm13, %v5818_v54, 0.0  ;;  %v3488_v30 = vsel %vm6806_vm14, %v5655_v34, 0.0  ;;  %v3489_v55 = vsel %vm6807_vm4, %v5685_v19, 0.0  ;;  %v3491_v45 = vsel %vm6808_vm9, %v5729_v50, 0.0 }
 0x254   : > { %v6148_v44 = vcombine.high %v6116_v31, %v6764_v38  ;;  %v3350_v56 = vcombine.high %v6071_v39, %v3341_v40  ;;  %v3459_v29 = vadd.f32 %v3458_v43, %v3457_v52  ;;  %v3490_v7 = vadd.f32 %v3489_v55, %v3488_v30  ;;  %vm6822_vm13 = vmmov %vm6816_vm0 }
 0x255   : > { %v6153_v54 = vcombine.high %v6123_v12, %v6764_v38  ;;  %v3385_v34 = vcombine.high %v5617_v16, %v6764_v38  ;;  %v3462_v19 = vsel %vm6810_vm1, %v5832_v42, 0.0  ;;  %v3493_v50 = vsel %vm6811_vm10, %v5743_v26, 0.0  ;;  %vm6823_vm14 = vmmov %vm6816_vm0 }
 0x256   : > { %v3392_v51 = vrot.slane %v5617_v16, %v4448_v24  ;;  %v3400_v39 = vcombine.high %v5623_v35, %v6764_v38  ;;  %v3461_v40 = vadd.f32 %v3460_v36, %v3459_v29  ;;  %v3492_v55 = vadd.f32 %v3491_v45, %v3490_v7  ;;  %vm6824_vm4 = vmmov %vm6816_vm0 }
 0x257   : > { %6809 = vst [vmem:[#allocation125_spill] sm:$0xff] %v6153_v54  ;;  %v6166_v43 = vrot.slane %v3349_v49, %v4469_v41  ;;  %v3365_v52 = vcombine.low %v6103_v25, %v6135_v6  ;;  %v3464_v42 = vsel %vm6812_vm11, %v5876_v53, 0.0  ;;  %v3495_v26 = vsel %vm6813_vm8, %v5799_v57, 0.0  ;;  %vm6825_vm9 = vmmov %vm6816_vm0 }
 0x258   : > { %v3463_v30 = vadd.f32 %v3462_v19, %v3461_v40  ;;  %v3494_v54 = vadd.f32 %v3493_v50, %v3492_v55  ;;  %v3525_v16 = vsel %vm6814_vm6, %v5631_v17, 0.0  ;;  %v3526_v29 = vsel %vm6815_vm15, %v5651_v13, 0.0  ;;  %vm6826_vm1 = vmmov %vm6816_vm0 }
 0x259   : > { %v3407_v49 = vrot.slane %v5623_v35, %v4448_v24  ;;  %v3497_v36 = vsel %vm6816_vm0, %v5843_v23, 0.0  ;;  %v3527_v45 = vadd.f32 %v3526_v29, %v3525_v16  ;;  %v3528_v53 = vsel %vm6817_vm2, %v5695_v15, 0.0  ;;  %vm6827_vm10 = vmmov %vm6816_vm0 }
 0x25a   : > { %v6185_v57 = vrot.slane %v3385_v34, %v4448_v24  ;;  %v6188_v7 = vrot.slane %v3400_v39, %v4448_v24  ;;  %v3496_v17 = vadd.f32 %v3495_v26, %v3494_v54  ;;  %v3530_v13 = vsel %vm6818_vm3, %v5701_v9, 0.0  ;;  %vm6828_vm11 = vmmov %vm6816_vm0 }
 0x25b   : > { %v6193_v19 = vrot.slane %v3350_v56, %v4469_v41  ;;  %v3366_v35 = vcombine.high %v6103_v25, %v6135_v6  ;;  %v3465_v23 = vadd.f32 %v3464_v42, %v3463_v30  ;;  %v3529_v50 = vadd.f32 %v3528_v53, %v3527_v45  ;;  %vm6830_vm8 = vmmov %vm6816_vm0  ;;  %v6831_v53 = vld [vmem:[#allocation96_spill] sm:$0xff]  ;;  %v6970_v25 = vld [vmem:[#allocation109_spill] sm:$0xff] }
 0x25c   : > { %v6198_v15 = vrot.slane %v3365_v52, %v4469_v41  ;;  %v3466_v34 = vsel %vm6819_vm5, %v5918_v63, 0.0  ;;  %v3498_v24 = vadd.f32 %v3497_v36, %v3496_v17  ;;  %v3532_v54 = vsel %vm6820_vm7, %v5783_v20, 0.0  ;;  %vm6832_vm6 = vmmov %vm6816_vm0 }
 0x25d   : > { %v6206_v9 = vcombine.high %v6166_v43, %v6764_v38  ;;  %v3415_v56 = vcombine.low %v3392_v51, %v3407_v49  ;;  %v3499_v39 = vsel %vm6821_vm12, %v5869_v3, 0.0  ;;  %v3531_v40 = vadd.f32 %v3530_v13, %v3529_v50  ;;  %vm6834_vm15 = vmmov %vm6816_vm0 }
 0x25e   : > { %v3416_v55 = vcombine.high %v3392_v51, %v3407_v49  ;;  %v3431_v52 = vcombine.low %v6185_v57, %v6188_v7  ;;  %v3534_v63 = vsel %vm6822_vm13, %v5821_v60, 0.0  ;;  %v3562_v42 = vsel %vm6823_vm14, %v5659_v21, 0.0  ;;  %vm6836_vm2 = vmmov %vm6816_vm0 }
 0x25f   : > { %v3467_v20 = vadd.f32 %v3466_v34, %v3465_v23  ;;  %v3533_v26 = vadd.f32 %v3532_v54, %v3531_v40  ;;  %v3563_v30 = vsel %vm6824_vm4, %v5689_v46, 0.0  ;;  %v3565_v16 = vsel %vm6825_vm9, %v5733_v0, 0.0  ;;  %v6829_v46 = vld [vmem:[#allocation78_spill] sm:$0xff]  ;;  %vm6837_vm3 = vmmov %vm6816_vm0 }
 0x260   : > { %v3468_v3 = vsel %vm6826_vm1, %v5958_v61, 0.0  ;;  %v3500_v51 = vadd.f32 %v3499_v39, %v3498_v24  ;;  %v3536_v29 = vsel %vm6827_vm10, %v5835_v1, 0.0  ;;  %v3564_v49 = vadd.f32 %v3563_v30, %v3562_v42  ;;  %v6835_v40 = vld [vmem:[#allocation106_spill] sm:$0xff]  ;;  %vm6839_vm5 = vmmov %vm6816_vm0 }
 0x261   : > { %v6226_v60 = vcombine.high %v6193_v19, %v6764_v38  ;;  %v3501_v21 = vsel %vm6828_vm11, %v5911_v11, 0.0  ;;  %v3535_v36 = vadd.f32 %v3534_v63, %v3533_v26  ;;  %v3567_v45 = vsel %vm6830_vm8, %v6829_v46, 0.0  ;;  %v6833_v11 = vld [vmem:[#allocation85_spill] sm:$0xff]  ;;  %vm6840_vm7 = vmmov %vm6816_vm0 }
 0x262   : > { %v6234_v0 = vcombine.high %v6198_v15, %v6764_v38  ;;  %v3423_v61 = vrot.slane %v3415_v56, %v4469_v41  ;;  %v3538_v1 = vsel %vm6832_vm6, %v6831_v53, 0.0  ;;  %v3566_v17 = vadd.f32 %v3565_v16, %v3564_v49  ;;  %vm6842_vm12 = vmmov %vm6816_vm0 }
 0x263   : > { %v6240_v13 = vrot.slane %v3416_v55, %v4469_v41  ;;  %v3469_v23 = vadd.f32 %v3468_v3, %v3467_v20  ;;  %v3537_v50 = vadd.f32 %v3536_v29, %v3535_v36  ;;  %v3569_v34 = vsel %vm6834_vm15, %v6833_v11, 0.0  ;;  %v6838_v20 = vld [vmem:[#allocation90_spill] sm:$0xff]  ;;  %v6843_v29 = vld [vmem:[#allocation95_spill] sm:$0xff]  ;;  %vm6844_vm13 = vmmov %vm6816_vm0 }
 0x264   : > { %v6245_v24 = vrot.slane %v3431_v52, %v4469_v41  ;;  %v3470_v54 = vsel %vm6816_vm0, %v5996_v14, 0.0  ;;  %v3502_v39 = vadd.f32 %v3501_v21, %v3500_v51  ;;  %v3568_v56 = vadd.f32 %v3567_v45, %v3566_v17  ;;  %v6841_v14 = vld [vmem:[#allocation66_spill] sm:$0xff]  ;;  %v6845_v21 = vld [vmem:[#allocation68_spill] sm:$0xff]  ;;  %vm6846_vm14 = vmmov %vm6816_vm0 }
 0x265   : > { %v3503_v63 = vsel %vm6836_vm2, %v6835_v40, 0.0  ;;  %v3539_v42 = vadd.f32 %v3538_v1, %v3537_v50  ;;  %v3540_v55 = vsel %vm6837_vm3, %v5921_v28, 0.0  ;;  %v3571_v26 = vsel %vm6839_vm5, %v6838_v20, 0.0  ;;  %v6847_v36 = vld [vmem:[#allocation74_spill] sm:$0xff]  ;;  %vm6848_vm4 = vmmov %vm6816_vm0  ;;  %v6858_v20 = vld [vmem:[#allocation83_spill] sm:$0xff] }
 0x266   : > { %v6256_v30 = vcombine.high %v3423_v61, %v6764_v38  ;;  %v3472_v52 = vsel %vm6840_vm7, %v6018_v37, 0.0  ;;  %v3570_v16 = vadd.f32 %v3569_v34, %v3568_v56  ;;  %v3599_v3 = vsel %vm6842_vm12, %v6841_v14, 0.0  ;;  %vm6849_vm9 = vmmov %vm6816_vm0  ;;  %v6853_v34 = vld [vmem:[#allocation76_spill] sm:$0xff] }
 0x267   : > { %v3471_v51 = vadd.f32 %v3470_v54, %v3469_v23  ;;  %v3573_v49 = vsel %vm6844_vm13, %v6843_v29, 0.0  ;;  %v3600_v28 = vsel %vm6846_vm14, %v6845_v21, 0.0  ;;  %v3602_v46 = vsel %vm6848_vm4, %v6847_v36, 0.0  ;;  %vm6850_vm1 = vmmov %vm6816_vm0  ;;  %v6851_v23 = vld [vmem:[#allocation101_spill] sm:$0xff] }
 0x268   : > { %v3504_v45 = vadd.f32 %v3503_v63, %v3502_v39  ;;  %v3541_v53 = vadd.f32 %v3540_v55, %v3539_v42  ;;  %v3572_v1 = vadd.f32 %v3571_v26, %v3570_v16  ;;  %v3601_v17 = vadd.f32 %v3600_v28, %v3599_v3  ;;  %vm6852_vm10 = vmmov %vm6816_vm0  ;;  %v6856_v42 = vld [vmem:[#allocation107_spill] sm:$0xff] }
 0x269   : > { %v3505_v37 = vsel %vm6849_vm9, %v5989_v22, 0.0  ;;  %v3542_v50 = vsel %vm6850_vm1, %v5961_v62, 0.0  ;;  %v3575_v11 = vsel %vm6852_vm10, %v6851_v23, 0.0  ;;  %vm6854_vm11 = vmmov %vm6816_vm0  ;;  %v6278_v56 = vcombine.high %v6240_v13, %v6764_v38 }
 0x26a   : > { %v3604_v54 = vsel %vm6854_vm11, %v6853_v34, 0.0  ;;  %v6282_v39 = vcombine.high %v6245_v24, %v6764_v38  ;;  %v3574_v40 = vadd.f32 %v3573_v49, %v3572_v1  ;;  %v3603_v63 = vadd.f32 %v3602_v46, %v3601_v17  ;;  %vm6855_vm8 = vmmov %vm6816_vm0  ;;  %v6867_v1 = vld [vmem:[#allocation112_spill] sm:$0xff]  ;;  %v6869_v17 = vld [vmem:[#allocation93_spill] sm:$0xff] }
 0x26b   : > { %v3473_v22 = vadd.f32 %v3472_v52, %v3471_v51  ;;  %v3474_v62 = vsel %vm6855_vm8, %v6076_v8, 0.0  ;;  %vm6857_vm6 = vmmov %vm6816_vm0  ;;  %v3506_v16 = vadd.f32 %v3505_v37, %v3504_v45  ;;  %v3543_v14 = vadd.f32 %v3542_v50, %v3541_v53  ;;  %v6862_v8 = vld [vmem:[#allocation88_spill] sm:$0xff] }
 0x26c   : > { %v3577_v55 = vsel %vm6857_vm6, %v6856_v42, 0.0  ;;  %vm6859_vm15 = vmmov %vm6816_vm0  ;;  %v3576_v3 = vadd.f32 %v3575_v11, %v3574_v40  ;;  %v3605_v29 = vadd.f32 %v3604_v54, %v3603_v63  ;;  %v3476_v21 = vsel %vm6816_vm0, %v6089_v59, 0.0  ;;  %v6873_v11 = vld [vmem:[#allocation97_spill] sm:$0xff]  ;;  %v6875_v54 = vld [vmem:[#allocation70_spill] sm:$0xff] }
 0x26d   : > { %v3606_v26 = vsel %vm6859_vm15, %v6858_v20, 0.0  ;;  %vm6860_vm2 = vmmov %vm6816_vm0  ;;  %v3475_v53 = vadd.f32 %v3474_v62, %v3473_v22  ;;  %v6877_v40 = vld [vmem:[#allocation72_spill] sm:$0xff] }
 0x26e   : > { %v3507_v49 = vsel %vm6860_vm2, %v6037_v2, 0.0  ;;  %vm6861_vm3 = vmmov %vm6816_vm0  ;;  %v3578_v46 = vadd.f32 %v3577_v55, %v3576_v3  ;;  %v3607_v45 = vadd.f32 %v3606_v26, %v3605_v29  ;;  %v6882_v26 = vld [vmem:[#allocation117_spill] sm:$0xff] }
 0x26f   : > { %v3544_v52 = vsel %vm6861_vm3, %v5999_v27, 0.0  ;;  %vm6863_vm5 = vmmov %vm6816_vm0  ;;  %v3508_v37 = vadd.f32 %v3507_v49, %v3506_v16  ;;  %v3477_v20 = vadd.f32 %v3476_v21, %v3475_v53  ;;  %v6883_v16 = vld [vmem:[#allocation104_spill] sm:$0xff]  ;;  %v6889_v21 = vld [vmem:[#allocation110_spill] sm:$0xff] }
 0x270   : > { %v3608_v51 = vsel %vm6863_vm5, %v6862_v8, 0.0  ;;  %vm6864_vm7 = vmmov %vm6816_vm0  ;;  %v3545_v23 = vadd.f32 %v3544_v52, %v3543_v14  ;;  %v6885_v8 = vld [vmem:[#allocation81_spill] sm:$0xff] }
 0x271   : > { %v3478_v28 = vsel %vm6864_vm7, %v6166_v43, 0.0  ;;  %vm6865_vm12 = vmmov %vm6816_vm0  ;;  %v3609_v43 = vadd.f32 %v3608_v51, %v3607_v45 }
 0x272   : > { %v3480_v36 = vsel %vm6865_vm12, %v3423_v61, 0.0  ;;  %vm6866_vm13 = vmmov %vm6816_vm0 }
 0x273   : > { %v3509_v59 = vsel %vm6866_vm13, %v6061_v32, 0.0  ;;  %vm6868_vm14 = vmmov %vm6816_vm0 }
 0x274   : > { %v3579_v2 = vsel %vm6868_vm14, %v6867_v1, 0.0  ;;  %vm6870_vm4 = vmmov %vm6816_vm0  ;;  %v3510_v29 = vadd.f32 %v3509_v59, %v3508_v37  ;;  %v3479_v37 = vadd.f32 %v3478_v28, %v3477_v20 }
 0x275   : > { %v3610_v27 = vsel %vm6870_vm4, %v6869_v17, 0.0  ;;  %vm6871_vm9 = vmmov %vm6816_vm0  ;;  %v3580_v62 = vadd.f32 %v3579_v2, %v3578_v46  ;;  %v6892_v17 = vld [vmem:[#allocation86_spill] sm:$0xff] }
 0x276   : > { %v3511_v50 = vsel %vm6871_vm9, %v6109_v47, 0.0  ;;  %vm6872_vm1 = vmmov %vm6816_vm0  ;;  %v3611_v42 = vadd.f32 %v3610_v27, %v3609_v43  ;;  %v6880_v47 = vld [vmem:[#allocation79_spill] sm:$0xff] }
 0x277   : > { %v3546_v61 = vsel %vm6872_vm1, %v6021_v4, 0.0  ;;  %vm6874_vm10 = vmmov %vm6816_vm0  ;;  %v3581_v4 = vsel %vm6816_vm0, %v6882_v26, 0.0  ;;  %v3481_v26 = vadd.f32 %v3480_v36, %v3479_v37 }
 0x278   : > { %v3612_v34 = vsel %vm6874_vm10, %v6873_v11, 0.0  ;;  %vm6876_vm11 = vmmov %vm6816_vm0  ;;  %v3547_v49 = vadd.f32 %v3546_v61, %v3545_v23  ;;  %v3582_v2 = vadd.f32 %v3581_v4, %v3580_v62  ;;  %v6894_v23 = vld [vmem:[#allocation121_spill] sm:$0xff]  ;;  %v3512_v11 = vadd.f32 %v3511_v50, %v3510_v29 }
 0x279   : > { %v3636_v32 = vsel %vm6876_vm11, %v6875_v54, 0.0  ;;  %vm6878_vm8 = vmmov %vm6816_vm0  ;;  %v3613_v52 = vadd.f32 %v3612_v34, %v3611_v42  ;;  %v3585_v4 = vsel %vm6816_vm0, %v6113_v33, 0.0 }
 0x27a   : > { %v3637_v63 = vsel %vm6878_vm8, %v6877_v40, 0.0  ;;  %vm6879_vm6 = vmmov %vm6816_vm0 }
 0x27b   : > { %v3513_v22 = vsel %vm6879_vm6, %v6132_v18, 0.0  ;;  %vm6881_vm15 = vmmov %vm6816_vm0  ;;  %v3638_v3 = vadd.f32 %v3637_v63, %v3636_v32  ;;  %v6898_v32 = vld [vmem:[#allocation91_spill] sm:$0xff] }
 0x27c   : > { %v3639_v55 = vsel %vm6881_vm15, %v6880_v47, 0.0  ;;  %vm6884_vm2 = vmmov %vm6816_vm0 }
 0x27d   : > { %v3614_v14 = vsel %vm6884_vm2, %v6883_v16, 0.0  ;;  %vm6886_vm3 = vmmov %vm6816_vm0  ;;  %v3640_v53 = vadd.f32 %v3639_v55, %v3638_v3  ;;  %v6904_v55 = vld [vmem:[#allocation99_spill] sm:$0xff]  ;;  %v3514_v16 = vadd.f32 %v3513_v22, %v3512_v11  ;;  %v6908_v3 = vld [vmem:[#allocation102_spill] sm:$0xff] }
 0x27e   : > { %v3641_v51 = vsel %vm6886_vm3, %v6885_v8, 0.0  ;;  %vm6887_vm5 = vmmov %vm6816_vm0  ;;  %v3615_v59 = vadd.f32 %v3614_v14, %v3613_v52  ;;  %v6910_v52 = vld [vmem:[#allocation67_spill] sm:$0xff]  ;;  %v6912_v8 = vld [vmem:[#allocation69_spill] sm:$0xff] }
 0x27f   : > { %v3515_v18 = vsel %vm6887_vm5, %v6206_v9, 0.0  ;;  %vm6888_vm7 = vmmov %vm6816_vm0  ;;  %v6896_v9 = vld [vmem:[#allocation113_spill] sm:$0xff] }
 0x280   : > { %v3548_v46 = vsel %vm6888_vm7, %v6079_v58, 0.0  ;;  %vm6890_vm12 = vmmov %vm6816_vm0  ;;  %v3642_v58 = vadd.f32 %v3641_v51, %v3640_v53 }
 0x281   : > { %v3616_v45 = vsel %vm6890_vm12, %v6889_v21, 0.0  ;;  %vm6891_vm13 = vmmov %vm6816_vm0  ;;  %v3549_v34 = vadd.f32 %v3548_v46, %v3547_v49  ;;  %v6914_v46 = vld [vmem:[#allocation108_spill] sm:$0xff]  ;;  %v6916_v21 = vld [vmem:[#allocation75_spill] sm:$0xff] }
 0x282   : > { %v3517_v1 = vsel %vm6891_vm13, %v6256_v30, 0.0  ;;  %vm6893_vm14 = vmmov %vm6816_vm0  ;;  %v3617_v54 = vadd.f32 %v3616_v45, %v3615_v59  ;;  %v6919_v59 = vld [vmem:[#allocation77_spill] sm:$0xff] }
 0x283   : > { %v3643_v27 = vsel %vm6893_vm14, %v6892_v17, 0.0  ;;  %vm6895_vm4 = vmmov %vm6816_vm0 }
 0x284   : > { %v3583_v43 = vsel %vm6895_vm4, %v6894_v23, 0.0  ;;  %vm6897_vm9 = vmmov %vm6816_vm0  ;;  %v3644_v62 = vadd.f32 %v3643_v27, %v3642_v58  ;;  %v3516_v27 = vadd.f32 %v3515_v18, %v3514_v16  ;;  %v6922_v23 = vld [vmem:[#allocation115_spill] sm:$0xff] }
 0x285   : > { %v3618_v61 = vsel %vm6897_vm9, %v6896_v9, 0.0  ;;  %vm6899_vm1 = vmmov %vm6816_vm0  ;;  %v3584_v42 = vadd.f32 %v3583_v43, %v3582_v2 }
 0x286   : > { %v3645_v40 = vsel %vm6899_vm1, %v6898_v32, 0.0  ;;  %vm6900_vm10 = vmmov %vm6816_vm0  ;;  %v3619_v47 = vadd.f32 %v3618_v61, %v3617_v54 }
 0x287   : > { %v3550_v30 = vsel %vm6900_vm10, %v6116_v31, 0.0  ;;  %vm6901_vm11 = vmmov %vm6816_vm0  ;;  %v3586_v51 = vadd.f32 %v3585_v4, %v3584_v42 }
 0x288   : > { %v3552_v63 = vsel %vm6901_vm11, %v6193_v19, 0.0  ;;  %vm6902_vm8 = vmmov %vm6816_vm0  ;;  %v3646_v19 = vadd.f32 %v3645_v40, %v3644_v62  ;;  %v3551_v14 = vadd.f32 %v3550_v30, %v3549_v34  ;;  %v6924_v34 = vld [vmem:[#allocation84_spill] sm:$0xff]  ;;  %v6927_v40 = vld [vmem:[#allocation118_spill] sm:$0xff] }
 0x289   : > { %v3554_v28 = vsel %vm6902_vm8, %v6240_v13, 0.0  ;;  %vm6903_vm6 = vmmov %vm6816_vm0 }
 0x28a   : > { %v3620_v50 = vsel %vm6903_vm6, %v6052_v10, 0.0  ;;  %vm6905_vm15 = vmmov %vm6816_vm0  ;;  %v3553_v61 = vadd.f32 %v3552_v63, %v3551_v14  ;;  %v6930_v63 = vld [vmem:[#allocation89_spill] sm:$0xff] }
 0x28b   : > { %v3647_v20 = vsel %vm6905_vm15, %v6904_v55, 0.0  ;;  %vm6906_vm2 = vmmov %vm6816_vm0  ;;  %v3621_v10 = vadd.f32 %v3620_v50, %v3619_v47  ;;  %v3682_v47 = vsel %vm6816_vm0, %v6930_v63, 0.0  ;;  %v3518_v50 = vadd.f32 %v3517_v1, %v3516_v27 }
 0x28c   : > { %v3587_v31 = vsel %vm6906_vm2, %v6148_v44, 0.0  ;;  %vm6907_vm3 = vmmov %vm6816_vm0  ;;  %v3648_v49 = vadd.f32 %v3647_v20, %v3646_v19  ;;  %v3555_v4 = vadd.f32 %v3554_v28, %v3553_v61  ;;  %v6952_v61 = vld [vmem:[#allocation111_spill] sm:$0xff]  ;;  %v3432_v63 = vcombine.high %v6185_v57, %v6188_v7 }
 0x28d   : > { %v3622_v13 = vsel %vm6907_vm3, %v6084_v48, 0.0  ;;  %vm6909_vm5 = vmmov %vm6816_vm0  ;;  %v3482_v48 = vrot.slane %v3481_v26, 4  ;;  %v3588_v32 = vadd.f32 %v3587_v31, %v3586_v51  ;;  %v3380_v57 = vrot.slane %v3366_v35, %v4469_v41 }
 0x28e   : > { %v3649_v29 = vsel %vm6909_vm5, %v6908_v3, 0.0  ;;  %vm6911_vm7 = vmmov %vm6816_vm0  ;;  %v3623_v58 = vadd.f32 %v3622_v13, %v3621_v10 }
 0x28f   : > { %v3673_v36 = vsel %vm6911_vm7, %v6910_v52, 0.0  ;;  %vm6913_vm12 = vmmov %vm6816_vm0  ;;  %v3650_v2 = vadd.f32 %v3649_v29, %v3648_v49  ;;  %v6383_v62 = vadd.f32 %v3482_v48, %v3481_v26  ;;  %v6933_v26 = vld [vmem:[#allocation94_spill] sm:$0xff]  ;;  %v6937_v29 = vld [vmem:[#allocation71_spill] sm:$0xff] }
 0x290   : > { %v3674_v33 = vsel %vm6913_vm12, %v6912_v8, 0.0  ;;  %vm6915_vm13 = vmmov %vm6816_vm0  ;;  %v6943_v52 = vld [vmem:[#allocation80_spill] sm:$0xff]  ;;  %v3519_v8 = vrot.slane %v3518_v50, 4 }
 0x291   : > { %v3651_v44 = vsel %vm6915_vm13, %v6914_v46, 0.0  ;;  %v3675_v22 = vadd.f32 %v3674_v33, %v3673_v36  ;;  %vm6917_vm14 = vmmov %vm6816_vm0  ;;  %v6945_v33 = vld [vmem:[#allocation125_spill] sm:$0xff] }
 0x292   : > { %v3676_v45 = vsel %vm6917_vm14, %v6916_v21, 0.0  ;;  %vm6918_vm4 = vmmov %vm6816_vm0  ;;  %v3652_v11 = vadd.f32 %v3651_v44, %v3650_v2 }
 0x293   : > { %v3589_v53 = vsel %vm6918_vm4, %v6226_v60, 0.0  ;;  %vm6920_vm9 = vmmov %vm6816_vm0  ;;  %v3677_v9 = vadd.f32 %v3676_v45, %v3675_v22  ;;  %v6947_v45 = vld [vmem:[#allocation105_spill] sm:$0xff] }
 0x294   : > { %v3678_v17 = vsel %vm6920_vm9, %v6919_v59, 0.0  ;;  %vm6921_vm1 = vmmov %vm6816_vm0  ;;  %v3590_v14 = vadd.f32 %v3589_v53, %v3588_v32  ;;  %v6949_v53 = vld [vmem:[#allocation82_spill] sm:$0xff] }
 0x295   : > { %v3591_v37 = vsel %vm6921_vm1, %v6278_v56, 0.0  ;;  %vm6923_vm10 = vmmov %vm6816_vm0  ;;  %v3679_v30 = vadd.f32 %v3678_v17, %v3677_v9 }
 0x296   : > { %v3653_v43 = vsel %vm6923_vm10, %v6922_v23, 0.0  ;;  %vm6925_vm11 = vmmov %vm6816_vm0  ;;  %v3592_v59 = vadd.f32 %v3591_v37, %v3590_v14 }
 0x297   : > { %v3680_v54 = vsel %vm6925_vm11, %v6924_v34, 0.0  ;;  %vm6926_vm8 = vmmov %vm6816_vm0  ;;  %v3654_v42 = vadd.f32 %v3653_v43, %v3652_v11  ;;  %v3556_v43 = vrot.slane %v3555_v4, 4  ;;  %v6954_v11 = vld [vmem:[#allocation87_spill] sm:$0xff] }
 0x298   : > { %v3624_v60 = vsel %vm6926_vm8, %v6123_v12, 0.0  ;;  %vm6928_vm6 = vmmov %vm6816_vm0  ;;  %v3681_v20 = vadd.f32 %v3680_v54, %v3679_v30  ;;  %v3520_v54 = vadd.f32 %v3519_v8, %v3518_v50  ;;  %v6957_v30 = vld [vmem:[#allocation114_spill] sm:$0xff]  ;;  %v3484_v50 = vrot.slane %v6383_v62, 2 }
 0x299   : > { %v3655_v18 = vsel %vm6928_vm6, %v6927_v40, 0.0  ;;  %vm6929_vm15 = vmmov %vm6816_vm0  ;;  %v3625_v31 = vadd.f32 %v3624_v60, %v3623_v58 }
 0x29a   : > { %v3626_v56 = vsel %vm6929_vm15, %v6198_v15, 0.0  ;;  %vm6931_vm2 = vmmov %vm6816_vm0  ;;  %v3656_v19 = vadd.f32 %v3655_v18, %v3654_v42  ;;  %v6935_v15 = vld [vmem:[#allocation123_spill] sm:$0xff]  ;;  %v3683_v3 = vadd.f32 %v3682_v47, %v3681_v20  ;;  %v3593_v47 = vrot.slane %v3592_v59, 4 }
 0x29b   : > { %v3628_v55 = vsel %vm6931_vm2, %v6245_v24, 0.0  ;;  %vm6932_vm3 = vmmov %vm6816_vm0  ;;  %v6939_v24 = vld [vmem:[#allocation98_spill] sm:$0xff]  ;;  %v3627_v22 = vadd.f32 %v3626_v56, %v3625_v31  ;;  %v6958_v56 = vld [vmem:[#allocation92_spill] sm:$0xff]  ;;  %v3557_v31 = vadd.f32 %v3556_v43, %v3555_v4 }
 0x29c   : > { %v3657_v12 = vsel %vm6932_vm3, %v6097_v5, 0.0  ;;  %vm6934_vm5 = vmmov %vm6816_vm0  ;;  %v6941_v5 = vld [vmem:[#allocation73_spill] sm:$0xff]  ;;  %v6966_v4 = vld [vmem:[#allocation103_spill] sm:$0xff] }
 0x29d   : > { %v3684_v16 = vsel %vm6934_vm5, %v6933_v26, 0.0  ;;  %vm6936_vm7 = vmmov %vm6816_vm0  ;;  %v3658_v10 = vadd.f32 %v3657_v12, %v3656_v19  ;;  %v3629_v37 = vadd.f32 %v3628_v55, %v3627_v22  ;;  %v6962_v55 = vld [vmem:[#allocation100_spill] sm:$0xff] }
 0x29e   : > { %v3659_v13 = vsel %vm6936_vm7, %v6935_v15, 0.0  ;;  %vm6938_vm12 = vmmov %vm6816_vm0  ;;  %v3685_v46 = vadd.f32 %v3684_v16, %v3683_v3  ;;  %v3521_v16 = vrot.slane %v3520_v54, 2  ;;  %v6964_v3 = vld [vmem:[#allocation122_spill] sm:$0xff] }
 0x29f   : > { %v3710_v1 = vsel %vm6938_vm12, %v6937_v29, 0.0  ;;  %vm6940_vm13 = vmmov %vm6816_vm0  ;;  %v3660_v21 = vadd.f32 %v3659_v13, %v3658_v10  ;;  %v3630_v7 = vrot.slane %v3629_v37, 4  ;;  %v3446_v10 = vrot.slane %v3432_v63, %v4469_v41 }
 0x2a0   : > { %v3686_v49 = vsel %vm6940_vm13, %v6939_v24, 0.0  ;;  %vm6942_vm14 = vmmov %vm6816_vm0  ;;  %v3594_v24 = vadd.f32 %v3593_v47, %v3592_v59  ;;  %v3522_v35 = vadd.f32 %v3521_v16, %v3520_v54 }
 0x2a1   : > { %v3711_v28 = vsel %vm6942_vm14, %v6941_v5, 0.0  ;;  %vm6944_vm4 = vmmov %vm6816_vm0  ;;  %v3687_v27 = vadd.f32 %v3686_v49, %v3685_v46  ;;  %v3631_v41 = vadd.f32 %v3630_v7, %v3629_v37 }
 0x2a2   : > { %v3713_v36 = vsel %vm6944_vm4, %v6943_v52, 0.0  ;;  %vm6946_vm9 = vmmov %vm6816_vm0  ;;  %v3712_v44 = vadd.f32 %v3711_v28, %v3710_v1  ;;  %v3485_v28 = vadd.f32 %v3484_v50, %v6383_v62  ;;  %v3558_v52 = vrot.slane %v3557_v31, 2 }
 0x2a3   : > { %v3661_v51 = vsel %vm6946_vm9, %v6945_v33, 0.0  ;;  %vm6948_vm1 = vmmov %vm6816_vm0  ;;  %v3632_v54 = vrot.slane %v3631_v41, 2 }
 0x2a4   : > { %v3688_v48 = vsel %vm6948_vm1, %v6947_v45, 0.0  ;;  %vm6950_vm10 = vmmov %vm6816_vm0  ;;  %v3714_v23 = vadd.f32 %v3713_v36, %v3712_v44  ;;  %v3662_v9 = vadd.f32 %v3661_v51, %v3660_v21  ;;  %v6968_v36 = vld [vmem:[#allocation124_spill] sm:$0xff]  ;;  %v3252_v45 = vcombine.high %v6964_v3, %v6764_v38 }
 0x2a5   : > { %v3715_v2 = vsel %vm6950_vm10, %v6949_v53, 0.0  ;;  %vm6951_vm11 = vmmov %vm6816_vm0  ;;  %v3689_v60 = vadd.f32 %v3688_v48, %v3687_v27  ;;  %v6973_v21 = vld [vmem:[#allocation116_spill] sm:$0xff]  ;;  %v3595_v48 = vrot.slane %v3594_v24, 2  ;;  %v3486_v59 = vrot.slane %v3485_v28, 1 }
 0x2a6   : > { %v3663_v17 = vsel %vm6951_vm11, %v6234_v0, 0.0  ;;  %vm6953_vm8 = vmmov %vm6816_vm0  ;;  %v3716_v40 = vadd.f32 %v3715_v2, %v3714_v23  ;;  %v3692_v0 = vsel %vm6816_vm0, %v6957_v30, 0.0  ;;  %v6976_v23 = vld [vmem:[#allocation119_spill] sm:$0xff]  ;;  %v3633_v50 = vadd.f32 %v3632_v54, %v3631_v41 }
 0x2a7   : > { %v3690_v58 = vsel %vm6953_vm8, %v6952_v61, 0.0  ;;  %vm6955_vm6 = vmmov %vm6816_vm0  ;;  %v3664_v18 = vadd.f32 %v3663_v17, %v3662_v9  ;;  %v3559_v17 = vadd.f32 %v3558_v52, %v3557_v31  ;;  %v3523_v9 = vrot.slane %v3522_v35, 1  ;;  %v2330_v41 = vld [vmem:[%s4323_s14] sm:$0xff] }
 0x2a8   : > { %v3717_v34 = vsel %vm6955_vm6, %v6954_v11, 0.0  ;;  %vm6956_vm15 = vmmov %vm6816_vm0  ;;  %v3691_v12 = vadd.f32 %v3690_v58, %v3689_v60  ;;  %v3596_v60 = vadd.f32 %v3595_v48, %v3594_v24  ;;  %v3487_v30 = vadd.f32 %v3486_v59, %v3485_v28 }
 0x2a9   : > { %v3665_v32 = vsel %vm6956_vm15, %v6282_v39, 0.0  ;;  %vm6959_vm2 = vmmov %vm6816_vm0  ;;  %v3718_v20 = vadd.f32 %v3717_v34, %v3716_v40  ;;  %v6960_v39 = vld [vmem:[#allocation120_spill] sm:$0xff]  ;;  %v3318_v34 = vcombine.high %v6968_v36, %v6764_v38  ;;  %v3634_v7 = vrot.slane %v3633_v50, 1 }
 0x2aa   : > { %v3719_v42 = vsel %vm6959_vm2, %v6958_v56, 0.0  ;;  %vm6961_vm3 = vmmov %vm6816_vm0  ;;  %v3666_v14 = vadd.f32 %v3665_v32, %v3664_v18  ;;  %v3693_v15 = vadd.f32 %v3692_v0, %v3691_v12  ;;  %v3186_v44 = vcombine.high %v6960_v39, %v6764_v38 }
 0x2ab   : > { %v3694_v19 = vsel %vm6961_vm3, %v6960_v39, 0.0  ;;  %vm6963_vm5 = vmmov %vm6816_vm0  ;;  %v3720_v13 = vadd.f32 %v3719_v42, %v3718_v20  ;;  %v3384_v18 = vcombine.high %v3380_v57, %v6764_v38  ;;  %v3560_v0 = vrot.slane %v3559_v17, 1 }
 0x2ac   : > { %v3721_v26 = vsel %vm6963_vm5, %v6962_v55, 0.0  ;;  %vm6965_vm7 = vmmov %vm6816_vm0  ;;  %v3695_v49 = vadd.f32 %v3694_v19, %v3693_v15  ;;  %v3667_v33 = vrot.slane %v3666_v14, 4  ;;  %v3524_v42 = vadd.f32 %v3523_v9, %v3522_v35 }
 0x2ad   : > { %v3696_v29 = vsel %vm6965_vm7, %v6964_v3, 0.0  ;;  %vm6967_vm12 = vmmov %vm6816_vm0  ;;  %v3722_v5 = vadd.f32 %v3721_v26, %v3720_v13  ;;  %v3450_v20 = vcombine.high %v3446_v10, %v6764_v38  ;;  %v3597_v39 = vrot.slane %v3596_v60, 1 }
 0x2ae   : > { %v3723_v1 = vsel %vm6967_vm12, %v6966_v4, 0.0  ;;  %vm6969_vm13 = vmmov %vm6816_vm0  ;;  %v3697_v51 = vadd.f32 %v3696_v29, %v3695_v49  ;;  %v3668_v61 = vadd.f32 %v3667_v33, %v3666_v14  ;;  %v3561_v26 = vadd.f32 %v3560_v0, %v3559_v17 }
 0x2af   : > { %v3698_v8 = vsel %vm6969_vm13, %v6968_v36, 0.0  ;;  %vm6971_vm14 = vmmov %vm6816_vm0  ;;  %v3724_v46 = vadd.f32 %v3723_v1, %v3722_v5  ;;  %v3598_v29 = vadd.f32 %v3597_v39, %v3596_v60  ;;  %vm6984_vm3 = vcmask 1042434  }
 0x2b0   : > { %v3725_v6 = vsel %vm6971_vm14, %v6970_v25, 0.0  ;;  %vm6972_vm4 = vmmov %vm6816_vm0  ;;  %v3699_v53 = vadd.f32 %v3698_v8, %v3697_v51  ;;  %v3669_v63 = vrot.slane %v3668_v61, 2  ;;  %v3635_v49 = vadd.f32 %v3634_v7, %v3633_v50 }
 0x2b1   : > { %v3700_v22 = vsel %vm6972_vm4, %v3380_v57, 0.0  ;;  %vm6974_vm9 = vmmov %vm6816_vm0  ;;  %v3726_v2 = vadd.f32 %v3725_v6, %v3724_v46  ;;  %vm6985_vm5 = vcmask 1043459   ;;  %vm6986_vm7 = vcmask 1044484  }
 0x2b2   : > { %v3727_v62 = vsel %vm6974_vm9, %v6973_v21, 0.0  ;;  %vm6975_vm1 = vmmov %vm6816_vm0  ;;  %v3701_v58 = vadd.f32 %v3700_v22, %v3699_v53  ;;  %v3670_v14 = vadd.f32 %v3669_v63, %v3668_v61  ;;  %vm6987_vm12 = vcmask 1045509  }
 0x2b3   : > { %v3702_v27 = vsel %vm6975_vm1, %v3446_v10, 0.0  ;;  %vm6977_vm10 = vmmov %vm6816_vm0  ;;  %v3728_v11 = vadd.f32 %v3727_v62, %v3726_v2  ;;  %vm6988_vm13 = vcmask 1046534   ;;  %vm6989_vm14 = vcmask 1047559  }
 0x2b4   : > { %v3729_v43 = vsel %vm6977_vm10, %v6976_v23, 0.0  ;;  %vm6978_vm11 = vmmov %vm6816_vm0  ;;  %v3703_v40 = vadd.f32 %v3702_v27, %v3701_v58  ;;  %v3671_v10 = vrot.slane %v3670_v14, 1 }
 0x2b5   : > { %v3731_v32 = vsel %vm6978_vm11, %v3186_v44, 0.0  ;;  %v3730_v37 = vadd.f32 %v3729_v43, %v3728_v11  ;;  %vm6979_vm8 = vmmov %vm6816_vm0 }
 0x2b6   : > { %v3733_v56 = vsel %vm6979_vm8, %v3252_v45, 0.0  ;;  %v3704_v47 = vrot.slane %v3703_v40, 4  ;;  %vm6980_vm6 = vmmov %vm6816_vm0  ;;  %v3672_v36 = vadd.f32 %v3671_v10, %v3670_v14 }
 0x2b7   : > { %v3732_v12 = vadd.f32 %v3731_v32, %v3730_v37  ;;  %v3735_v31 = vsel %vm6980_vm6, %v3318_v34, 0.0  ;;  %vm6981_vm15 = vmmov %vm6816_vm0  ;;  %vm6982_vm0 = vcmask 1041409  }
 0x2b8   : > { %v3705_v19 = vadd.f32 %v3704_v47, %v3703_v40  ;;  %v3737_v16 = vsel %vm6981_vm15, %v3384_v18, 0.0  ;;  %v3755_v57 = vsel %vm6982_vm0, %v3524_v42, %v3487_v30  ;;  %vm6983_vm2 = vmmov %vm6975_vm1 }
 0x2b9   : > { %v3734_v55 = vadd.f32 %v3733_v56, %v3732_v12  ;;  %v3739_v3 = vsel %vm6983_vm2, %v3450_v20, 0.0  ;;  %v3756_v1 = vsel %vm6984_vm3, %v3561_v26, %v3755_v57 }
 0x2ba   : > { %v3706_v15 = vrot.slane %v3705_v19, 2  ;;  %v3757_v28 = vsel %vm6985_vm5, %v3598_v29, %v3756_v1 }
 0x2bb   : > { %v3736_v13 = vadd.f32 %v3735_v31, %v3734_v55  ;;  %v3758_v25 = vsel %vm6986_vm7, %v3635_v49, %v3757_v28 }
 0x2bc   : > { %v3707_v38 = vadd.f32 %v3706_v15, %v3705_v19  ;;  %v3759_v51 = vsel %vm6987_vm12, %v3672_v36, %v3758_v25 }
 0x2bd   : > { %v3738_v4 = vadd.f32 %v3737_v16, %v3736_v13 }
 0x2be   : > { %v3708_v52 = vrot.slane %v3707_v38, 1 }
 0x2bf   : > { %v3740_v24 = vadd.f32 %v3739_v3, %v3738_v4 }
 0x2c0   : > { %v3709_v35 = vadd.f32 %v3708_v52, %v3707_v38 }
 0x2c1   : > { %v3741_v5 = vrot.slane %v3740_v24, 4 }
 0x2c2   : > { %v3760_v44 = vsel %vm6988_vm13, %v3709_v35, %v3759_v51 }
 0x2c3   : > { %v3742_v8 = vadd.f32 %v3741_v5, %v3740_v24 }
 0x2c5   : > { %v3743_v6 = vrot.slane %v3742_v8, 2 }
 0x2c7   : > { %v3744_v33 = vadd.f32 %v3743_v6, %v3742_v8 }
 0x2c9   : > { %v3745_v46 = vrot.slane %v3744_v33, 1 }
 0x2cb   : > { %v3746_v22 = vadd.f32 %v3745_v46, %v3744_v33 }
 0x2cd   : > { %v3761_v21 = vsel %vm6989_vm14, %v3746_v22, %v3760_v44 }
 0x2ce   : > { %v3763_v62 = vsub.f32 %v2330_v41, %v3761_v21 }
 0x2d0   : > { %3764 = vst [vmem:[%s4323_s14] sm:$0xff] %v3763_v62 }
 0x2d1 PF: > { %s3777_s23 = scalar_lea.hbm %s6523_s4, %s4808_s26  ;;  %s3779_s24 = sshll.u32 %s4323_s14, 4  ;;  %s3780_s24 = int_to_ptr.vmem [resolvable:$true] %s3779_s24 }
 0x2d2   : > { %s6990_s29 = sand.u32 1, %s4169_s16   ;;  %s4101_s7 = scalar_lea.vmem %s3780_s24, 128 }
 0x2d3   : > { %s3766_s30 = scalar_lea.sflag [#allocation3], %s6990_s29  ;;  %p4102_p6 = scmp.ne.s32.totalorder %s3780_s24, %s4101_s7 }
 0x2d4   : > { %s4201_s13 = smov [#allocation2]  }
 0x2d5   : > { %p4103_p7 = pnand %p4102_p6, %p4276_p3  ;;  %s4105_s11 = sshll.u32 %s4201_s13, 4  ;;  %s4106_s11 = int_to_ptr.vmem [resolvable:$false] %s4105_s11 }
 0x2d6   : > { %s4107_s21 = scalar_lea.vmem %s4106_s11, 256  ;;  %p4108_p10 = scmp.lt.s32.totalorder %s3780_s24, %s4106_s11 }
 0x2d7   : > { %p4104_p8 = pneg %p4103_p7  ;;  %p4109_p11 = scmp.lt.s32.totalorder %s4107_s21, %s4101_s7 }
 0x2d9   : > { %p4110_p12 = por %p4109_p11, %p4108_p10 }
 0x2db   : > { %p4111_p13 = pnand %p4110_p12, %p4104_p8 }
 0x2dd   : > { %4114 = shalt.err (!%p4111_p13)
}
 0x2de   : > { %s4115_s25 = scalar_lea.hbm %s3777_s23, 128  ;;  %s4119_s6 = scalar_lea.hbm %s6523_s4, 512 }
 0x2df   : > { %p4116_p0 = scmp.ne.s32.totalorder %s3777_s23, %s4115_s25  ;;  %p4120_p4 = scmp.lt.s32.totalorder %s3777_s23, %s6523_s4 }
 0x2e0   : > { %p4121_p5 = scmp.lt.s32.totalorder %s4119_s6, %s4115_s25 }
 0x2e1   : > { %p4117_p1 = pnand %p4116_p0, %p4276_p3 }
 0x2e2   : > { %p4122_p6 = por %p4121_p5, %p4120_p4 }
 0x2e3   : > { %p4118_p2 = pneg %p4117_p1 }
 0x2e5   : > { %p4123_p7 = pnand %p4122_p6, %p4118_p2 }
 0x2e7   : > { %4126 = shalt.err (!%p4123_p7)
}
 0x2e8   : > { %3998 = dma.vmem_to_hbm [thread:$0]  (%p4276_p3), %s3780_s24, 128, %s3777_s23, %s3766_s30  }
 0x2e9 PF: > { %p4004_p8 = scmp.ge.s32.totalorder %s4193_s22, 2  ;;  %s3791_s18 = sand.u32 1, %s4165_s15  }
 0x2ea   : > { %s3792_s19 = scalar_lea.sflag [#allocation3], %s3791_s18 }
 0x2eb   : > { %p4001_p10 = pnand %p4004_p8, %p4286_p9 }
 0x2ed   : > { %p4002_p11 = pneg %p4001_p10 }
 0x2ef   : > { %4160 = dma.done.wait (%p4002_p11), %s3792_s19, 128  }
 0x2f0   : > { %4162 = vsyncadd (%p4002_p11), %s3792_s19, 4294967168  ;;  %s17_s22 = sadd.s32 1, %s4193_s22   ;;  %s6991_s19 = sld [smem:[#allocation5_spill]] }
 0x2f1   : > { %p14_p12 = scmp.ge.s32.totalorder %s17_s22, 10   ;;  %s6992_s27 = sld [smem:[#allocation6_spill]] }
 0x2f2   : > { %s6993_s21 = sld [smem:[#allocation7_spill]]  ;;  %s6994_s15 = smov %s4169_s16 }
 0x2f3   : > { %s6995_s16 = smov %s4173_s17  ;;  %s6996_s17 = smov %s4294_s5 }
 0x2f4   : > { %s6997_s18 = smov %s4185_s20  ;;  %16 = sbr.rel (!%p14_p12) target bundleno = 5 (0x5), region = 88 }
 0x2f7   : > { %s6998_s20 = smov %s6992_s27 }
 0x2f9   :  { %3797 = vsyncpa [#allocation3], 1 }
 0x2fa   :  { %3799 = vsyncpa [#allocation3 + $0x1], 1 }

</bundles_post_ra>
